<compile_context>
chip_gen: v7x
topology: tpu7x:2x2x1
jax: 0.10.0
libtpu: 0.0.40
codegen_flags: <defaults>
</compile_context>

<pallas_src>
import functools

import jax
import jax.numpy as jnp
import numpy as np
from jax.experimental import pallas as pl
from jax.experimental.pallas import tpu as pltpu


# ---------------------------------------------------------------------------
# helpers
# ---------------------------------------------------------------------------

def _round_up(x, m):
    return ((x + m - 1) // m) * m


@functools.lru_cache(maxsize=1)
def _vmem_cap():
    """Physical VMEM capacity (per generation); conservative fallback."""
    try:
        cap = getattr(pltpu.get_tpu_info(), "vmem_capacity_bytes", None)
        if cap:
            return int(cap)
    except Exception:
        pass
    return 64 << 20            # v7x per-TC size; safe lower bound everywhere


def _vmem_budget():
    # Leave headroom for compiler internal scratch / semaphores.
    return (_vmem_cap() * 3) // 4


def _vmem_limit(need_bytes):
    need = int(need_bytes) + (2 << 20)
    return int(min(max(need, 32 << 20), _vmem_budget()))


# ---------------------------------------------------------------------------
# Pallas kernels
# ---------------------------------------------------------------------------

def _conv_s2d_lrelu_kernel(x_ref, w_ref, o_ref, acc_ref, *, nb, oh, ow):
    """Space-to-depth form of the 4x4/stride-2 conv, fused LeakyReLU(0.2).

      x_ref  : (nb, oh+1, ow+1, tk)  bf16   (tk = K tile of 4*Cin_pad)
      w_ref  : (4, tk, Cout_pad)     bf16   (tap-major 2x2 weights)
      o_ref  : (nb*oh*ow, Cout_pad)  bf16   (lane/sublane-dense slab)
      acc_ref: (nb*oh*ow, Cout_pad)  f32    (persists across the K grid axis)
    """
    k = pl.program_id(1)
    m = nb * oh * ow
    tk = x_ref.shape[-1]

    @pl.when(k == 0)
    def _():
        acc_ref[...] = jnp.zeros_like(acc_ref)

    # Four 2x2 taps -> four big (M, tk) x (tk, Cout_pad) MXU matmuls,
    # accumulated into the f32 VMEM scratch (no chained vreg accumulator).
    for p in range(2):
        for q in range(2):
            lhs = x_ref[:, p:p + oh, q:q + ow, :].reshape(m, tk)
            acc_ref[...] += jnp.dot(lhs, w_ref[2 * p + q, :, :],
                                    preferred_element_type=jnp.float32)

    @pl.when(k == pl.num_programs(1) - 1)
    def _():
        acc = acc_ref[...]
        act = jnp.maximum(acc, 0.2 * acc)            # LeakyReLU(0.2), f32
        o_ref[...] = act.astype(o_ref.dtype)


def _pick_conv_tiles(n, oh, ow, kdim, cop, hs, ws):
    """Choose (batch_block nb, K tile tk, vmem estimate) for one conv layer."""
    # K tile: keep one weight buffer <= 8 MiB (16 MiB double-buffered) so deep
    # layers stay inside v7x's 64 MiB VMEM.  (tk stays a multiple of 128.)
    tk = kdim
    while (4 * tk * cop * 2 > (8 << 20) and tk % 2 == 0
           and (tk // 2) % 128 == 0):
        tk //= 2
    # Batch block: target MXU M = nb*oh*ow >= 256 where the batch allows.
    nb = min(n, max(1, -(-256 // (oh * ow))))
    while n % nb:
        nb -= 1
    # Prefer >= 2 parallel grid steps (v7x megacore) if M stays >= 128.
    if nb == n and n > 1 and n % (n // 2) == 0 and (n // 2) * oh * ow >= 128:
        nb = n // 2

    budget = _vmem_budget()

    def need(nb_):
        m = nb_ * oh * ow
        return (2 * nb_ * hs * ws * tk * 2       # input blocks (x2 buffers)
                + 2 * 4 * tk * cop * 2           # weight blocks (x2 buffers)
                + 2 * m * cop * 2                # output blocks (x2 buffers)
                + m * cop * 4                    # f32 accumulator scratch
                + (2 << 20))                     # margin

    while nb > 1 and need(nb) > budget:          # VMEM-derived cap
        nb -= 1
        while n % nb:
            nb -= 1
    return nb, tk, need(nb)


def conv_s2d_lrelu(xs, wm, oh, ow, c_out_pad):
    """xs: (N, oh+1, ow+1, K) bf16; wm: (4, K, Cout_pad) bf16.
    Returns the activation as a flat (N*oh*ow, Cout_pad) bf16 slab."""
    n, hs, ws, kdim = xs.shape
    assert hs == oh + 1 and ws == ow + 1
    nb, tk, need = _pick_conv_tiles(n, oh, ow, kdim, c_out_pad, hs, ws)
    m = nb * oh * ow
    k_steps = kdim // tk
    # NOTE: when k_steps == 1 the weight index_map is constant, so Pallas
    # only DMAs it once (it is not re-fetched per batch block).
    return pl.pallas_call(
        functools.partial(_conv_s2d_lrelu_kernel, nb=nb, oh=oh, ow=ow),
        out_shape=jax.ShapeDtypeStruct((n * oh * ow, c_out_pad), jnp.bfloat16),
        grid_spec=pltpu.PrefetchScalarGridSpec(
            num_scalar_prefetch=0,
            grid=(n // nb, k_steps),
            in_specs=[
                pl.BlockSpec((nb, hs, ws, tk), lambda i, k: (i, 0, 0, k)),
                pl.BlockSpec((4, tk, c_out_pad), lambda i, k: (0, k, 0)),
            ],
            out_specs=pl.BlockSpec((m, c_out_pad), lambda i, k: (i, 0)),
            scratch_shapes=[pltpu.VMEM((m, c_out_pad), jnp.float32)],
        ),
        compiler_params=pltpu.CompilerParams(
            dimension_semantics=("parallel", "arbitrary"),
            vmem_limit_bytes=_vmem_limit(need),
        ),
    )(xs, wm)


def _head_kernel(y_ref, w_ref, eps_ref, fc_ref, rep_ref, acc_ref, *, kp):
    """Fused fc + reparam head: one matmul against the concatenated
    [fc | mu | logvar] weight (each segment padded to 128 lanes), accumulated
    over the in_size grid axis; finalize applies eps*exp(0.5*logvar)+mu."""
    k = pl.program_id(0)

    @pl.when(k == 0)
    def _():
        acc_ref[...] = jnp.zeros_like(acc_ref)

    acc_ref[...] += jnp.dot(y_ref[...], w_ref[...],
                            preferred_element_type=jnp.float32)

    @pl.when(k == pl.num_programs(0) - 1)
    def _():
        stat = acc_ref[...]
        fc = stat[:, 0:kp]                        # lane-aligned 128 slices
        mu = stat[:, kp:2 * kp]
        logvar = stat[:, 2 * kp:3 * kp]
        fc_ref[...] = fc
        rep_ref[...] = eps_ref[...] * jnp.exp(0.5 * logvar) + mu


def dcgan_d_head(y2d, w_head, eps_pad, kp):
    n, in_pad = y2d.shape
    three_kp = w_head.shape[1]
    budget = _vmem_budget()
    tk = in_pad
    while tk > 8192 and tk % 2 == 0:              # cap K-tile, keep divisor
        tk //= 2
    while tk > 2048 and 2 * (n * tk * 2 + tk * three_kp * 2) + (4 << 20) > budget:
        tk //= 2
    assert in_pad % tk == 0 and tk % 128 == 0
    need = (2 * n * tk * 2 + 2 * tk * three_kp * 2
            + 2 * n * kp * 4 + 4 * n * kp * 4 + n * three_kp * 4)
    return pl.pallas_call(
        functools.partial(_head_kernel, kp=kp),
        out_shape=(jax.ShapeDtypeStruct((n, kp), jnp.float32),
                   jax.ShapeDtypeStruct((n, kp), jnp.float32)),
        grid_spec=pltpu.PrefetchScalarGridSpec(
            num_scalar_prefetch=0,
            grid=(in_pad // tk,),
            in_specs=[
                pl.BlockSpec((n, tk), lambda k: (0, k)),
                pl.BlockSpec((tk, three_kp), lambda k: (k, 0)),
                pl.BlockSpec((n, kp), lambda k: (0, 0)),
            ],
            out_specs=(pl.BlockSpec((n, kp), lambda k: (0, 0)),
                       pl.BlockSpec((n, kp), lambda k: (0, 0))),
            scratch_shapes=[pltpu.VMEM((n, three_kp), jnp.float32)],
        ),
        compiler_params=pltpu.CompilerParams(
            dimension_semantics=("arbitrary",),   # reduction axis
            vmem_limit_bytes=_vmem_limit(need),
        ),
    )(y2d, w_head, eps_pad)


# ---------------------------------------------------------------------------
# init-time parameter preprocessing (spectral norm, layouts, padding, bf16)
# ---------------------------------------------------------------------------

def spectral_normalize(w, n_iter=30):
    """Divide weight by its largest singular value (power iteration),
    mirroring torch.nn.utils.spectral_norm's weight_mat = w.view(out, -1).
    (Done once at init rather than one iteration per forward.)"""
    out_dim = w.shape[0]
    w2d = w.reshape(out_dim, -1)
    u = jnp.ones((out_dim,), dtype=w2d.dtype)
    for _ in range(n_iter):
        v = w2d.T @ u
        v = v / (jnp.linalg.norm(v) + 1e-12)
        u = w2d @ v
        u = u / (jnp.linalg.norm(u) + 1e-12)
    sigma = u @ (w2d @ v)
    return (w2d / sigma).reshape(w.shape)


def prep_conv_weight(w, c_in_pad, c_out_pad):
    """(Cout, Cin, 4, 4) torch conv weight -> (4, 4*c_in_pad, c_out_pad) bf16
    weight for the space-to-depth 2x2 formulation (zero padded)."""
    w = np.asarray(w, dtype=np.float32)
    cout, cin = w.shape[0], w.shape[1]
    kdim = 4 * c_in_pad
    wm = np.zeros((4, kdim, c_out_pad), np.float32)
    for p in range(2):
        for q in range(2):
            for di in range(2):
                for dj in range(2):
                    base = (2 * di + dj) * c_in_pad
                    wm[2 * p + q, base:base + cin, :cout] = \
                        w[:, :, 2 * p + di, 2 * q + dj].T
    return jnp.asarray(wm, dtype=jnp.bfloat16)


def prep_head_weight(w_fc, w_rep, c_real, c_pad, k, kp):
    """Concatenate fc / mu / logvar weights into one (16*c_pad, 3*kp) bf16
    matrix whose row order matches the NHWC, channel-padded flatten of the
    last 4x4 feature map (so the forward pass needs no transpose)."""
    w_fc = np.asarray(w_fc, np.float32)        # (k, in_size)
    w_rep = np.asarray(w_rep, np.float32)      # (2k, in_size)
    in_pad = 16 * c_pad
    W = np.zeros((in_pad, 3 * kp), np.float32)
    for h in range(4):
        for w_ in range(4):
            tidx = np.arange(c_real) * 16 + h * 4 + w_   # torch flatten index
            base = (h * 4 + w_) * c_pad
            W[base:base + c_real, 0:k] = w_fc[:, tidx].T
            W[base:base + c_real, kp:kp + k] = w_rep[0:k, tidx].T
            W[base:base + c_real, 2 * kp:2 * kp + k] = w_rep[k:2 * k, tidx].T
    return jnp.asarray(W, dtype=jnp.bfloat16)


def init_params(key, n_channels, D_h_size, image_size, num_outcomes,
                use_adaptive_reparam=True):
    # Replicate the layer-shape construction loop of DCGAN_D.__init__.
    conv_shapes = [(D_h_size, n_channels)]
    image_size_new = image_size // 2
    mult = 1
    while image_size_new > 4:
        conv_shapes.append((D_h_size * (2 * mult), D_h_size * mult))
        image_size_new //= 2
        mult *= 2
    in_size = D_h_size * mult * 4 * 4

    keys = jax.random.split(key, len(conv_shapes) + 2)
    conv_layers = []
    for idx, (cout, cin) in enumerate(conv_shapes):
        w = 0.02 * jax.random.normal(keys[idx], (cout, cin, 4, 4),
                                     dtype=jnp.float32)
        w = spectral_normalize(w)
        if idx == 0:
            # Layer 1: pad Cin only to 8 (K = 32) — avoids the ~10x inflated
            # space-to-depth intermediate / wasted contraction of a 128-lane K.
            c_in_pad = _round_up(cin, 8)
        else:
            c_in_pad = conv_layers[-1]["c_out_pad"]
        c_out_pad = _round_up(cout, 128)       # lane-dense output stores
        conv_layers.append({
            "w": prep_conv_weight(w, c_in_pad, c_out_pad),
            "c_in_pad": c_in_pad,
            "c_out_pad": c_out_pad,
        })

    c_last_real = conv_shapes[-1][0]
    c_last_pad = conv_layers[-1]["c_out_pad"]
    kp = _round_up(num_outcomes, 128)

    ortho = jax.nn.initializers.orthogonal()
    w_fc = spectral_normalize(
        ortho(keys[-2], (num_outcomes, in_size), jnp.float32))
    w_rep = spectral_normalize(
        ortho(keys[-1], (2 * num_outcomes, in_size), jnp.float32))
    w_head = prep_head_weight(w_fc, w_rep, c_last_real, c_last_pad,
                              num_outcomes, kp)

    return {
        "conv_layers": conv_layers,
        "w_head": w_head,
        "k": num_outcomes,
        "kp": kp,
        "use_adaptive_reparam": use_adaptive_reparam,
    }


# ---------------------------------------------------------------------------
# forward
# ---------------------------------------------------------------------------

def space_to_depth_pad(x, c_in_pad):
    """Spatial pad=1 + 2x2 space-to-depth + channel zero-pad.
    (N, H, W, C) -> (N, H//2 + 1, W//2 + 1, 4*c_in_pad).  Pure layout op
    (~1x HBM traffic); the 4x-inflated im2col patch matrix never exists.
    # TODO(synk): fuse this relayout into the conv kernel's input side to
    # remove the per-layer HBM round trip entirely."""
    n, h, w, c = x.shape
    xp = jnp.pad(x, ((0, 0), (1, 1), (1, 1), (0, c_in_pad - c)))
    hs, ws = (h + 2) // 2, (w + 2) // 2
    xs = xp.reshape(n, hs, 2, ws, 2, c_in_pad)
    xs = jnp.transpose(xs, (0, 1, 3, 2, 4, 5)).reshape(n, hs, ws, 4 * c_in_pad)
    return xs


def dcgan_d_forward(x_nchw, params, eps):
    x = jnp.transpose(x_nchw, (0, 2, 3, 1)).astype(jnp.bfloat16)   # NHWC bf16
    n = x.shape[0]
    for layer in params["conv_layers"]:
        _, h, w, _ = x.shape
        oh, ow = h // 2, w // 2
        xs = space_to_depth_pad(x, layer["c_in_pad"])
        flat = conv_s2d_lrelu(xs, layer["w"], oh, ow, layer["c_out_pad"])
        x = flat.reshape(n, oh, ow, layer["c_out_pad"])
    # Contiguous NHWC channel-padded flatten (free metadata op); the head
    # weight rows were pre-permuted at init to exactly this ordering.
    y2d = x.reshape(n, -1)
    k, kp = params["k"], params["kp"]
    eps_pad = jnp.zeros((n, kp), jnp.float32).at[:, :k].set(
        eps.astype(jnp.float32))
    # TODO(synk): fuse the last (4x4) conv layer with the head in one
    # pallas_call; both stages are launch/latency-bound at small batch.
    fc_pad, rep_pad = dcgan_d_head(y2d, params["w_head"], eps_pad, kp)
    out_pad = rep_pad if params["use_adaptive_reparam"] else fc_pad
    return out_pad[:, :k]


# ---------------------------------------------------------------------------
if __name__ == "__main__":
    # Small, module-consistent shapes: batch=2, n_channels=4, image_size=16,
    # D_h_size=8, num_outcomes=8  ->  conv stack 16->8->4, in_size = 8*2*4*4.
    batch, n_channels, image_size = 2, 4, 16
    D_h_size, num_outcomes = 8, 8

    root = jax.random.PRNGKey(0)
    k_params, k_x, k_eps = jax.random.split(root, 3)

    params = init_params(k_params, n_channels, D_h_size, image_size,
                         num_outcomes, use_adaptive_reparam=True)
    x = jax.random.normal(k_x, (batch, n_channels, image_size, image_size),
                          dtype=jnp.float32)
    # epsilon ~ N(0,1), same role as torch.randn(B, num_outcomes, 1, 1)
    eps = jax.random.normal(k_eps, (batch, num_outcomes), dtype=jnp.float32)

    fwd = jax.jit(lambda xi, ei: dcgan_d_forward(xi, params, ei))
    out = jax.block_until_ready(fwd(x, eps))
    assert out.shape == (batch, num_outcomes)
    assert bool(jnp.all(jnp.isfinite(out)))
    print("KERNEL_OK")
</pallas_src>

<mosaic_0001>
module attributes {stable_mosaic.version = 11 : i64} {
  func.func @_conv_s2d_lrelu_kernel(%arg0: i32, %arg1: i32, %arg2: memref<2x9x9x32xbf16, #tpu.memory_space<vmem>>, %arg3: memref<4x32x128xbf16, #tpu.memory_space<vmem>>, %arg4: memref<128x128xbf16, #tpu.memory_space<vmem>>, %arg5: memref<128x128xf32, #tpu.memory_space<vmem>>) attributes {dimension_semantics = [#tpu.dimension_semantics<parallel>, #tpu.dimension_semantics<arbitrary>], iteration_bounds = array<i64: 1, 1>, scalar_prefetch = 0 : i64, scratch_operands = 1 : i64, tpu.core_type = #tpu.core_type<tc>, window_params = [{transform_indices = @transform_0, window_bounds = array<i64: 2, 9, 9, 32>}, {transform_indices = @transform_1, window_bounds = array<i64: 4, 32, 128>}, {transform_indices = @transform_2, window_bounds = array<i64: 128, 128>}]} {
    %c0_i32 = arith.constant 0 : i32
    %0 = arith.cmpi eq, %arg1, %c0_i32 : i32
    %1 = arith.extui %0 : i1 to i32
    %c0_i32_0 = arith.constant 0 : i32
    %2 = arith.cmpi ne, %1, %c0_i32_0 : i32
    scf.if %2 {
      %cst_46 = arith.constant 0.000000e+00 : f32
      %38 = vector.broadcast %cst_46 : f32 to vector<128x128xf32>
      %c0_47 = arith.constant 0 : index
      %c0_48 = arith.constant 0 : index
      %39 = vector.load %arg5[%c0_47, %c0_48] : memref<128x128xf32, #tpu.memory_space<vmem>>, vector<128x128xf32>
      tpu.vector_store %arg5[%c0_47, %c0_48], %38 {strides = array<i32>} : memref<128x128xf32, #tpu.memory_space<vmem>>, vector<128x128xf32>,
    } else {
    }
    %c0 = arith.constant 0 : index
    %c0_1 = arith.constant 0 : index
    %c0_2 = arith.constant 0 : index
    %c0_3 = arith.constant 0 : index
    %3 = vector.load %arg2[%c0, %c0_1, %c0_2, %c0_3] : memref<2x9x9x32xbf16, #tpu.memory_space<vmem>>, vector<2x8x8x32xbf16>
    %4 = vector.shape_cast %3 : vector<2x8x8x32xbf16> to vector<128x32xbf16>
    %c0_4 = arith.constant 0 : index
    %c0_5 = arith.constant 0 : index
    %5 = vector.load %arg5[%c0_4, %c0_5] : memref<128x128xf32, #tpu.memory_space<vmem>>, vector<128x128xf32>
    %c0_6 = arith.constant 0 : index
    %c0_7 = arith.constant 0 : index
    %c0_8 = arith.constant 0 : index
    %6 = vector.load %arg3[%c0_6, %c0_7, %c0_8] : memref<4x32x128xbf16, #tpu.memory_space<vmem>>, vector<1x32x128xbf16>
    %7 = vector.shape_cast %6 : vector<1x32x128xbf16> to vector<32x128xbf16>
    %cst = arith.constant dense<0.000000e+00> : vector<128x128xf32>
    %8 = tpu.matmul %4, %7, %cst {dimension_numbers = #tpu.dot_dimension_numbers<[1], [0], [0], [1], [0, 0, 1, 1], [], []>} : vector<128x32xbf16>, vector<32x128xbf16>, vector<128x128xf32> -> vector<128x128xf32>
    %9 = arith.addf %5, %8 : vector<128x128xf32>
    %c0_9 = arith.constant 0 : index
    %c0_10 = arith.constant 0 : index
    %10 = vector.load %arg5[%c0_9, %c0_10] : memref<128x128xf32, #tpu.memory_space<vmem>>, vector<128x128xf32>
    tpu.vector_store %arg5[%c0_9, %c0_10], %9 {strides = array<i32>} : memref<128x128xf32, #tpu.memory_space<vmem>>, vector<128x128xf32>,
    %c0_11 = arith.constant 0 : index
    %c0_12 = arith.constant 0 : index
    %c1 = arith.constant 1 : index
    %c0_13 = arith.constant 0 : index
    %11 = vector.load %arg2[%c0_11, %c0_12, %c1, %c0_13] : memref<2x9x9x32xbf16, #tpu.memory_space<vmem>>, vector<2x8x8x32xbf16>
    %12 = vector.shape_cast %11 : vector<2x8x8x32xbf16> to vector<128x32xbf16>
    %c0_14 = arith.constant 0 : index
    %c0_15 = arith.constant 0 : index
    %13 = vector.load %arg5[%c0_14, %c0_15] : memref<128x128xf32, #tpu.memory_space<vmem>>, vector<128x128xf32>
    %c1_16 = arith.constant 1 : index
    %c0_17 = arith.constant 0 : index
    %c0_18 = arith.constant 0 : index
    %14 = vector.load %arg3[%c1_16, %c0_17, %c0_18] : memref<4x32x128xbf16, #tpu.memory_space<vmem>>, vector<1x32x128xbf16>
    %15 = vector.shape_cast %14 : vector<1x32x128xbf16> to vector<32x128xbf16>
    %cst_19 = arith.constant dense<0.000000e+00> : vector<128x128xf32>
    %16 = tpu.matmul %12, %15, %cst_19 {dimension_numbers = #tpu.dot_dimension_numbers<[1], [0], [0], [1], [0, 0, 1, 1], [], []>} : vector<128x32xbf16>, vector<32x128xbf16>, vector<128x128xf32> -> vector<128x128xf32>
    %17 = arith.addf %13, %16 : vector<128x128xf32>
    %c0_20 = arith.constant 0 : index
    %c0_21 = arith.constant 0 : index
    %18 = vector.load %arg5[%c0_20, %c0_21] : memref<128x128xf32, #tpu.memory_space<vmem>>, vector<128x128xf32>
    tpu.vector_store %arg5[%c0_20, %c0_21], %17 {strides = array<i32>} : memref<128x128xf32, #tpu.memory_space<vmem>>, vector<128x128xf32>,
    %c0_22 = arith.constant 0 : index
    %c1_23 = arith.constant 1 : index
    %c0_24 = arith.constant 0 : index
    %c0_25 = arith.constant 0 : index
    %19 = vector.load %arg2[%c0_22, %c1_23, %c0_24, %c0_25] : memref<2x9x9x32xbf16, #tpu.memory_space<vmem>>, vector<2x8x8x32xbf16>
    %20 = vector.shape_cast %19 : vector<2x8x8x32xbf16> to vector<128x32xbf16>
    %c0_26 = arith.constant 0 : index
    %c0_27 = arith.constant 0 : index
    %21 = vector.load %arg5[%c0_26, %c0_27] : memref<128x128xf32, #tpu.memory_space<vmem>>, vector<128x128xf32>
    %c2 = arith.constant 2 : index
    %c0_28 = arith.constant 0 : index
    %c0_29 = arith.constant 0 : index
    %22 = vector.load %arg3[%c2, %c0_28, %c0_29] : memref<4x32x128xbf16, #tpu.memory_space<vmem>>, vector<1x32x128xbf16>
    %23 = vector.shape_cast %22 : vector<1x32x128xbf16> to vector<32x128xbf16>
    %cst_30 = arith.constant dense<0.000000e+00> : vector<128x128xf32>
    %24 = tpu.matmul %20, %23, %cst_30 {dimension_numbers = #tpu.dot_dimension_numbers<[1], [0], [0], [1], [0, 0, 1, 1], [], []>} : vector<128x32xbf16>, vector<32x128xbf16>, vector<128x128xf32> -> vector<128x128xf32>
    %25 = arith.addf %21, %24 : vector<128x128xf32>
    %c0_31 = arith.constant 0 : index
    %c0_32 = arith.constant 0 : index
    %26 = vector.load %arg5[%c0_31, %c0_32] : memref<128x128xf32, #tpu.memory_space<vmem>>, vector<128x128xf32>
    tpu.vector_store %arg5[%c0_31, %c0_32], %25 {strides = array<i32>} : memref<128x128xf32, #tpu.memory_space<vmem>>, vector<128x128xf32>,
    %c0_33 = arith.constant 0 : index
    %c1_34 = arith.constant 1 : index
    %c1_35 = arith.constant 1 : index
    %c0_36 = arith.constant 0 : index
    %27 = vector.load %arg2[%c0_33, %c1_34, %c1_35, %c0_36] : memref<2x9x9x32xbf16, #tpu.memory_space<vmem>>, vector<2x8x8x32xbf16>
    %28 = vector.shape_cast %27 : vector<2x8x8x32xbf16> to vector<128x32xbf16>
    %c0_37 = arith.constant 0 : index
    %c0_38 = arith.constant 0 : index
    %29 = vector.load %arg5[%c0_37, %c0_38] : memref<128x128xf32, #tpu.memory_space<vmem>>, vector<128x128xf32>
    %c3 = arith.constant 3 : index
    %c0_39 = arith.constant 0 : index
    %c0_40 = arith.constant 0 : index
    %30 = vector.load %arg3[%c3, %c0_39, %c0_40] : memref<4x32x128xbf16, #tpu.memory_space<vmem>>, vector<1x32x128xbf16>
    %31 = vector.shape_cast %30 : vector<1x32x128xbf16> to vector<32x128xbf16>
    %cst_41 = arith.constant dense<0.000000e+00> : vector<128x128xf32>
    %32 = tpu.matmul %28, %31, %cst_41 {dimension_numbers = #tpu.dot_dimension_numbers<[1], [0], [0], [1], [0, 0, 1, 1], [], []>} : vector<128x32xbf16>, vector<32x128xbf16>, vector<128x128xf32> -> vector<128x128xf32>
    %33 = arith.addf %29, %32 : vector<128x128xf32>
    %c0_42 = arith.constant 0 : index
    %c0_43 = arith.constant 0 : index
    %34 = vector.load %arg5[%c0_42, %c0_43] : memref<128x128xf32, #tpu.memory_space<vmem>>, vector<128x128xf32>
    tpu.vector_store %arg5[%c0_42, %c0_43], %33 {strides = array<i32>} : memref<128x128xf32, #tpu.memory_space<vmem>>, vector<128x128xf32>,
    %c0_i32_44 = arith.constant 0 : i32
    %35 = arith.cmpi eq, %arg1, %c0_i32_44 : i32
    %36 = arith.extui %35 : i1 to i32
    %c0_i32_45 = arith.constant 0 : i32
    %37 = arith.cmpi ne, %36, %c0_i32_45 : i32
    scf.if %37 {
      %c0_46 = arith.constant 0 : index
      %c0_47 = arith.constant 0 : index
      %38 = vector.load %arg5[%c0_46, %c0_47] : memref<128x128xf32, #tpu.memory_space<vmem>>, vector<128x128xf32>
      %cst_48 = arith.constant 2.000000e-01 : f32
      %39 = vector.broadcast %cst_48 : f32 to vector<128x128xf32>
      %40 = arith.mulf %39, %38 : vector<128x128xf32>
      %41 = arith.maximumf %38, %40 : vector<128x128xf32>
      %42 = arith.truncf %41 : vector<128x128xf32> to vector<128x128xbf16>
      %c0_49 = arith.constant 0 : index
      %c0_50 = arith.constant 0 : index
      %43 = vector.load %arg4[%c0_49, %c0_50] : memref<128x128xbf16, #tpu.memory_space<vmem>>, vector<128x128xbf16>
      tpu.vector_store %arg4[%c0_49, %c0_50], %42 {strides = array<i32>} : memref<128x128xbf16, #tpu.memory_space<vmem>>, vector<128x128xbf16>,
    } else {
    }
    return
  }
  func.func @transform_0(%arg0: i32, %arg1: i32) -> (i32, i32, i32, i32) {
    %c0_i32 = arith.constant 0 : i32
    %c0_i32_0 = arith.constant 0 : i32
    %c0_i32_1 = arith.constant 0 : i32
    return %arg0, %c0_i32, %c0_i32_0, %arg1 : i32, i32, i32, i32
  }
  func.func @transform_1(%arg0: i32, %arg1: i32) -> (i32, i32, i32) {
    %c0_i32 = arith.constant 0 : i32
    %c0_i32_0 = arith.constant 0 : i32
    %c0_i32_1 = arith.constant 0 : i32
    return %c0_i32, %arg1, %c0_i32_0 : i32, i32, i32
  }
  func.func @transform_2(%arg0: i32, %arg1: i32) -> (i32, i32) {
    %c0_i32 = arith.constant 0 : i32
    %c0_i32_0 = arith.constant 0 : i32
    return %arg0, %c0_i32 : i32, i32
  }
}

module attributes {stable_mosaic.version = 11 : i64} {
  func.func @_conv_s2d_lrelu_kernel(%arg0: i32, %arg1: i32, %arg2: memref<2x5x5x512xbf16, #tpu.memory_space<vmem>>, %arg3: memref<4x512x128xbf16, #tpu.memory_space<vmem>>, %arg4: memref<32x128xbf16, #tpu.memory_space<vmem>>, %arg5: memref<32x128xf32, #tpu.memory_space<vmem>>) attributes {dimension_semantics = [#tpu.dimension_semantics<parallel>, #tpu.dimension_semantics<arbitrary>], iteration_bounds = array<i64: 1, 1>, scalar_prefetch = 0 : i64, scratch_operands = 1 : i64, tpu.core_type = #tpu.core_type<tc>, window_params = [{transform_indices = @transform_0, window_bounds = array<i64: 2, 5, 5, 512>}, {transform_indices = @transform_1, window_bounds = array<i64: 4, 512, 128>}, {transform_indices = @transform_2, window_bounds = array<i64: 32, 128>}]} {
    %c0_i32 = arith.constant 0 : i32
    %0 = arith.cmpi eq, %arg1, %c0_i32 : i32
    %1 = arith.extui %0 : i1 to i32
    %c0_i32_0 = arith.constant 0 : i32
    %2 = arith.cmpi ne, %1, %c0_i32_0 : i32
    scf.if %2 {
      %cst_46 = arith.constant 0.000000e+00 : f32
      %38 = vector.broadcast %cst_46 : f32 to vector<32x128xf32>
      %c0_47 = arith.constant 0 : index
      %c0_48 = arith.constant 0 : index
      %39 = vector.load %arg5[%c0_47, %c0_48] : memref<32x128xf32, #tpu.memory_space<vmem>>, vector<32x128xf32>
      tpu.vector_store %arg5[%c0_47, %c0_48], %38 {strides = array<i32>} : memref<32x128xf32, #tpu.memory_space<vmem>>, vector<32x128xf32>,
    } else {
    }
    %c0 = arith.constant 0 : index
    %c0_1 = arith.constant 0 : index
    %c0_2 = arith.constant 0 : index
    %c0_3 = arith.constant 0 : index
    %3 = vector.load %arg2[%c0, %c0_1, %c0_2, %c0_3] : memref<2x5x5x512xbf16, #tpu.memory_space<vmem>>, vector<2x4x4x512xbf16>
    %4 = vector.shape_cast %3 : vector<2x4x4x512xbf16> to vector<32x512xbf16>
    %c0_4 = arith.constant 0 : index
    %c0_5 = arith.constant 0 : index
    %5 = vector.load %arg5[%c0_4, %c0_5] : memref<32x128xf32, #tpu.memory_space<vmem>>, vector<32x128xf32>
    %c0_6 = arith.constant 0 : index
    %c0_7 = arith.constant 0 : index
    %c0_8 = arith.constant 0 : index
    %6 = vector.load %arg3[%c0_6, %c0_7, %c0_8] : memref<4x512x128xbf16, #tpu.memory_space<vmem>>, vector<1x512x128xbf16>
    %7 = vector.shape_cast %6 : vector<1x512x128xbf16> to vector<512x128xbf16>
    %cst = arith.constant dense<0.000000e+00> : vector<32x128xf32>
    %8 = tpu.matmul %4, %7, %cst {dimension_numbers = #tpu.dot_dimension_numbers<[1], [0], [0], [1], [0, 0, 1, 1], [], []>} : vector<32x512xbf16>, vector<512x128xbf16>, vector<32x128xf32> -> vector<32x128xf32>
    %9 = arith.addf %5, %8 : vector<32x128xf32>
    %c0_9 = arith.constant 0 : index
    %c0_10 = arith.constant 0 : index
    %10 = vector.load %arg5[%c0_9, %c0_10] : memref<32x128xf32, #tpu.memory_space<vmem>>, vector<32x128xf32>
    tpu.vector_store %arg5[%c0_9, %c0_10], %9 {strides = array<i32>} : memref<32x128xf32, #tpu.memory_space<vmem>>, vector<32x128xf32>,
    %c0_11 = arith.constant 0 : index
    %c0_12 = arith.constant 0 : index
    %c1 = arith.constant 1 : index
    %c0_13 = arith.constant 0 : index
    %11 = vector.load %arg2[%c0_11, %c0_12, %c1, %c0_13] : memref<2x5x5x512xbf16, #tpu.memory_space<vmem>>, vector<2x4x4x512xbf16>
    %12 = vector.shape_cast %11 : vector<2x4x4x512xbf16> to vector<32x512xbf16>
    %c0_14 = arith.constant 0 : index
    %c0_15 = arith.constant 0 : index
    %13 = vector.load %arg5[%c0_14, %c0_15] : memref<32x128xf32, #tpu.memory_space<vmem>>, vector<32x128xf32>
    %c1_16 = arith.constant 1 : index
    %c0_17 = arith.constant 0 : index
    %c0_18 = arith.constant 0 : index
    %14 = vector.load %arg3[%c1_16, %c0_17, %c0_18] : memref<4x512x128xbf16, #tpu.memory_space<vmem>>, vector<1x512x128xbf16>
    %15 = vector.shape_cast %14 : vector<1x512x128xbf16> to vector<512x128xbf16>
    %cst_19 = arith.constant dense<0.000000e+00> : vector<32x128xf32>
    %16 = tpu.matmul %12, %15, %cst_19 {dimension_numbers = #tpu.dot_dimension_numbers<[1], [0], [0], [1], [0, 0, 1, 1], [], []>} : vector<32x512xbf16>, vector<512x128xbf16>, vector<32x128xf32> -> vector<32x128xf32>
    %17 = arith.addf %13, %16 : vector<32x128xf32>
    %c0_20 = arith.constant 0 : index
    %c0_21 = arith.constant 0 : index
    %18 = vector.load %arg5[%c0_20, %c0_21] : memref<32x128xf32, #tpu.memory_space<vmem>>, vector<32x128xf32>
    tpu.vector_store %arg5[%c0_20, %c0_21], %17 {strides = array<i32>} : memref<32x128xf32, #tpu.memory_space<vmem>>, vector<32x128xf32>,
    %c0_22 = arith.constant 0 : index
    %c1_23 = arith.constant 1 : index
    %c0_24 = arith.constant 0 : index
    %c0_25 = arith.constant 0 : index
    %19 = vector.load %arg2[%c0_22, %c1_23, %c0_24, %c0_25] : memref<2x5x5x512xbf16, #tpu.memory_space<vmem>>, vector<2x4x4x512xbf16>
    %20 = vector.shape_cast %19 : vector<2x4x4x512xbf16> to vector<32x512xbf16>
    %c0_26 = arith.constant 0 : index
    %c0_27 = arith.constant 0 : index
    %21 = vector.load %arg5[%c0_26, %c0_27] : memref<32x128xf32, #tpu.memory_space<vmem>>, vector<32x128xf32>
    %c2 = arith.constant 2 : index
    %c0_28 = arith.constant 0 : index
    %c0_29 = arith.constant 0 : index
    %22 = vector.load %arg3[%c2, %c0_28, %c0_29] : memref<4x512x128xbf16, #tpu.memory_space<vmem>>, vector<1x512x128xbf16>
    %23 = vector.shape_cast %22 : vector<1x512x128xbf16> to vector<512x128xbf16>
    %cst_30 = arith.constant dense<0.000000e+00> : vector<32x128xf32>
    %24 = tpu.matmul %20, %23, %cst_30 {dimension_numbers = #tpu.dot_dimension_numbers<[1], [0], [0], [1], [0, 0, 1, 1], [], []>} : vector<32x512xbf16>, vector<512x128xbf16>, vector<32x128xf32> -> vector<32x128xf32>
    %25 = arith.addf %21, %24 : vector<32x128xf32>
    %c0_31 = arith.constant 0 : index
    %c0_32 = arith.constant 0 : index
    %26 = vector.load %arg5[%c0_31, %c0_32] : memref<32x128xf32, #tpu.memory_space<vmem>>, vector<32x128xf32>
    tpu.vector_store %arg5[%c0_31, %c0_32], %25 {strides = array<i32>} : memref<32x128xf32, #tpu.memory_space<vmem>>, vector<32x128xf32>,
    %c0_33 = arith.constant 0 : index
    %c1_34 = arith.constant 1 : index
    %c1_35 = arith.constant 1 : index
    %c0_36 = arith.constant 0 : index
    %27 = vector.load %arg2[%c0_33, %c1_34, %c1_35, %c0_36] : memref<2x5x5x512xbf16, #tpu.memory_space<vmem>>, vector<2x4x4x512xbf16>
    %28 = vector.shape_cast %27 : vector<2x4x4x512xbf16> to vector<32x512xbf16>
    %c0_37 = arith.constant 0 : index
    %c0_38 = arith.constant 0 : index
    %29 = vector.load %arg5[%c0_37, %c0_38] : memref<32x128xf32, #tpu.memory_space<vmem>>, vector<32x128xf32>
    %c3 = arith.constant 3 : index
    %c0_39 = arith.constant 0 : index
    %c0_40 = arith.constant 0 : index
    %30 = vector.load %arg3[%c3, %c0_39, %c0_40] : memref<4x512x128xbf16, #tpu.memory_space<vmem>>, vector<1x512x128xbf16>
    %31 = vector.shape_cast %30 : vector<1x512x128xbf16> to vector<512x128xbf16>
    %cst_41 = arith.constant dense<0.000000e+00> : vector<32x128xf32>
    %32 = tpu.matmul %28, %31, %cst_41 {dimension_numbers = #tpu.dot_dimension_numbers<[1], [0], [0], [1], [0, 0, 1, 1], [], []>} : vector<32x512xbf16>, vector<512x128xbf16>, vector<32x128xf32> -> vector<32x128xf32>
    %33 = arith.addf %29, %32 : vector<32x128xf32>
    %c0_42 = arith.constant 0 : index
    %c0_43 = arith.constant 0 : index
    %34 = vector.load %arg5[%c0_42, %c0_43] : memref<32x128xf32, #tpu.memory_space<vmem>>, vector<32x128xf32>
    tpu.vector_store %arg5[%c0_42, %c0_43], %33 {strides = array<i32>} : memref<32x128xf32, #tpu.memory_space<vmem>>, vector<32x128xf32>,
    %c0_i32_44 = arith.constant 0 : i32
    %35 = arith.cmpi eq, %arg1, %c0_i32_44 : i32
    %36 = arith.extui %35 : i1 to i32
    %c0_i32_45 = arith.constant 0 : i32
    %37 = arith.cmpi ne, %36, %c0_i32_45 : i32
    scf.if %37 {
      %c0_46 = arith.constant 0 : index
      %c0_47 = arith.constant 0 : index
      %38 = vector.load %arg5[%c0_46, %c0_47] : memref<32x128xf32, #tpu.memory_space<vmem>>, vector<32x128xf32>
      %cst_48 = arith.constant 2.000000e-01 : f32
      %39 = vector.broadcast %cst_48 : f32 to vector<32x128xf32>
      %40 = arith.mulf %39, %38 : vector<32x128xf32>
      %41 = arith.maximumf %38, %40 : vector<32x128xf32>
      %42 = arith.truncf %41 : vector<32x128xf32> to vector<32x128xbf16>
      %c0_49 = arith.constant 0 : index
      %c0_50 = arith.constant 0 : index
      %43 = vector.load %arg4[%c0_49, %c0_50] : memref<32x128xbf16, #tpu.memory_space<vmem>>, vector<32x128xbf16>
      tpu.vector_store %arg4[%c0_49, %c0_50], %42 {strides = array<i32>} : memref<32x128xbf16, #tpu.memory_space<vmem>>, vector<32x128xbf16>,
    } else {
    }
    return
  }
  func.func @transform_0(%arg0: i32, %arg1: i32) -> (i32, i32, i32, i32) {
    %c0_i32 = arith.constant 0 : i32
    %c0_i32_0 = arith.constant 0 : i32
    %c0_i32_1 = arith.constant 0 : i32
    return %arg0, %c0_i32, %c0_i32_0, %arg1 : i32, i32, i32, i32
  }
  func.func @transform_1(%arg0: i32, %arg1: i32) -> (i32, i32, i32) {
    %c0_i32 = arith.constant 0 : i32
    %c0_i32_0 = arith.constant 0 : i32
    %c0_i32_1 = arith.constant 0 : i32
    return %c0_i32, %arg1, %c0_i32_0 : i32, i32, i32
  }
  func.func @transform_2(%arg0: i32, %arg1: i32) -> (i32, i32) {
    %c0_i32 = arith.constant 0 : i32
    %c0_i32_0 = arith.constant 0 : i32
    return %arg0, %c0_i32 : i32, i32
  }
}

module attributes {stable_mosaic.version = 11 : i64} {
  func.func @_head_kernel(%arg0: i32, %arg1: memref<2x2048xbf16, #tpu.memory_space<vmem>>, %arg2: memref<2048x384xbf16, #tpu.memory_space<vmem>>, %arg3: memref<2x128xf32, #tpu.memory_space<vmem>>, %arg4: memref<2x128xf32, #tpu.memory_space<vmem>>, %arg5: memref<2x128xf32, #tpu.memory_space<vmem>>, %arg6: memref<2x384xf32, #tpu.memory_space<vmem>>) attributes {dimension_semantics = [#tpu.dimension_semantics<arbitrary>], iteration_bounds = array<i64: 1>, scalar_prefetch = 0 : i64, scratch_operands = 1 : i64, tpu.core_type = #tpu.core_type<tc>, window_params = [{transform_indices = @transform_0, window_bounds = array<i64: 2, 2048>}, {transform_indices = @transform_1, window_bounds = array<i64: 2048, 384>}, {pipeline_mode = #tpu.pipeline_mode<synchronous>, transform_indices = @transform_2, window_bounds = array<i64: 2, 128>}, {pipeline_mode = #tpu.pipeline_mode<synchronous>, transform_indices = @transform_3, window_bounds = array<i64: 2, 128>}, {pipeline_mode = #tpu.pipeline_mode<synchronous>, transform_indices = @transform_4, window_bounds = array<i64: 2, 128>}]} {
    %c0_i32 = arith.constant 0 : i32
    %0 = arith.cmpi eq, %arg0, %c0_i32 : i32
    %1 = arith.extui %0 : i1 to i32
    %c0_i32_0 = arith.constant 0 : i32
    %2 = arith.cmpi ne, %1, %c0_i32_0 : i32
    scf.if %2 {
      %cst_10 = arith.constant 0.000000e+00 : f32
      %12 = vector.broadcast %cst_10 : f32 to vector<2x384xf32>
      %c0_11 = arith.constant 0 : index
      %c0_12 = arith.constant 0 : index
      %13 = vector.load %arg6[%c0_11, %c0_12] : memref<2x384xf32, #tpu.memory_space<vmem>>, vector<2x384xf32>
      tpu.vector_store %arg6[%c0_11, %c0_12], %12 {strides = array<i32>} : memref<2x384xf32, #tpu.memory_space<vmem>>, vector<2x384xf32>,
    } else {
    }
    %c0 = arith.constant 0 : index
    %c0_1 = arith.constant 0 : index
    %3 = vector.load %arg6[%c0, %c0_1] : memref<2x384xf32, #tpu.memory_space<vmem>>, vector<2x384xf32>
    %c0_2 = arith.constant 0 : index
    %c0_3 = arith.constant 0 : index
    %4 = vector.load %arg1[%c0_2, %c0_3] : memref<2x2048xbf16, #tpu.memory_space<vmem>>, vector<2x2048xbf16>
    %c0_4 = arith.constant 0 : index
    %c0_5 = arith.constant 0 : index
    %5 = vector.load %arg2[%c0_4, %c0_5] : memref<2048x384xbf16, #tpu.memory_space<vmem>>, vector<2048x384xbf16>
    %cst = arith.constant dense<0.000000e+00> : vector<2x384xf32>
    %6 = tpu.matmul %4, %5, %cst {dimension_numbers = #tpu.dot_dimension_numbers<[1], [0], [0], [1], [0, 0, 1, 1], [], []>} : vector<2x2048xbf16>, vector<2048x384xbf16>, vector<2x384xf32> -> vector<2x384xf32>
    %7 = arith.addf %3, %6 : vector<2x384xf32>
    %c0_6 = arith.constant 0 : index
    %c0_7 = arith.constant 0 : index
    %8 = vector.load %arg6[%c0_6, %c0_7] : memref<2x384xf32, #tpu.memory_space<vmem>>, vector<2x384xf32>
    tpu.vector_store %arg6[%c0_6, %c0_7], %7 {strides = array<i32>} : memref<2x384xf32, #tpu.memory_space<vmem>>, vector<2x384xf32>,
    %c0_i32_8 = arith.constant 0 : i32
    %9 = arith.cmpi eq, %arg0, %c0_i32_8 : i32
    %10 = arith.extui %9 : i1 to i32
    %c0_i32_9 = arith.constant 0 : i32
    %11 = arith.cmpi ne, %10, %c0_i32_9 : i32
    scf.if %11 {
      %c0_10 = arith.constant 0 : index
      %c0_11 = arith.constant 0 : index
      %12 = vector.load %arg6[%c0_10, %c0_11] : memref<2x384xf32, #tpu.memory_space<vmem>>, vector<2x384xf32>
      %13 = vector.extract_strided_slice %12 {offsets = [0, 0], sizes = [2, 128], strides = [1, 1]} : vector<2x384xf32> to vector<2x128xf32>
      %14 = vector.extract_strided_slice %12 {offsets = [0, 128], sizes = [2, 128], strides = [1, 1]} : vector<2x384xf32> to vector<2x128xf32>
      %15 = vector.extract_strided_slice %12 {offsets = [0, 256], sizes = [2, 128], strides = [1, 1]} : vector<2x384xf32> to vector<2x128xf32>
      %c0_12 = arith.constant 0 : index
      %c0_13 = arith.constant 0 : index
      %16 = vector.load %arg4[%c0_12, %c0_13] : memref<2x128xf32, #tpu.memory_space<vmem>>, vector<2x128xf32>
      tpu.vector_store %arg4[%c0_12, %c0_13], %13 {strides = array<i32>} : memref<2x128xf32, #tpu.memory_space<vmem>>, vector<2x128xf32>,
      %c0_14 = arith.constant 0 : index
      %c0_15 = arith.constant 0 : index
      %17 = vector.load %arg3[%c0_14, %c0_15] : memref<2x128xf32, #tpu.memory_space<vmem>>, vector<2x128xf32>
      %cst_16 = arith.constant 5.000000e-01 : f32
      %18 = vector.broadcast %cst_16 : f32 to vector<2x128xf32>
      %19 = arith.mulf %18, %15 : vector<2x128xf32>
      %20 = math.exp %19 : vector<2x128xf32>
      %21 = arith.mulf %17, %20 : vector<2x128xf32>
      %22 = arith.addf %21, %14 : vector<2x128xf32>
      %c0_17 = arith.constant 0 : index
      %c0_18 = arith.constant 0 : index
      %23 = vector.load %arg5[%c0_17, %c0_18] : memref<2x128xf32, #tpu.memory_space<vmem>>, vector<2x128xf32>
      tpu.vector_store %arg5[%c0_17, %c0_18], %22 {strides = array<i32>} : memref<2x128xf32, #tpu.memory_space<vmem>>, vector<2x128xf32>,
    } else {
    }
    return
  }
  func.func @transform_0(%arg0: i32) -> (i32, i32) {
    %c0_i32 = arith.constant 0 : i32
    %c0_i32_0 = arith.constant 0 : i32
    return %c0_i32, %arg0 : i32, i32
  }
  func.func @transform_1(%arg0: i32) -> (i32, i32) {
    %c0_i32 = arith.constant 0 : i32
    %c0_i32_0 = arith.constant 0 : i32
    return %arg0, %c0_i32 : i32, i32
  }
  func.func @transform_2(%arg0: i32) -> (i32, i32) {
    %c0_i32 = arith.constant 0 : i32
    %c0_i32_0 = arith.constant 0 : i32
    %c0_i32_1 = arith.constant 0 : i32
    return %c0_i32, %c0_i32_0 : i32, i32
  }
  func.func @transform_3(%arg0: i32) -> (i32, i32) {
    %c0_i32 = arith.constant 0 : i32
    %c0_i32_0 = arith.constant 0 : i32
    %c0_i32_1 = arith.constant 0 : i32
    return %c0_i32, %c0_i32_0 : i32, i32
  }
  func.func @transform_4(%arg0: i32) -> (i32, i32) {
    %c0_i32 = arith.constant 0 : i32
    %c0_i32_0 = arith.constant 0 : i32
    %c0_i32_1 = arith.constant 0 : i32
    return %c0_i32, %c0_i32_0 : i32, i32
  }
}

</mosaic_0001>

<bundles_post_ra>
// kernel: _lambda_.3
= control target key start
LH: loop header
LB: loop body
LE: loop exit
PB: predicated region body
PF: predicated region fallthrough
CT: control target
= control target key end

     0   :  { %7 = vsyncpa [#allocation4], 0  ;;  %s2020_s9 = smov [#allocation3]   ;;  %s2416_s0 = inlined_call_operand.vmem [shape: bf16[2,9,9,32], index: 0, kind: input, shape index: {}]   ;;  %s2417_s1 = inlined_call_operand.hbm [shape: bf16[4,32,128], index: 1, kind: input, shape index: {}]   ;;  %s2418_s2 = inlined_call_operand.vmem [shape: bf16[128,128], index: 2, kind: output, shape index: {}]  }
   0x1   :  { %s15_s10 = sshll.u32 %s2020_s9, 4  ;;  %s1996_s13 = scalar_lea.hbm %s2417_s1, 1024  ;;  %s16_s10 = int_to_ptr.vmem [resolvable:$true] %s15_s10 }
   0x2   :  { %p1997_p0 = scmp.ne.s32.totalorder %s2417_s1, %s1996_s13  ;;  %p2000_p1 = scmp.lt.u32.totalorder %s1996_s13, %s2417_s1 }
   0x4   :  { %p2002_p2 = pnand %p2000_p1, %p1997_p0 }
   0x6   :  { %2005 = shalt.err (!%p2002_p2)
}
   0x7   :  { %s2006_s18 = scalar_lea.vmem %s16_s10, 1024  ;;  %p2011_p4 = scmp.lt.s32.totalorder %s16_s10, %s16_s10 }
   0x8   :  { %p2007_p3 = scmp.ne.s32.totalorder %s16_s10, %s2006_s18  ;;  %p2012_p5 = scmp.lt.s32.totalorder %s2006_s18, %s2006_s18 }
   0xa   :  { %p2013_p6 = por %p2012_p5, %p2011_p4 }
   0xc   :  { %p2014_p7 = pnand %p2013_p6, %p2007_p3 }
   0xe   :  { %2017 = shalt.err (!%p2014_p7)
}
   0xf   :  { %s2021_s19 = smov 64   ;;  %s2022_s20 = smov 4  }
  0x10   :  { %21 = dma.hbm_to_vmem [thread:$0]  %s2417_s1, 1024, %s16_s10, [#allocation4], %s2021_s19, %s2021_s19, %s2022_s20  }
  0x11   :  { %2018 = dma.done.wait [#allocation4], 1024  }
  0x12   :  { %2019 = vsyncadd [#allocation4], 4294966272  ;;  %v1972_v0 = vld [vmem:[#allocation3] sm:$0xff]   ;;  %v1974_v2 = vld [vmem:[#allocation3 + $0x8] sm:$0xff]   ;;  %vm134_vm0 = vcmask 261120  }
  0x13   :  { %v1973_v1 = vld [vmem:[#allocation3 + $0x20] sm:$0xff]   ;;  %1841 = vmatprep.subr.bf16.mxu1 %v1972_v0  ;;  %v1975_v3 = vld [vmem:[#allocation3 + $0x28] sm:$0xff]   ;;  %v1978_v6 = vld [vmem:[%s2416_s0 + $0x10] ss:$8 sps:$4 sm:$0xff]   ;;  %vm320_vm1 = vsmask.f32 3328 }
  0x14   :  { %1881 = vmatprep.subr.bf16.mxu0 %v1973_v1  ;;  %1842 = vmatpush3.bf16.msra.mxu1 %v1972_v0  ;;  %v1976_v4 = vld [vmem:[%s2416_s0] ss:$8 sps:$4 sm:$0xff]   ;;  %v1979_v7 = vld [vmem:[#allocation3 + $0x10] sm:$0xff]   ;;  %v1989_v16 = vld [vmem:[#allocation3 + $0x18] sm:$0xff]   ;;  %vm321_vm2 = vsmask.f32 7440 }
  0x15   :  { %1882 = vmatpush3.bf16.msra.mxu0 %v1973_v1  ;;  %1843 = vmatprep.subr.bf16.mxu1 %v1974_v2  ;;  %v1977_v5 = vld [vmem:[%s2416_s0 + $0x8] ss:$8 sps:$4 sm:$0xff]   ;;  %v1980_v8 = vld [vmem:[%s2416_s0 + $0x18] ss:$8 sps:$4 sm:$0xff]   ;;  %v289_v23 = vld [vmem:[%s2416_s0 + $0x4] sm:$0x1] }
  0x16   :  { %1883 = vmatprep.subr.bf16.mxu0 %v1975_v3  ;;  %1845 = vmatprep.mubr.msk.bf16.mxu1 %vm134_vm0, %v1976_v4  ;;  %v1981_v9 = vld [vmem:[#allocation3 + $0x30] sm:$0xff]   ;;  %v1982_v10 = vld [vmem:[%s2416_s0 + $0x20] ss:$8 sps:$4 sm:$0xff]   ;;  %v1991_v17 = vld [vmem:[#allocation3 + $0x38] sm:$0xff]   ;;  %v333_v28 = vshll.u32 %v289_v23, 16 }
  0x17   :  { %1885 = vmatprep.mubr.msk.bf16.mxu0 %vm134_vm0, %v1977_v5  ;;  %v1983_v11 = vld [vmem:[%s2416_s0 + $0x28] ss:$8 sps:$4 sm:$0xff]   ;;  %v1985_v13 = vld [vmem:[%s2416_s0 + $0x38] ss:$8 sps:$4 sm:$0xff]   ;;  %v291_v25 = vld [vmem:[%s2416_s0 + $0xc] sm:$0x1] }
  0x18   :  { %1844 = vmatpush3.bf16.msra.mxu1 %v1974_v2  ;;  %v1984_v12 = vld [vmem:[%s2416_s0 + $0x30] ss:$8 sps:$4 sm:$0xff]   ;;  %v1990_v19 = vld [vmem:[%s2416_s0 + $0x60] ss:$8 sps:$4 sm:$0xff]   ;;  %v347_v31 = vshll.u32 %v291_v25, 16  ;;  %v335_v36 = vrot.slane %v333_v28, 5  ;;  %vm2141_vm3 = vmor %vm320_vm1, %vm321_vm2 }
  0x19   :  { %1884 = vmatpush3.bf16.msra.mxu0 %v1975_v3  ;;  %1861 = vmatprep.subr.bf16.mxu1 %v1979_v7  ;;  %v1986_v14 = vld [vmem:[%s2416_s0 + $0x48] ss:$8 sps:$4 sm:$0xff]   ;;  %v1988_v18 = vld [vmem:[%s2416_s0 + $0x58] ss:$8 sps:$4 sm:$0xff]   ;;  %v1673_v33 = vld [vmem:[%s2416_s0 + $0xc] sm:$0x1] }
  0x1a   :  { %1901 = vmatprep.subr.bf16.mxu0 %v1981_v9  ;;  %v1987_v15 = vld [vmem:[%s2416_s0 + $0x50] ss:$8 sps:$4 sm:$0xff]   ;;  %v288_v22 = vld [vmem:[%s2416_s0] sm:$0xf]  ;;  %v290_v24 = vld [vmem:[%s2416_s0 + $0x8] sm:$0xf] }
  0x1b   :  { %1846 = vmatmul.mubr.msk.bf16.vlgmr.msra.gmra.mrb[0].mxu1 %vm134_vm0, %v1978_v6  ;;  %v1992_v20 = vld [vmem:[%s2416_s0 + $0x68] ss:$8 sps:$4 sm:$0xff]   ;;  %v324_v26 = vshrl.u32 %v288_v22, 16  ;;  %v327_v27 = vshll.u32 %v288_v22, 16  ;;  %v338_v29 = vshrl.u32 %v290_v24, 16  ;;  %v341_v30 = vshll.u32 %v290_v24, 16 }
  0x1c   :  { %1886 = vmatmul.mubr.msk.bf16.vlgmr.msra.gmra.mrb[0].mxu0 %vm134_vm0, %v1980_v8  ;;  %1862 = vmatpush3.bf16.msra.mxu1 %v1979_v7  ;;  %v1993_v21 = vld [vmem:[%s2416_s0 + $0x70] ss:$8 sps:$4 sm:$0xff]   ;;  %v1672_v32 = vld [vmem:[%s2416_s0 + $0x8] sm:$0xf]  ;;  %v349_v41 = vrot.slane %v347_v31, 5  ;;  %v1042_v47 = vshll.u32 %v1673_v33, 16 }
  0x1d   :  { %1902 = vmatpush3.bf16.msra.mxu0 %v1981_v9  ;;  %1849 = vmatprep.mubr.msk.bf16.mxu1 %vm134_vm0, %v1982_v10  ;;  %v326_v34 = vrot.slane %v324_v26, 4  ;;  %v329_v35 = vrot.slane %v327_v27, 5  ;;  %v340_v37 = vrot.slane %v338_v29, 4  ;;  %v1674_v38 = vld [vmem:[%s2416_s0 + $0x10] sm:$0xf]  ;;  %v343_v40 = vrot.slane %v341_v30, 5 }
  0x1e   :  { %1889 = vmatprep.mubr.msk.bf16.mxu0 %vm134_vm0, %v1983_v11  ;;  %1863 = vmatprep.subr.bf16.mxu1 %v1989_v16  ;;  %v1994_v39 = vld [vmem:[%s2416_s0 + $0x78] ss:$8 sps:$4 sm:$0xff]   ;;  %v1675_v42 = vld [vmem:[%s2416_s0 + $0x14] sm:$0x1]  ;;  %v1033_v43 = vshrl.u32 %v1672_v32, 16  ;;  %v1036_v44 = vshll.u32 %v1672_v32, 16 }
  0x1f   :  { %1903 = vmatprep.subr.bf16.mxu0 %v1991_v17  ;;  %v1995_v45 = vld [vmem:[%s2416_s0 + $0x80] ss:$8 sps:$4 sm:$0xff]   ;;  %v330_v46 = vor.u32 %v329_v35, %v326_v34  ;;  %v1047_v48 = vshrl.u32 %v1674_v38, 16  ;;  %v1050_v49 = vshll.u32 %v1674_v38, 16  ;;  %v292_v50 = vld [vmem:[%s2416_s0 + $0x10] sm:$0xf]  ;;  %v344_v52 = vor.u32 %v343_v40, %v340_v37 }
  0x20   :  { %1864 = vmatpush3.bf16.msra.mxu1 %v1989_v16  ;;  %v1035_v53 = vrot.slane %v1033_v43, 4  ;;  %v1038_v54 = vrot.slane %v1036_v44, 5  ;;  %v1056_v55 = vshll.u32 %v1675_v42, 16  ;;  %v293_v56 = vld [vmem:[%s2416_s0 + $0x14] sm:$0x1]  ;;  %v1044_v58 = vrot.slane %v1042_v47, 5 }
  0x21   :  { %1904 = vmatpush3.bf16.msra.mxu0 %v1991_v17  ;;  %v331_v57 = vrot.slane %v330_v46, 4  ;;  %v1049_v59 = vrot.slane %v1047_v48, 4  ;;  %v1052_v60 = vrot.slane %v1050_v49, 5  ;;  %v294_v61 = vld [vmem:[%s2416_s0 + $0x18] sm:$0xf]  ;;  %v345_v62 = vrot.slane %v344_v52, 4 }
  0x22   :  { %v1039_v63 = vor.u32 %v1038_v54, %v1035_v53  ;;  %v1058_v0 = vrot.slane %v1056_v55, 5  ;;  %v352_v1 = vshrl.u32 %v292_v50, 16  ;;  %v295_v4 = vld [vmem:[%s2416_s0 + $0x1c] sm:$0x1]  ;;  %v355_v5 = vshll.u32 %v292_v50, 16 }
  0x23   :  { %1850 = vmatmul.mubr.msk.bf16.gmra.mrb[4].mxu1 %vm134_vm0, %v1984_v12  ;;  %v336_v2 = vsel %vm2141_vm3, %v331_v57, %v335_v36  ;;  %v1053_v3 = vor.u32 %v1052_v60, %v1049_v59  ;;  %v361_v6 = vshll.u32 %v293_v56, 16  ;;  %v350_v7 = vsel %vm2141_vm3, %v345_v62, %v349_v41  ;;  %v1676_v11 = vld [vmem:[%s2416_s0 + $0x18] sm:$0xf]  ;;  %v1677_v16 = vld [vmem:[%s2416_s0 + $0x1c] sm:$0x1] }
  0x24   :  { %1890 = vmatmul.mubr.msk.bf16.gmra.mrb[4].mxu0 %vm134_vm0, %v1985_v13  ;;  %1853 = vmatprep.mubr.msk.bf16.mxu1 %vm134_vm0, %v1986_v14  ;;  %v1040_v8 = vrot.slane %v1039_v63, 4  ;;  %v354_v9 = vrot.slane %v352_v1, 4  ;;  %v366_v10 = vshrl.u32 %v294_v61, 16  ;;  %v1620_v12 = vcombine.low %v336_v2, %v350_v7  ;;  %v1679_v24 = vld [vmem:[%s2416_s0 + $0x24] sm:$0x1] }
  0x25   :  { %1893 = vmatprep.mubr.msk.bf16.mxu0 %vm134_vm0, %v1987_v15  ;;  %v1054_v13 = vrot.slane %v1053_v3, 4  ;;  %v357_v14 = vrot.slane %v355_v5, 5  ;;  %v363_v15 = vrot.slane %v361_v6, 5  ;;  %v1061_v25 = vshrl.u32 %v1676_v11, 16  ;;  %v296_v31 = vld [vmem:[%s2416_s0 + $0x20] sm:$0xf] }
  0x26   :  { %v1045_v17 = vsel %vm2141_vm3, %v1040_v8, %v1044_v58  ;;  %v1064_v26 = vshll.u32 %v1676_v11, 16  ;;  %v1070_v30 = vshll.u32 %v1677_v16, 16  ;;  %v297_v36 = vld [vmem:[%s2416_s0 + $0x24] sm:$0x1]  ;;  %v1084_v40 = vshll.u32 %v1679_v24, 16 }
  0x27   :  { %v1059_v22 = vsel %vm2141_vm3, %v1054_v13, %v1058_v0  ;;  %v358_v23 = vor.u32 %v357_v14, %v354_v9  ;;  %v1063_v33 = vrot.slane %v1061_v25, 4  ;;  %v298_v41 = vld [vmem:[%s2416_s0 + $0x28] sm:$0xf]  ;;  %v299_v49 = vld [vmem:[%s2416_s0 + $0x2c] sm:$0x1]  ;;  %v383_v50 = vshll.u32 %v296_v31, 16 }
  0x28   :  { %v1704_v27 = vcombine.low %v1045_v17, %v1059_v22  ;;  %v1066_v34 = vrot.slane %v1064_v26, 5  ;;  %v1072_v38 = vrot.slane %v1070_v30, 5  ;;  %v1086_v48 = vrot.slane %v1084_v40, 5  ;;  %v1680_v56 = vld [vmem:[%s2416_s0 + $0x28] sm:$0xf] }
  0x29   :  { %v359_v32 = vrot.slane %v358_v23, 4  ;;  %v389_v54 = vshll.u32 %v297_v36, 16  ;;  %v394_v55 = vshrl.u32 %v298_v41, 16  ;;  %v385_v59 = vrot.slane %v383_v50, 5  ;;  %v1682_v62 = vld [vmem:[%s2416_s0 + $0x30] sm:$0xf] }
  0x2a   :  { %v1067_v43 = vor.u32 %v1066_v34, %v1063_v33  ;;  %v397_v60 = vshll.u32 %v298_v41, 16  ;;  %v403_v6 = vshll.u32 %v299_v49, 16  ;;  %v1683_v7 = vld [vmem:[%s2416_s0 + $0x34] sm:$0x1]  ;;  %v1089_v8 = vshrl.u32 %v1680_v56, 16 }
  0x2b   :  { %1854 = vmatmul.mubr.msk.bf16.gmra.mrb[8].mxu1 %vm134_vm0, %v1988_v18  ;;  %v368_v18 = vrot.slane %v366_v10, 4  ;;  %v364_v42 = vsel %vm2141_vm3, %v359_v32, %v363_v15  ;;  %v391_v1 = vrot.slane %v389_v54, 5  ;;  %v396_v2 = vrot.slane %v394_v55, 4  ;;  %v300_v16 = vld [vmem:[%s2416_s0 + $0x30] sm:$0xf] }
  0x2c   :  { %1894 = vmatmul.mubr.msk.bf16.gmra.mrb[8].mxu0 %vm134_vm0, %v1990_v19  ;;  %1857 = vmatprep.mubr.msk.bf16.mxu1 %vm134_vm0, %v1992_v20  ;;  %v369_v19 = vshll.u32 %v294_v61, 16  ;;  %v375_v20 = vshll.u32 %v295_v4, 16  ;;  %v1068_v52 = vrot.slane %v1067_v43, 4  ;;  %v1681_v61 = vld [vmem:[%s2416_s0 + $0x2c] sm:$0x1]  ;;  %v399_v5 = vrot.slane %v397_v60, 5 }
  0x2d   :  { %1897 = vmatprep.mubr.msk.bf16.mxu0 %vm134_vm0, %v1993_v21  ;;  %v1678_v21 = vld [vmem:[%s2416_s0 + $0x20] sm:$0xf]  ;;  %v1092_v9 = vshll.u32 %v1680_v56, 16  ;;  %v1098_v10 = vshll.u32 %v1681_v61, 16  ;;  %v1103_v11 = vshrl.u32 %v1682_v62, 16  ;;  %v405_v15 = vrot.slane %v403_v6, 5 }
  0x2e   :  { %v371_v28 = vrot.slane %v369_v19, 5  ;;  %v377_v29 = vrot.slane %v375_v20, 5  ;;  %v1075_v35 = vshrl.u32 %v1678_v21, 16  ;;  %v1073_v0 = vsel %vm2141_vm3, %v1068_v52, %v1072_v38  ;;  %v301_v17 = vld [vmem:[%s2416_s0 + $0x34] sm:$0x1] }
  0x2f   :  { %v400_v14 = vor.u32 %v399_v5, %v396_v2  ;;  %v1091_v19 = vrot.slane %v1089_v8, 4  ;;  %v1094_v20 = vrot.slane %v1092_v9, 5  ;;  %v302_v22 = vld [vmem:[%s2416_s0 + $0x38] sm:$0xf]  ;;  %v1105_v25 = vrot.slane %v1103_v11, 4 }
  0x30   :  { %v372_v37 = vor.u32 %v371_v28, %v368_v18  ;;  %v1077_v44 = vrot.slane %v1075_v35, 4  ;;  %v1106_v26 = vshll.u32 %v1682_v62, 16  ;;  %v1112_v28 = vshll.u32 %v1683_v7, 16  ;;  %v1684_v36 = vld [vmem:[%s2416_s0 + $0x38] sm:$0xf] }
  0x31   :  { %v401_v24 = vrot.slane %v400_v14, 4  ;;  %v408_v30 = vshrl.u32 %v300_v16, 16  ;;  %v417_v34 = vshll.u32 %v301_v17, 16  ;;  %v422_v35 = vshrl.u32 %v302_v22, 16  ;;  %v1685_v41 = vld [vmem:[%s2416_s0 + $0x3c] sm:$0x1] }
  0x32   :  { %v373_v46 = vrot.slane %v372_v37, 4  ;;  %v1108_v33 = vrot.slane %v1106_v26, 5  ;;  %v1117_v50 = vshrl.u32 %v1684_v36, 16  ;;  %v1687_v54 = vld [vmem:[%s2416_s0 + $0x44] sm:$0x1]  ;;  %v1120_v55 = vshll.u32 %v1684_v36, 16 }
  0x33   :  { %1858 = vmatmul.mubr.msk.bf16.gmra.mrb[12].mxu1 %vm134_vm0, %v1994_v39  ;;  %v1078_v39 = vshll.u32 %v1678_v21, 16  ;;  %v1100_v21 = vrot.slane %v1098_v10, 5  ;;  %v406_v32 = vsel %vm2141_vm3, %v401_v24, %v405_v15  ;;  %v410_v40 = vrot.slane %v408_v30, 4  ;;  %v304_v61 = vld [vmem:[%s2416_s0 + $0x48] sm:$0xf] }
  0x34   :  { %1898 = vmatmul.mubr.msk.bf16.gmra.mrb[12].mxu0 %vm134_vm0, %v1995_v45  ;;  %1865 = vmatprep.mubr.msk.bf16.mxu1 %vm134_vm0, %v1620_v12  ;;  %v380_v45 = vshrl.u32 %v296_v31, 16  ;;  %v378_v57 = vsel %vm2141_vm3, %v373_v46, %v377_v29  ;;  %v303_v29 = vld [vmem:[%s2416_s0 + $0x3c] sm:$0x1]  ;;  %v411_v31 = vshll.u32 %v300_v16, 16  ;;  %v1686_v46 = vld [vmem:[%s2416_s0 + $0x40] sm:$0xf] }
  0x35   :  { %1905 = vmatprep.mubr.msk.bf16.mxu0 %vm134_vm0, %v1704_v27  ;;  %v1080_v47 = vrot.slane %v1078_v39, 5  ;;  %v1621_v63 = vcombine.low %v364_v42, %v378_v57  ;;  %v1095_v27 = vor.u32 %v1094_v20, %v1091_v19  ;;  %v1114_v39 = vrot.slane %v1112_v28, 5  ;;  %v305_v2 = vld [vmem:[%s2416_s0 + $0x4c] sm:$0x1]  ;;  %v306_v7 = vld [vmem:[%s2416_s0 + $0x50] sm:$0xf] }
  0x36   :  { %v382_v53 = vrot.slane %v380_v45, 4  ;;  %v1109_v42 = vor.u32 %v1108_v33, %v1105_v25  ;;  %v413_v43 = vrot.slane %v411_v31, 5  ;;  %v424_v45 = vrot.slane %v422_v35, 4  ;;  %v307_v14 = vld [vmem:[%s2416_s0 + $0x54] sm:$0x1] }
  0x37   :  { %v1081_v58 = vor.u32 %v1080_v47, %v1077_v44  ;;  %v1096_v38 = vrot.slane %v1095_v27, 4  ;;  %v419_v44 = vrot.slane %v417_v34, 5  ;;  %v431_v49 = vshll.u32 %v303_v29, 16  ;;  %v1690_v26 = vld [vmem:[%s2416_s0 + $0x58] sm:$0xf] }
  0x38   :  { %v386_v4 = vor.u32 %v385_v59, %v382_v53  ;;  %v1110_v52 = vrot.slane %v1109_v42, 4  ;;  %v414_v53 = vor.u32 %v413_v43, %v410_v40  ;;  %v1126_v56 = vshll.u32 %v1685_v41, 16  ;;  %v1689_v31 = vld [vmem:[%s2416_s0 + $0x54] sm:$0x1] }
  0x39   :  { %v1082_v3 = vrot.slane %v1081_v58, 4  ;;  %v1101_v47 = vsel %vm2141_vm3, %v1096_v38, %v1100_v21  ;;  %v433_v58 = vrot.slane %v431_v49, 5  ;;  %v1119_v59 = vrot.slane %v1117_v50, 4  ;;  %v1688_v21 = vld [vmem:[%s2416_s0 + $0x50] sm:$0xf] }
  0x3a   :  { %v387_v13 = vrot.slane %v386_v4, 4  ;;  %v1131_v60 = vshrl.u32 %v1686_v46, 16  ;;  %v1115_v62 = vsel %vm2141_vm3, %v1110_v52, %v1114_v39  ;;  %v1134_v6 = vshll.u32 %v1686_v46, 16  ;;  %v309_v49 = vld [vmem:[%s2416_s0 + $0x5c] sm:$0x1] }
  0x3b   :  { %1866 = vmatmul.mubr.msk.bf16.vlgmr.msra.gmra.mrb[0].mxu1 %vm134_vm0, %v1621_v63  ;;  %v1087_v12 = vsel %vm2141_vm3, %v1082_v3, %v1086_v48  ;;  %v425_v48 = vshll.u32 %v302_v22, 16  ;;  %v415_v63 = vrot.slane %v414_v53, 4  ;;  %v1706_v3 = vcombine.low %v1101_v47, %v1115_v62  ;;  %v310_v50 = vld [vmem:[%s2416_s0 + $0x60] sm:$0xf]  ;;  %v311_v62 = vld [vmem:[%s2416_s0 + $0x64] sm:$0x1] }
  0x3c   :  { %v1705_v18 = vcombine.low %v1073_v0, %v1087_v12  ;;  %v392_v23 = vsel %vm2141_vm3, %v387_v13, %v391_v1  ;;  %v1122_v0 = vrot.slane %v1120_v55, 5  ;;  %v1128_v1 = vrot.slane %v1126_v56, 5 }
  0x3d   :  { %v1622_v37 = vcombine.low %v392_v23, %v406_v32  ;;  %v427_v57 = vrot.slane %v425_v48, 5  ;;  %v1133_v5 = vrot.slane %v1131_v60, 4  ;;  %v420_v8 = vsel %vm2141_vm3, %v415_v63, %v419_v44  ;;  %v308_v44 = vld [vmem:[%s2416_s0 + $0x58] sm:$0xf] }
  0x3e   :  { %1906 = vmatmul.mubr.msk.bf16.vlgmr.msra.gmra.mrb[0].mxu0 %vm134_vm0, %v1705_v18  ;;  %v1123_v9 = vor.u32 %v1122_v0, %v1119_v59  ;;  %v1140_v10 = vshll.u32 %v1687_v54, 16  ;;  %v436_v11 = vshrl.u32 %v304_v61, 16  ;;  %v1136_v13 = vrot.slane %v1134_v6, 5 }
  0x3f   :  { %1869 = vmatprep.mubr.msk.bf16.mxu1 %vm134_vm0, %v1622_v37  ;;  %v428_v4 = vor.u32 %v427_v57, %v424_v45  ;;  %1909 = vmatprep.mubr.msk.bf16.mxu0 %vm134_vm0, %v1706_v3  ;;  %v439_v15 = vshll.u32 %v304_v61, 16  ;;  %v445_v16 = vshll.u32 %v305_v2, 16  ;;  %v450_v20 = vshrl.u32 %v306_v7, 16  ;;  %v1691_v37 = vld [vmem:[%s2416_s0 + $0x5c] sm:$0x1] }
  0x40   :  { %v1124_v17 = vrot.slane %v1123_v9, 4  ;;  %v1142_v18 = vrot.slane %v1140_v10, 5  ;;  %v438_v19 = vrot.slane %v436_v11, 4  ;;  %v1137_v23 = vor.u32 %v1136_v13, %v1133_v5  ;;  %v1692_v5 = vld [vmem:[%s2416_s0 + $0x60] sm:$0xf] }
  0x41   :  { %v429_v12 = vrot.slane %v428_v4, 4  ;;  %v441_v24 = vrot.slane %v439_v15, 5  ;;  %v447_v25 = vrot.slane %v445_v16, 5  ;;  %v452_v29 = vrot.slane %v450_v20, 4  ;;  %v1693_v10 = vld [vmem:[%s2416_s0 + $0x64] sm:$0x1] }
  0x42   :  { %v1129_v28 = vsel %vm2141_vm3, %v1124_v17, %v1128_v1  ;;  %v453_v30 = vshll.u32 %v306_v7, 16  ;;  %v1138_v32 = vrot.slane %v1137_v23, 4  ;;  %v459_v34 = vshll.u32 %v307_v14, 16  ;;  %v1694_v11 = vld [vmem:[%s2416_s0 + $0x68] sm:$0xf] }
  0x43   :  { %v434_v22 = vsel %vm2141_vm3, %v429_v12, %v433_v58  ;;  %v442_v33 = vor.u32 %v441_v24, %v438_v19  ;;  %v1145_v35 = vshrl.u32 %v1688_v21, 16  ;;  %v1148_v38 = vshll.u32 %v1688_v21, 16  ;;  %v1695_v16 = vld [vmem:[%s2416_s0 + $0x6c] sm:$0x1]  ;;  %v312_v21 = vld [vmem:[%s2416_s0 + $0x68] sm:$0xf] }
  0x44   :  { %v1623_v27 = vcombine.low %v420_v8, %v434_v22  ;;  %v455_v36 = vrot.slane %v453_v30, 5  ;;  %v1159_v39 = vshrl.u32 %v1690_v26, 16  ;;  %v1143_v40 = vsel %vm2141_vm3, %v1138_v32, %v1142_v18 }
  0x45   :  { %v443_v41 = vrot.slane %v442_v33, 4  ;;  %v1147_v42 = vrot.slane %v1145_v35, 4  ;;  %v1154_v43 = vshll.u32 %v1689_v31, 16  ;;  %v1707_v45 = vcombine.low %v1129_v28, %v1143_v40  ;;  %v314_v31 = vld [vmem:[%s2416_s0 + $0x70] sm:$0xf] }
  0x46   :  { %1870 = vmatmul.mubr.msk.bf16.gmra.mrb[4].mxu1 %vm134_vm0, %v1623_v27  ;;  %v456_v46 = vor.u32 %v455_v36, %v452_v29  ;;  %v461_v47 = vrot.slane %v459_v34, 5  ;;  %v1150_v48 = vrot.slane %v1148_v38, 5  ;;  %v1161_v53 = vrot.slane %v1159_v39, 4 }
  0x47   :  { %v448_v52 = vsel %vm2141_vm3, %v443_v41, %v447_v25  ;;  %v1162_v54 = vshll.u32 %v1690_v26, 16  ;;  %v1168_v55 = vshll.u32 %v1691_v37, 16  ;;  %1910 = vmatmul.mubr.msk.bf16.gmra.mrb[4].mxu0 %vm134_vm0, %v1707_v45  ;;  %v464_v58 = vshrl.u32 %v308_v44, 16  ;;  %v313_v26 = vld [vmem:[%s2416_s0 + $0x6c] sm:$0x1] }
  0x48   :  { %v457_v56 = vrot.slane %v456_v46, 4  ;;  %v1151_v57 = vor.u32 %v1150_v48, %v1147_v42  ;;  %v467_v59 = vshll.u32 %v308_v44, 16  ;;  %v1156_v60 = vrot.slane %v1154_v43, 5  ;;  %v315_v41 = vld [vmem:[%s2416_s0 + $0x74] sm:$0x1] }
  0x49   :  { %v1164_v61 = vrot.slane %v1162_v54, 5  ;;  %v473_v63 = vshll.u32 %v309_v49, 16  ;;  %v478_v0 = vshrl.u32 %v310_v50, 16  ;;  %v466_v3 = vrot.slane %v464_v58, 4  ;;  %v1696_v49 = vld [vmem:[%s2416_s0 + $0x70] sm:$0xf] }
  0x4a   :  { %v462_v1 = vsel %vm2141_vm3, %v457_v56, %v461_v47  ;;  %v1152_v2 = vrot.slane %v1151_v57, 4  ;;  %v469_v4 = vrot.slane %v467_v59, 5  ;;  %v1170_v8 = vrot.slane %v1168_v55, 5  ;;  %v1698_v55 = vld [vmem:[%s2416_s0 + $0x78] sm:$0xf] }
  0x4b   :  { %v1624_v6 = vcombine.low %v448_v52, %v462_v1  ;;  %v1165_v7 = vor.u32 %v1164_v61, %v1161_v53  ;;  %v475_v9 = vrot.slane %v473_v63, 5  ;;  %v480_v13 = vrot.slane %v478_v0, 4 }
  0x4c   :  { %v470_v12 = vor.u32 %v469_v4, %v466_v3  ;;  %v481_v14 = vshll.u32 %v310_v50, 16  ;;  %v487_v15 = vshll.u32 %v311_v62, 16  ;;  %v1157_v17 = vsel %vm2141_vm3, %v1152_v2, %v1156_v60  ;;  %v1697_v60 = vld [vmem:[%s2416_s0 + $0x74] sm:$0x1]  ;;  %v1699_v4 = vld [vmem:[%s2416_s0 + $0x7c] sm:$0x1] }
  0x4d   :  { %1873 = vmatprep.mubr.msk.bf16.mxu1 %vm134_vm0, %v1624_v6  ;;  %v1166_v18 = vrot.slane %v1165_v7, 4  ;;  %v1173_v19 = vshrl.u32 %v1692_v5, 16  ;;  %v1176_v20 = vshll.u32 %v1692_v5, 16  ;;  %v1182_v24 = vshll.u32 %v1693_v10, 16  ;;  %v316_v10 = vld [vmem:[%s2416_s0 + $0x78] sm:$0xf] }
  0x4e   :  { %v471_v22 = vrot.slane %v470_v12, 4  ;;  %v483_v23 = vrot.slane %v481_v14, 5  ;;  %v1187_v25 = vshrl.u32 %v1694_v11, 16  ;;  %v489_v28 = vrot.slane %v487_v15, 5  ;;  %v318_v15 = vld [vmem:[%s2416_s0 + $0x80] sm:$0xf] }
  0x4f   :  { %v1171_v27 = vsel %vm2141_vm3, %v1166_v18, %v1170_v8  ;;  %v1175_v29 = vrot.slane %v1173_v19, 4  ;;  %v1178_v30 = vrot.slane %v1176_v20, 5  ;;  %v1190_v37 = vshll.u32 %v1694_v11, 16  ;;  %v317_v20 = vld [vmem:[%s2416_s0 + $0x7c] sm:$0x1] }
  0x50   :  { %v1708_v32 = vcombine.low %v1157_v17, %v1171_v27  ;;  %v476_v33 = vsel %vm2141_vm3, %v471_v22, %v475_v9  ;;  %v484_v34 = vor.u32 %v483_v23, %v480_v13  ;;  %v1189_v35 = vrot.slane %v1187_v25, 4 }
  0x51   :  { %v1179_v36 = vor.u32 %v1178_v30, %v1175_v29  ;;  %v1196_v38 = vshll.u32 %v1695_v16, 16  ;;  %v492_v39 = vshrl.u32 %v312_v21, 16  ;;  %v495_v42 = vshll.u32 %v312_v21, 16 }
  0x52   :  { %1913 = vmatprep.mubr.msk.bf16.mxu0 %vm134_vm0, %v1708_v32  ;;  %v485_v40 = vrot.slane %v484_v34, 4  ;;  %v501_v43 = vshll.u32 %v313_v26, 16  ;;  %v506_v44 = vshrl.u32 %v314_v31, 16  ;;  %v1184_v46 = vrot.slane %v1182_v24, 5  ;;  %v1700_v34 = vld [vmem:[%s2416_s0 + $0x80] sm:$0xf] }
  0x53   :  { %v1180_v45 = vrot.slane %v1179_v36, 4  ;;  %v1192_v47 = vrot.slane %v1190_v37, 5  ;;  %v494_v48 = vrot.slane %v492_v39, 4  ;;  %v1198_v52 = vrot.slane %v1196_v38, 5  ;;  %v1702_v38 = vld [vmem:[%s2416_s0 + $0x88] sm:$0xf] }
  0x54   :  { %v490_v50 = vsel %vm2141_vm3, %v485_v40, %v489_v28  ;;  %v497_v53 = vrot.slane %v495_v42, 5  ;;  %v503_v54 = vrot.slane %v501_v43, 5  ;;  %v508_v58 = vrot.slane %v506_v44, 4  ;;  %v319_v28 = vld [vmem:[%s2416_s0 + $0x84] sm:$0x1] }
  0x55   :  { %v1625_v56 = vcombine.low %v476_v33, %v490_v50  ;;  %v1193_v57 = vor.u32 %v1192_v47, %v1189_v35  ;;  %v509_v59 = vshll.u32 %v314_v31, 16  ;;  %v515_v62 = vshll.u32 %v315_v41, 16  ;;  %v1701_v43 = vld [vmem:[%s2416_s0 + $0x84] sm:$0x1] }
  0x56   :  { %v498_v61 = vor.u32 %v497_v53, %v494_v48  ;;  %v1201_v63 = vshrl.u32 %v1696_v49, 16  ;;  %v1204_v0 = vshll.u32 %v1696_v49, 16  ;;  %v1185_v1 = vsel %vm2141_vm3, %v1180_v45, %v1184_v46 }
  0x57   :  { %1874 = vmatmul.mubr.msk.bf16.gmra.mrb[8].mxu1 %vm134_vm0, %v1625_v56  ;;  %v1194_v2 = vrot.slane %v1193_v57, 4  ;;  %v511_v3 = vrot.slane %v509_v59, 5  ;;  %v1215_v5 = vshrl.u32 %v1698_v55, 16  ;;  %v1210_v9 = vshll.u32 %v1697_v60, 16 }
  0x58   :  { %v499_v6 = vrot.slane %v498_v61, 4  ;;  %v1203_v7 = vrot.slane %v1201_v63, 4  ;;  %v1206_v8 = vrot.slane %v1204_v0, 5  ;;  %v517_v13 = vrot.slane %v515_v62, 5 }
  0x59   :  { %v1199_v11 = vsel %vm2141_vm3, %v1194_v2, %v1198_v52  ;;  %v512_v12 = vor.u32 %v511_v3, %v508_v58  ;;  %v1217_v14 = vrot.slane %v1215_v5, 4  ;;  %v1218_v19 = vshll.u32 %v1698_v55, 16  ;;  %v1703_v52 = vld [vmem:[%s2416_s0 + $0x8c] sm:$0x1] }
  0x5a   :  { %v1709_v16 = vcombine.low %v1185_v1, %v1199_v11  ;;  %v504_v17 = vsel %vm2141_vm3, %v499_v6, %v503_v54  ;;  %v1207_v18 = vor.u32 %v1206_v8, %v1203_v7  ;;  %v1224_v22 = vshll.u32 %v1699_v4, 16 }
  0x5b   :  { %v513_v21 = vrot.slane %v512_v12, 4  ;;  %v520_v23 = vshrl.u32 %v316_v10, 16  ;;  %v523_v24 = vshll.u32 %v316_v10, 16  ;;  %v1212_v26 = vrot.slane %v1210_v9, 5 }
  0x5c   :  { %1914 = vmatmul.mubr.msk.bf16.gmra.mrb[8].mxu0 %vm134_vm0, %v1709_v16  ;;  %v1208_v25 = vrot.slane %v1207_v18, 4  ;;  %v1220_v27 = vrot.slane %v1218_v19, 5  ;;  %v534_v29 = vshrl.u32 %v318_v15, 16  ;;  %v529_v33 = vshll.u32 %v317_v20, 16 }
  0x5d   :  { %v518_v30 = vsel %vm2141_vm3, %v513_v21, %v517_v13  ;;  %v522_v31 = vrot.slane %v520_v23, 4  ;;  %v525_v32 = vrot.slane %v523_v24, 5  ;;  %v1226_v37 = vrot.slane %v1224_v22, 5 }
  0x5e   :  { %v1626_v35 = vcombine.low %v504_v17, %v518_v30  ;;  %v1221_v36 = vor.u32 %v1220_v27, %v1217_v14  ;;  %v536_v40 = vrot.slane %v534_v29, 4  ;;  %v537_v41 = vshll.u32 %v318_v15, 16 }
  0x5f   :  { %v526_v39 = vor.u32 %v525_v32, %v522_v31  ;;  %v543_v42 = vshll.u32 %v319_v28, 16  ;;  %v1213_v44 = vsel %vm2141_vm3, %v1208_v25, %v1212_v26  ;;  %v1229_v46 = vshrl.u32 %v1700_v34, 16 }
  0x60   :  { %1877 = vmatprep.mubr.msk.bf16.mxu1 %vm134_vm0, %v1626_v35  ;;  %v1222_v45 = vrot.slane %v1221_v36, 4  ;;  %v1232_v47 = vshll.u32 %v1700_v34, 16  ;;  %v531_v49 = vrot.slane %v529_v33, 5  ;;  %v539_v50 = vrot.slane %v537_v41, 5 }
  0x61   :  { %v527_v48 = vrot.slane %v526_v39, 4  ;;  %v1243_v53 = vshrl.u32 %v1702_v38, 16  ;;  %v1231_v55 = vrot.slane %v1229_v46, 4  ;;  %v1238_v57 = vshll.u32 %v1701_v43, 16 }
  0x62   :  { %v1227_v54 = vsel %vm2141_vm3, %v1222_v45, %v1226_v37  ;;  %v1234_v56 = vrot.slane %v1232_v47, 5  ;;  %v540_v59 = vor.u32 %v539_v50, %v536_v40  ;;  %v545_v60 = vrot.slane %v543_v42, 5 }
  0x63   :  { %v1710_v58 = vcombine.low %v1213_v44, %v1227_v54  ;;  %v1245_v62 = vrot.slane %v1243_v53, 4  ;;  %v1246_v63 = vshll.u32 %v1702_v38, 16  ;;  %v1252_v0 = vshll.u32 %v1703_v52, 16 }
  0x64   :  { %v1235_v61 = vor.u32 %v1234_v56, %v1231_v55  ;;  %v532_v1 = vsel %vm2141_vm3, %v527_v48, %v531_v49  ;;  %v541_v2 = vrot.slane %v540_v59, 4  ;;  %v1240_v4 = vrot.slane %v1238_v57, 5 }
  0x65   :  { %1917 = vmatprep.mubr.msk.bf16.mxu0 %vm134_vm0, %v1710_v58  ;;  %v1248_v5 = vrot.slane %v1246_v63, 5  ;;  %v1254_v9 = vrot.slane %v1252_v0, 5 }
  0x66   :  { %v1236_v3 = vrot.slane %v1235_v61, 4  ;;  %v546_v6 = vsel %vm2141_vm3, %v541_v2, %v545_v60 }
  0x67   :  { %v1627_v7 = vcombine.low %v532_v1, %v546_v6  ;;  %v1249_v8 = vor.u32 %v1248_v5, %v1245_v62 }
  0x68   :  { %v1241_v10 = vsel %vm2141_vm3, %v1236_v3, %v1240_v4 }
  0x69   :  { %1878 = vmatmul.mubr.msk.bf16.gmra.mrb[12].mxu1 %vm134_vm0, %v1627_v7  ;;  %v1250_v11 = vrot.slane %v1249_v8, 4 }
  0x6b   :  { %v1255_v12 = vsel %vm2141_vm3, %v1250_v11, %v1254_v9 }
  0x6c   :  { %v1711_v13 = vcombine.low %v1241_v10, %v1255_v12 }
  0x6e   :  { %1918 = vmatmul.mubr.msk.bf16.gmra.mrb[12].mxu0 %vm134_vm0, %v1711_v13 }
 0x10e   :  { %v1867_v14 = vpop.f32.mrb[0].mxu1 }
 0x10f   :  { %v662_v15 = vpop.f32.mrb[1].mxu1 }
 0x110   :  { %v1868_v16 = vpop.f32.mrb[2].mxu1 }
 0x111   :  { %v665_v17 = vpop.f32.mrb[3].mxu1  ;;  %v1907_v18 = vpop.f32.mrb[0].mxu0 }
 0x112   :  { %v1921_v19 = vadd.f32 %v1907_v18, %v1867_v14  ;;  %v1371_v20 = vpop.f32.mrb[1].mxu0 }
 0x113   :  { %v1922_v21 = vadd.f32 %v1371_v20, %v662_v15  ;;  %v1908_v22 = vpop.f32.mrb[2].mxu0 }
 0x114   :  { %v1487_v23 = vmul.f32 0.2, %v1921_v19  ;;  %v1923_v24 = vadd.f32 %v1908_v22, %v1868_v16  ;;  %v1374_v25 = vpop.f32.mrb[3].mxu0 }
 0x115   :  { %v1485_v26 = vmul.f32 0.2, %v1922_v21  ;;  %v1924_v27 = vadd.f32 %v1374_v25, %v665_v17 }
 0x116   :  { %v1488_v28 = vmul.f32 0.2, %v1923_v24  ;;  %v1503_v29 = vmax.f32 %v1921_v19, %v1487_v23 }
 0x117   :  { %v1486_v51 = vmul.f32 0.2, %v1924_v27  ;;  %v1501_v31 = vmax.f32 %v1922_v21, %v1485_v26 }
 0x118   :  { %v1504_v30 = vmax.f32 %v1923_v24, %v1488_v28 }
 0x119   :  { %v1502_v32 = vmax.f32 %v1924_v27, %v1486_v51  ;;  %v1871_v35 = vpop.f32.mrb[4].mxu1 }
 0x11a   :  { %v1762_v33 = vpack.c.bf16 %v1504_v30, %v1503_v29  ;;  %v678_v36 = vpop.f32.mrb[5].mxu1  ;;  %v1911_v39 = vpop.f32.mrb[4].mxu0 }
 0x11b   :  { %v1757_v34 = vpack.c.bf16 %v1502_v32, %v1501_v31  ;;  %v1872_v37 = vpop.f32.mrb[6].mxu1  ;;  %v1925_v40 = vadd.f32 %v1911_v39, %v1871_v35  ;;  %v1387_v41 = vpop.f32.mrb[5].mxu0 }
 0x11c   :  { %1794 = vst [vmem:[%s2418_s2 + $0x8] sm:$0xff] %v1762_v33   ;;  %v681_v38 = vpop.f32.mrb[7].mxu1  ;;  %v1926_v42 = vadd.f32 %v1387_v41, %v678_v36  ;;  %v1912_v43 = vpop.f32.mrb[6].mxu0 }
 0x11d   :  { %1758 = vst [vmem:[%s2418_s2] sm:$0xff] %v1757_v34   ;;  %v1491_v44 = vmul.f32 0.2, %v1925_v40  ;;  %v1927_v45 = vadd.f32 %v1912_v43, %v1872_v37  ;;  %v1390_v46 = vpop.f32.mrb[7].mxu0 }
 0x11e   :  { %v1489_v47 = vmul.f32 0.2, %v1926_v42  ;;  %v1928_v48 = vadd.f32 %v1390_v46, %v681_v38 }
 0x11f   :  { %v1492_v49 = vmul.f32 0.2, %v1927_v45  ;;  %v1507_v52 = vmax.f32 %v1925_v40, %v1491_v44 }
 0x120   :  { %v1490_v50 = vmul.f32 0.2, %v1928_v48  ;;  %v1505_v54 = vmax.f32 %v1926_v42, %v1489_v47 }
 0x121   :  { %v1508_v53 = vmax.f32 %v1927_v45, %v1492_v49 }
 0x122   :  { %v1506_v55 = vmax.f32 %v1928_v48, %v1490_v50 }
 0x123   :  { %v1772_v56 = vpack.c.bf16 %v1508_v53, %v1507_v52 }
 0x124   :  { %v1767_v57 = vpack.c.bf16 %v1506_v55, %v1505_v54 }
 0x125   :  { %1796 = vst [vmem:[%s2418_s2 + $0x18] sm:$0xff] %v1772_v56  }
 0x126   :  { %1795 = vst [vmem:[%s2418_s2 + $0x10] sm:$0xff] %v1767_v57  }
 0x12a   :  { %v1875_v58 = vpop.f32.mrb[8].mxu1 }
 0x12b   :  { %v694_v59 = vpop.f32.mrb[9].mxu1 }
 0x12c   :  { %v1876_v60 = vpop.f32.mrb[10].mxu1 }
 0x12d   :  { %v697_v61 = vpop.f32.mrb[11].mxu1 }
 0x12f   :  { %v1915_v62 = vpop.f32.mrb[8].mxu0 }
 0x130   :  { %v1929_v63 = vadd.f32 %v1915_v62, %v1875_v58  ;;  %v1403_v0 = vpop.f32.mrb[9].mxu0 }
 0x131   :  { %v1930_v1 = vadd.f32 %v1403_v0, %v694_v59  ;;  %v1916_v2 = vpop.f32.mrb[10].mxu0 }
 0x132   :  { %v1495_v3 = vmul.f32 0.2, %v1929_v63  ;;  %v1931_v4 = vadd.f32 %v1916_v2, %v1876_v60  ;;  %v1406_v5 = vpop.f32.mrb[11].mxu0 }
 0x133   :  { %v1493_v6 = vmul.f32 0.2, %v1930_v1  ;;  %v1932_v7 = vadd.f32 %v1406_v5, %v697_v61 }
 0x134   :  { %v1496_v8 = vmul.f32 0.2, %v1931_v4  ;;  %v1511_v10 = vmax.f32 %v1929_v63, %v1495_v3 }
 0x135   :  { %v1494_v9 = vmul.f32 0.2, %v1932_v7  ;;  %v1509_v12 = vmax.f32 %v1930_v1, %v1493_v6 }
 0x136   :  { %v1512_v11 = vmax.f32 %v1931_v4, %v1496_v8 }
 0x137   :  { %v1510_v13 = vmax.f32 %v1932_v7, %v1494_v9 }
 0x138   :  { %v1782_v14 = vpack.c.bf16 %v1512_v11, %v1511_v10 }
 0x139   :  { %v1777_v15 = vpack.c.bf16 %v1510_v13, %v1509_v12 }
 0x13a   :  { %1798 = vst [vmem:[%s2418_s2 + $0x28] sm:$0xff] %v1782_v14  }
 0x13b   :  { %1797 = vst [vmem:[%s2418_s2 + $0x20] sm:$0xff] %v1777_v15  }
 0x13c   :  { %v1879_v16 = vpop.f32.mrb[12].mxu1 }
 0x13d   :  { %v710_v17 = vpop.f32.mrb[13].mxu1 }
 0x13e   :  { %v1880_v18 = vpop.f32.mrb[14].mxu1 }
 0x13f   :  { %v713_v19 = vpop.f32.mrb[15].mxu1 }
 0x141   :  { %v1919_v20 = vpop.f32.mrb[12].mxu0 }
 0x142   :  { %v1933_v21 = vadd.f32 %v1919_v20, %v1879_v16  ;;  %v1419_v22 = vpop.f32.mrb[13].mxu0 }
 0x143   :  { %v1934_v23 = vadd.f32 %v1419_v22, %v710_v17  ;;  %v1920_v24 = vpop.f32.mrb[14].mxu0 }
 0x144   :  { %v1499_v25 = vmul.f32 0.2, %v1933_v21  ;;  %v1935_v26 = vadd.f32 %v1920_v24, %v1880_v18  ;;  %v1422_v27 = vpop.f32.mrb[15].mxu0 }
 0x145   :  { %v1497_v28 = vmul.f32 0.2, %v1934_v23  ;;  %v1936_v51 = vadd.f32 %v1422_v27, %v713_v19 }
 0x146   :  { %v1500_v29 = vmul.f32 0.2, %v1935_v26  ;;  %v1515_v31 = vmax.f32 %v1933_v21, %v1499_v25 }
 0x147   :  { %v1498_v30 = vmul.f32 0.2, %v1936_v51  ;;  %v1513_v33 = vmax.f32 %v1934_v23, %v1497_v28 }
 0x148   :  { %v1516_v32 = vmax.f32 %v1935_v26, %v1500_v29 }
 0x149   :  { %v1514_v34 = vmax.f32 %v1936_v51, %v1498_v30 }
 0x14a   :  { %v1792_v35 = vpack.c.bf16 %v1516_v32, %v1515_v31 }
 0x14b   :  { %v1787_v36 = vpack.c.bf16 %v1514_v34, %v1513_v33 }
 0x14c   :  { %1800 = vst [vmem:[%s2418_s2 + $0x38] sm:$0xff] %v1792_v35  }
 0x14d   :  { %1799 = vst [vmem:[%s2418_s2 + $0x30] sm:$0xff] %v1787_v36  }
 0x14e   :  { %1601 = vsyncpa [#allocation4], 1 }

// kernel: _lambda_.4
= control target key start
LH: loop header
LB: loop body
LE: loop exit
PB: predicated region body
PF: predicated region fallthrough
CT: control target
= control target key end

     0   :  { %v3506_v25 = vmov 1983009808   ;;  %v247_v27 = vlaneseq  ;;  %vm778_vm0 = vsmask.f32 1280  ;;  %vm779_vm1 = vsmask.f32 3336  ;;  %s4196_s1 = inlined_call_operand.vmem [shape: bf16[4,512,128], index: 1, kind: input, shape index: {}]   ;;  %s4197_s0 = inlined_call_operand.vmem [shape: bf16[2,5,5,512], index: 0, kind: input, shape index: {}]   ;;  %s4198_s2 = inlined_call_operand.vmem [shape: bf16[32,128], index: 2, kind: output, shape index: {}]  }
   0x1   :  { %v3378_v0 = vld [vmem:[%s4196_s1 + $0x40] sm:$0xff]   ;;  %v3382_v4 = vld [vmem:[%s4196_s1 + $0x48] sm:$0xff]   ;;  %v3386_v8 = vld [vmem:[%s4196_s1 + $0x50] sm:$0xff]   ;;  %v245_v26 = vunpack.c.l.s4 %v3506_v25  ;;  %vm781_vm2 = vsmask.f32 5392 }
   0x2   :  { %v3379_v1 = vld [vmem:[%s4196_s1 + $0xc0] sm:$0xff]   ;;  %3153 = vmatprep.subr.bf16.mxu0 %v3378_v0  ;;  %v3383_v5 = vld [vmem:[%s4196_s1 + $0xc8] sm:$0xff]   ;;  %v3387_v9 = vld [vmem:[%s4196_s1 + $0xd0] sm:$0xff]   ;;  %v248_v33 = vshrl.u32 %v247_v27, 7  ;;  %vm783_vm3 = vsmask.f32 7448 }
   0x3   :  { %v3380_v2 = vld [vmem:[%s4196_s1] sm:$0xff]   ;;  %3181 = vmatprep.subr.bf16.mxu1 %v3379_v1  ;;  %v3384_v6 = vld [vmem:[%s4196_s1 + $0x8] sm:$0xff]   ;;  %v3388_v10 = vld [vmem:[%s4196_s1 + $0x10] sm:$0xff]   ;;  %v246_v32 = vunpack.c.0.s8 %v245_v26 }
   0x4   :  { %v3381_v3 = vld [vmem:[%s4196_s1 + $0x80] sm:$0xff]   ;;  %3154 = vmatpush3.bf16.msra.mxu0 %v3380_v2  ;;  %v3385_v7 = vld [vmem:[%s4196_s1 + $0x88] sm:$0xff]   ;;  %v3389_v11 = vld [vmem:[%s4196_s1 + $0x90] sm:$0xff]  }
   0x5   :  { %3182 = vmatpush3.bf16.msra.mxu1 %v3381_v3  ;;  %3155 = vmatprep.subr.bf16.mxu0 %v3382_v4  ;;  %v3390_v12 = vld [vmem:[%s4196_s1 + $0x58] sm:$0xff]   ;;  %v3394_v16 = vld [vmem:[%s4196_s1 + $0x60] sm:$0xff]   ;;  %v3398_v20 = vld [vmem:[%s4196_s1 + $0x68] sm:$0xff]   ;;  %v3621_v38 = vsub.s32 %v246_v32, %v248_v33 }
   0x6   :  { %3183 = vmatprep.subr.bf16.mxu1 %v3383_v5  ;;  %v3391_v13 = vld [vmem:[%s4196_s1 + $0xd8] sm:$0xff]   ;;  %v3395_v17 = vld [vmem:[%s4196_s1 + $0xe0] sm:$0xff]   ;;  %v3399_v21 = vld [vmem:[%s4196_s1 + $0xe8] sm:$0xff]  }
   0x7   :  { %v3392_v14 = vld [vmem:[%s4196_s1 + $0x18] sm:$0xff]   ;;  %v3396_v18 = vld [vmem:[%s4196_s1 + $0x20] sm:$0xff]   ;;  %v3400_v22 = vld [vmem:[%s4196_s1 + $0x28] sm:$0xff]  }
   0x8   :  { %3156 = vmatpush3.bf16.msra.mxu0 %v3384_v6  ;;  %v3393_v15 = vld [vmem:[%s4196_s1 + $0x98] sm:$0xff]   ;;  %v3397_v19 = vld [vmem:[%s4196_s1 + $0xa0] sm:$0xff]   ;;  %v3401_v23 = vld [vmem:[%s4196_s1 + $0xa8] sm:$0xff]  }
   0x9   :  { %3184 = vmatpush3.bf16.msra.mxu1 %v3385_v7  ;;  %3157 = vmatprep.subr.bf16.mxu0 %v3386_v8  ;;  %v3402_v24 = vld [vmem:[%s4196_s1 + $0x70] sm:$0xff]   ;;  %v3406_v31 = vld [vmem:[%s4196_s1 + $0x78] sm:$0xff]   ;;  %v2702_v37 = vld.sshfl [vmem:[%s4197_s0] sm:$0xf pattern:$0x76325410] }
   0xa   :  { %3185 = vmatprep.subr.bf16.mxu1 %v3387_v9  ;;  %v3403_v28 = vld [vmem:[%s4196_s1 + $0xf0] sm:$0xff]   ;;  %v3407_v34 = vld [vmem:[%s4196_s1 + $0xf8] sm:$0xff]   ;;  %v3631_v40 = vld.sshfl [vmem:[%s4197_s0 + $0x20] sm:$0xf pattern:$0x76325410] }
   0xb   :  { %v3404_v29 = vld [vmem:[%s4196_s1 + $0x30] sm:$0xff]   ;;  %v3408_v35 = vld [vmem:[%s4196_s1 + $0x38] sm:$0xff]   ;;  %v3410_v42 = vld [vmem:[%s4196_s1 + $0x140] sm:$0xff]  }
   0xc   :  { %3158 = vmatpush3.bf16.msra.mxu0 %v3388_v10  ;;  %v3405_v30 = vld [vmem:[%s4196_s1 + $0xb0] sm:$0xff]   ;;  %v3409_v36 = vld [vmem:[%s4196_s1 + $0xb8] sm:$0xff]   ;;  %v3411_v43 = vld [vmem:[%s4196_s1 + $0x1c0] sm:$0xff]  }
   0xd   :  { %3186 = vmatpush3.bf16.msra.mxu1 %v3389_v11  ;;  %3159 = vmatprep.subr.bf16.mxu0 %v3390_v12  ;;  %v3626_v39 = vld.sshfl [vmem:[%s4197_s0 + $0x10] sm:$0xf pattern:$0x76325410]  ;;  %v3412_v54 = vld [vmem:[%s4196_s1 + $0x100] sm:$0xff]   ;;  %v3414_v60 = vld [vmem:[%s4196_s1 + $0x148] sm:$0xff]  }
   0xe   :  { %3187 = vmatprep.subr.bf16.mxu1 %v3391_v13  ;;  %v2718_v41 = vcombine.low %v2702_v37, %v3626_v39  ;;  %v3643_v44 = vld.sshfl [vmem:[%s4197_s0 + $0x30] sm:$0xf pattern:$0x76325410]  ;;  %v2966_v45 = vcombine.low %v3626_v39, %v3631_v40  ;;  %v3413_v62 = vld [vmem:[%s4196_s1 + $0x180] sm:$0xff]   ;;  %v3415_v63 = vld [vmem:[%s4196_s1 + $0x1c8] sm:$0xff]  }
   0xf   :  { %v2720_v46 = vcombine.low %v3631_v40, %v3643_v44  ;;  %v2703_v48 = vld.sshfl [vmem:[%s4197_s0 + $0x8] sm:$0xf pattern:$0x76325410]  ;;  %v3418_v3 = vld [vmem:[%s4196_s1 + $0x150] sm:$0xff]   ;;  %v3422_v7 = vld [vmem:[%s4196_s1 + $0x158] sm:$0xff]  }
  0x10   :  { %3160 = vmatpush3.bf16.msra.mxu0 %v3392_v14  ;;  %v250_v47 = vrot.slane %v2718_v41, %v3621_v38  ;;  %v3656_v49 = vld.sshfl [vmem:[%s4197_s0 + $0x18] sm:$0xf pattern:$0x76325410]  ;;  %v3416_v2 = vld [vmem:[%s4196_s1 + $0x108] sm:$0xff]   ;;  %v3419_v5 = vld [vmem:[%s4196_s1 + $0x1d0] sm:$0xff]  }
  0x11   :  { %3188 = vmatpush3.bf16.msra.mxu1 %v3393_v15  ;;  %3161 = vmatprep.subr.bf16.mxu0 %v3394_v16  ;;  %v264_v50 = vrot.slane %v2720_v46, %v3621_v38  ;;  %v3662_v51 = vld.sshfl [vmem:[%s4197_s0 + $0x28] sm:$0xf pattern:$0x76325410]  ;;  %v2719_v52 = vcombine.low %v2703_v48, %v3656_v49  ;;  %v3420_v6 = vld [vmem:[%s4196_s1 + $0x110] sm:$0xff]   ;;  %v3423_v9 = vld [vmem:[%s4196_s1 + $0x1d8] sm:$0xff]  }
  0x12   :  { %3189 = vmatprep.subr.bf16.mxu1 %v3395_v17  ;;  %v3668_v53 = vld.sshfl [vmem:[%s4197_s0 + $0x38] sm:$0xf pattern:$0x76325410]  ;;  %v2967_v55 = vcombine.low %v3656_v49, %v3662_v51  ;;  %v3417_v4 = vld [vmem:[%s4196_s1 + $0x188] sm:$0xff]   ;;  %v3421_v8 = vld [vmem:[%s4196_s1 + $0x190] sm:$0xff]  }
  0x13   :  { %v273_v56 = vcombine.high %v250_v47, %v264_v50  ;;  %v2721_v57 = vcombine.low %v3662_v51, %v3668_v53  ;;  %v257_v58 = vrot.slane %v2719_v52, %v3621_v38  ;;  %v272_v59 = vcombine.low %v250_v47, %v264_v50  ;;  %v3424_v10 = vld [vmem:[%s4196_s1 + $0x118] sm:$0xff]   ;;  %v3426_v11 = vld [vmem:[%s4196_s1 + $0x160] sm:$0xff]   ;;  %v3430_v15 = vld [vmem:[%s4196_s1 + $0x168] sm:$0xff]  }
  0x14   :  { %3162 = vmatpush3.bf16.msra.mxu0 %v3396_v18  ;;  %v3425_v12 = vld [vmem:[%s4196_s1 + $0x198] sm:$0xff]   ;;  %v3427_v13 = vld [vmem:[%s4196_s1 + $0x1e0] sm:$0xff]   ;;  %v2710_v17 = vld.sshfl [vmem:[%s4197_s0 + $0x50] sm:$0xf pattern:$0x76325410] }
  0x15   :  { %3190 = vmatpush3.bf16.msra.mxu1 %v3397_v19  ;;  %3163 = vmatprep.subr.bf16.mxu0 %v3398_v20  ;;  %v271_v61 = vrot.slane %v2721_v57, %v3621_v38  ;;  %v3428_v14 = vld [vmem:[%s4196_s1 + $0x120] sm:$0xff]   ;;  %v3431_v18 = vld [vmem:[%s4196_s1 + $0x1e8] sm:$0xff]   ;;  %v3434_v33 = vld [vmem:[%s4196_s1 + $0x170] sm:$0xff]  }
  0x16   :  { %3191 = vmatprep.subr.bf16.mxu1 %v3399_v21  ;;  %544 = vmatprep.mubr.bf16.mxu0 %v273_v56  ;;  %v3429_v16 = vld [vmem:[%s4196_s1 + $0x1a0] sm:$0xff]   ;;  %v3432_v20 = vld [vmem:[%s4196_s1 + $0x128] sm:$0xff]   ;;  %v3750_v21 = vld.sshfl [vmem:[%s4197_s0 + $0x70] sm:$0xf pattern:$0x76325410] }
  0x17   :  { %v275_v0 = vcombine.high %v257_v58, %v271_v61  ;;  %v274_v1 = vcombine.low %v257_v58, %v271_v61  ;;  %v3742_v19 = vld.sshfl [vmem:[%s4197_s0 + $0x60] sm:$0xf pattern:$0x76325410]  ;;  %v3436_v46 = vld [vmem:[%s4196_s1 + $0x130] sm:$0xff]   ;;  %v3438_v50 = vld [vmem:[%s4196_s1 + $0x178] sm:$0xff]  }
  0x18   :  { %3164 = vmatpush3.bf16.msra.mxu0 %v3400_v22  ;;  %v2722_v22 = vcombine.low %v2710_v17, %v3742_v19  ;;  %v2970_v25 = vcombine.low %v3742_v19, %v3750_v21  ;;  %v3437_v48 = vld [vmem:[%s4196_s1 + $0x1b0] sm:$0xff]   ;;  %v3439_v56 = vld [vmem:[%s4196_s1 + $0x1f8] sm:$0xff]   ;;  %v2759_v61 = vld.sshfl [vmem:[%s4197_s0 + $0x8] sm:$0x5f pattern:$0x76325410] }
  0x19   :  { %3192 = vmatpush3.bf16.msra.mxu1 %v3401_v23  ;;  %3165 = vmatprep.subr.bf16.mxu0 %v3402_v24  ;;  %v3756_v23 = vld.sshfl [vmem:[%s4197_s0 + $0x80] sm:$0xf pattern:$0x76325410]  ;;  %v3433_v24 = vld [vmem:[%s4196_s1 + $0x1a8] sm:$0xff]   ;;  %v3440_v57 = vld [vmem:[%s4196_s1 + $0x138] sm:$0xff]  }
  0x1a   :  { %3193 = vmatprep.subr.bf16.mxu1 %v3403_v28  ;;  %593 = vmatprep.mubr.bf16.mxu1 %v275_v0  ;;  %v2724_v26 = vcombine.low %v3750_v21, %v3756_v23  ;;  %v286_v27 = vrot.slane %v2722_v22, %v3621_v38  ;;  %v2711_v28 = vld.sshfl [vmem:[%s4197_s0 + $0x58] sm:$0xf pattern:$0x76325410]  ;;  %vm780_vm4 = vmor %vm778_vm0, %vm779_vm1  ;;  %v3475_v40 = vld [vmem:[%s4196_s1 + $0x3c0] sm:$0xff]  }
  0x1b   :  { %v3441_v58 = vld [vmem:[%s4196_s1 + $0x1b8] sm:$0xff]   ;;  %vm782_vm5 = vmor %vm780_vm4, %vm781_vm2  ;;  %v3483_v19 = vld [vmem:[%s4196_s1 + $0x3d0] sm:$0xff]  }
  0x1c   :  { %3166 = vmatpush3.bf16.msra.mxu0 %v3404_v29  ;;  %v3772_v29 = vld.sshfl [vmem:[%s4197_s0 + $0x68] sm:$0xf pattern:$0x76325410]  ;;  %vm3850_vm6 = vmor %vm782_vm5, %vm783_vm3 }
  0x1d   :  { %3194 = vmatpush3.bf16.msra.mxu1 %v3405_v30  ;;  %3167 = vmatprep.subr.bf16.mxu0 %v3406_v31  ;;  %v300_v30 = vrot.slane %v2724_v26, %v3621_v38  ;;  %v3778_v31 = vld.sshfl [vmem:[%s4197_s0 + $0x78] sm:$0xf pattern:$0x76325410]  ;;  %v2723_v32 = vcombine.low %v2711_v28, %v3772_v29 }
  0x1e   :  { %3195 = vmatprep.subr.bf16.mxu1 %v3407_v34  ;;  %v3435_v34 = vld [vmem:[%s4196_s1 + $0x1f0] sm:$0xff]  }
  0x1f   :  { %v309_v37 = vcombine.high %v286_v27, %v300_v30 }
  0x20   :  { %3168 = vmatpush3.bf16.msra.mxu0 %v3408_v35  ;;  %v3790_v35 = vld.sshfl [vmem:[%s4197_s0 + $0x88] sm:$0xf pattern:$0x76325410] }
  0x21   :  { %3196 = vmatpush3.bf16.msra.mxu1 %v3409_v36  ;;  %3209 = vmatprep.subr.bf16.mxu0 %v3410_v42  ;;  %v2971_v36 = vcombine.low %v3772_v29, %v3778_v31  ;;  %v2725_v41 = vcombine.low %v3778_v31, %v3790_v35  ;;  %v293_v42 = vrot.slane %v2723_v32, %v3621_v38  ;;  %v3485_v29 = vld [vmem:[%s4196_s1 + $0x390] sm:$0xff]  }
  0x22   :  { %3237 = vmatprep.subr.bf16.mxu1 %v3411_v43  ;;  %v308_v43 = vcombine.low %v286_v27, %v300_v30 }
  0x23   :  { %545 = vmatmul.mubr.bf16.vlgmr.msra.gmra.mrb[0].mxu0 %v272_v59  ;;  %v307_v47 = vrot.slane %v2725_v41, %v3621_v38  ;;  %v2758_v59 = vld.sshfl [vmem:[%s4197_s0] sm:$0x5f pattern:$0x76325410] }
  0x24   :  { %3210 = vmatpush3.bf16.msra.mxu0 %v3412_v54  ;;  %594 = vmatmul.mubr.bf16.vlgmr.msra.gmra.mrb[0].mxu1 %v274_v1  ;;  %v665_v0 = vcombine.high %v2758_v59, %v2759_v61  ;;  %v2761_v1 = vld.sshfl [vmem:[%s4197_s0 + $0x18] sm:$0x5f pattern:$0x76325410] }
  0x25   :  { %3211 = vmatprep.subr.bf16.mxu0 %v3414_v60  ;;  %3238 = vmatpush3.bf16.msra.mxu1 %v3413_v62  ;;  %v311_v52 = vcombine.high %v293_v42, %v307_v47  ;;  %v310_v54 = vcombine.low %v293_v42, %v307_v47  ;;  %v3442_v60 = vld [vmem:[%s4196_s1 + $0x240] sm:$0xff]   ;;  %v2760_v62 = vld.sshfl [vmem:[%s4197_s0 + $0x10] sm:$0x5f pattern:$0x76325410] }
  0x26   :  { %3239 = vmatprep.subr.bf16.mxu1 %v3415_v63  ;;  %552 = vmatprep.mubr.bf16.mxu0 %v309_v37  ;;  %v664_v63 = vcombine.low %v2758_v59, %v2759_v61 }
  0x27   :  { %601 = vmatprep.mubr.bf16.mxu1 %v311_v52 }
  0x28   :  { %3212 = vmatpush3.bf16.msra.mxu0 %v3416_v2  ;;  %v2762_v2 = vld.sshfl [vmem:[%s4197_s0 + $0x20] sm:$0x5f pattern:$0x76325410] }
  0x29   :  { %3213 = vmatprep.subr.bf16.mxu0 %v3418_v3  ;;  %3240 = vmatpush3.bf16.msra.mxu1 %v3417_v4  ;;  %v680_v3 = vcombine.low %v2760_v62, %v2761_v1  ;;  %v786_v4 = vshrl.u32 %v664_v63, 16 }
  0x2a   :  { %3241 = vmatprep.subr.bf16.mxu1 %v3419_v5  ;;  %v789_v5 = vshll.u32 %v664_v63, 16 }
  0x2b   :  { %553 = vmatmul.mubr.bf16.gmra.mrb[4].mxu0 %v308_v43  ;;  %v800_v17 = vshrl.u32 %v680_v3, 16 }
  0x2c   :  { %3214 = vmatpush3.bf16.msra.mxu0 %v3420_v6  ;;  %602 = vmatmul.mubr.bf16.gmra.mrb[4].mxu1 %v310_v54  ;;  %v2763_v6 = vld.sshfl [vmem:[%s4197_s0 + $0x28] sm:$0x5f pattern:$0x76325410] }
  0x2d   :  { %3215 = vmatprep.subr.bf16.mxu0 %v3422_v7  ;;  %3242 = vmatpush3.bf16.msra.mxu1 %v3421_v8  ;;  %v681_v7 = vcombine.high %v2760_v62, %v2761_v1  ;;  %v795_v8 = vshll.u32 %v665_v0, 16  ;;  %v802_v26 = vrot.slane %v800_v17, 6 }
  0x2e   :  { %3243 = vmatprep.subr.bf16.mxu1 %v3423_v9  ;;  %v3443_v9 = vld [vmem:[%s4196_s1 + $0x2c0] sm:$0xff]  }
  0x2f   :  { %v809_v27 = vshll.u32 %v681_v7, 16 }
  0x30   :  { %3216 = vmatpush3.bf16.msra.mxu0 %v3424_v10  ;;  %v2764_v10 = vld.sshfl [vmem:[%s4197_s0 + $0x30] sm:$0x5f pattern:$0x76325410] }
  0x31   :  { %3217 = vmatprep.subr.bf16.mxu0 %v3426_v11  ;;  %3244 = vmatpush3.bf16.msra.mxu1 %v3425_v12  ;;  %v696_v11 = vcombine.low %v2762_v2, %v2763_v6  ;;  %v697_v12 = vcombine.high %v2762_v2, %v2763_v6 }
  0x32   :  { %3245 = vmatprep.subr.bf16.mxu1 %v3427_v13  ;;  %v788_v13 = vrot.slane %v786_v4, 6  ;;  %v2766_v4 = vld.sshfl [vmem:[%s4197_s0 + $0x50] sm:$0x5f pattern:$0x76325410] }
  0x33   :  { %v814_v28 = vshrl.u32 %v696_v11, 16  ;;  %v817_v30 = vshll.u32 %v696_v11, 16 }
  0x34   :  { %3218 = vmatpush3.bf16.msra.mxu0 %v3428_v14  ;;  %v791_v14 = vrot.slane %v789_v5, 7 }
  0x35   :  { %3219 = vmatprep.subr.bf16.mxu0 %v3430_v15  ;;  %3246 = vmatpush3.bf16.msra.mxu1 %v3429_v16  ;;  %v2765_v15 = vld.sshfl [vmem:[%s4197_s0 + $0x38] sm:$0x5f pattern:$0x76325410]  ;;  %v797_v16 = vrot.slane %v795_v8, 7  ;;  %v816_v42 = vrot.slane %v814_v28, 6 }
  0x36   :  { %3247 = vmatprep.subr.bf16.mxu1 %v3431_v18  ;;  %v712_v18 = vcombine.low %v2764_v10, %v2765_v15  ;;  %v792_v22 = vor.u32 %v791_v14, %v788_v13  ;;  %v819_v43 = vrot.slane %v817_v30, 7  ;;  %v2768_v13 = vld.sshfl [vmem:[%s4197_s0 + $0x60] sm:$0x5f pattern:$0x76325410]  ;;  %v3447_v28 = vld [vmem:[%s4196_s1 + $0x2c8] sm:$0xff]  }
  0x37   :  { %v2771_v30 = vld.sshfl [vmem:[%s4197_s0 + $0x78] sm:$0x5f pattern:$0x76325410] }
  0x38   :  { %3220 = vmatpush3.bf16.msra.mxu0 %v3432_v20  ;;  %v713_v20 = vcombine.high %v2764_v10, %v2765_v15  ;;  %v793_v32 = vrot.slane %v792_v22, 2  ;;  %v828_v37 = vshrl.u32 %v712_v18, 16  ;;  %v820_v52 = vor.u32 %v819_v43, %v816_v42  ;;  %v2769_v15 = vld.sshfl [vmem:[%s4197_s0 + $0x68] sm:$0x5f pattern:$0x76325410] }
  0x39   :  { %3221 = vmatprep.subr.bf16.mxu0 %v3434_v33  ;;  %3248 = vmatpush3.bf16.msra.mxu1 %v3433_v24  ;;  %v803_v24 = vshll.u32 %v680_v3, 16  ;;  %v2770_v22 = vld.sshfl [vmem:[%s4197_s0 + $0x70] sm:$0x5f pattern:$0x76325410] }
  0x3a   :  { %3249 = vmatprep.subr.bf16.mxu1 %v3435_v34  ;;  %v823_v34 = vshll.u32 %v697_v12, 16 }
  0x3b   :  { %v805_v33 = vrot.slane %v803_v24, 7 }
  0x3c   :  { %3222 = vmatpush3.bf16.msra.mxu0 %v3436_v46  ;;  %v831_v46 = vshll.u32 %v712_v18, 16  ;;  %v825_v54 = vrot.slane %v823_v34, 7  ;;  %v3444_v18 = vld [vmem:[%s4196_s1 + $0x200] sm:$0xff]  }
  0x3d   :  { %3250 = vmatpush3.bf16.msra.mxu1 %v3437_v48  ;;  %3223 = vmatprep.subr.bf16.mxu0 %v3438_v50  ;;  %v806_v47 = vor.u32 %v805_v33, %v802_v26  ;;  %v811_v48 = vrot.slane %v809_v27, 7  ;;  %v830_v50 = vrot.slane %v828_v37, 6  ;;  %v744_v26 = vcombine.low %v2768_v13, %v2769_v15  ;;  %v3446_v27 = vld [vmem:[%s4196_s1 + $0x248] sm:$0xff]  }
  0x3e   :  { %3251 = vmatprep.subr.bf16.mxu1 %v3439_v56  ;;  %v833_v56 = vrot.slane %v831_v46, 7 }
  0x3f   :  { %v807_v59 = vrot.slane %v806_v47, 2  ;;  %v2772_v47 = vld.sshfl [vmem:[%s4197_s0 + $0x80] sm:$0x5f pattern:$0x76325410] }
  0x40   :  { %3224 = vmatpush3.bf16.msra.mxu0 %v3440_v57  ;;  %v837_v57 = vshll.u32 %v713_v20, 16  ;;  %v834_v61 = vor.u32 %v833_v56, %v830_v50  ;;  %v3445_v20 = vld [vmem:[%s4196_s1 + $0x280] sm:$0xff]   ;;  %v760_v50 = vcombine.low %v2770_v22, %v2771_v30 }
  0x41   :  { %3252 = vmatpush3.bf16.msra.mxu1 %v3441_v58  ;;  %3265 = vmatprep.subr.bf16.mxu0 %v3442_v60  ;;  %v798_v58 = vsel %vm3850_vm6, %v793_v32, %v797_v16  ;;  %v821_v60 = vrot.slane %v820_v52, 2  ;;  %v3858_v63 = vsel %vm3850_vm6, %v807_v59, %v811_v48  ;;  %v745_v32 = vcombine.high %v2768_v13, %v2769_v15  ;;  %v2773_v48 = vld.sshfl [vmem:[%s4197_s0 + $0x88] sm:$0x5f pattern:$0x76325410] }
  0x42   :  { %3293 = vmatprep.subr.bf16.mxu1 %v3443_v9  ;;  %v839_v62 = vrot.slane %v837_v57, 7  ;;  %v835_v1 = vrot.slane %v834_v61, 2  ;;  %v966_v2 = vcombine.low %v798_v58, %v3858_v63  ;;  %v967_v3 = vcombine.high %v798_v58, %v3858_v63  ;;  %v2767_v9 = vld.sshfl [vmem:[%s4197_s0 + $0x58] sm:$0x5f pattern:$0x76325410] }
  0x43   :  { %v3862_v0 = vsel %vm3850_vm6, %v821_v60, %v825_v54  ;;  %v728_v14 = vcombine.low %v2766_v4, %v2767_v9  ;;  %v729_v24 = vcombine.high %v2766_v4, %v2767_v9  ;;  %v761_v52 = vcombine.high %v2770_v22, %v2771_v30  ;;  %v3448_v57 = vld [vmem:[%s4196_s1 + $0x208] sm:$0xff]  }
  0x44   :  { %v2285_v5 = vcombine.low %v3858_v63, %v3862_v0  ;;  %v2286_v6 = vcombine.high %v3858_v63, %v3862_v0  ;;  %v3875_v7 = vsel %vm3850_vm6, %v835_v1, %v839_v62  ;;  %v976_v8 = vrot.slane %v966_v2, %v3621_v38  ;;  %v3449_v58 = vld [vmem:[%s4196_s1 + $0x288] sm:$0xff]  }
  0x45   :  { %v968_v10 = vcombine.low %v3862_v0, %v3875_v7  ;;  %v969_v11 = vcombine.high %v3862_v0, %v3875_v7  ;;  %v983_v12 = vrot.slane %v967_v3, %v3621_v38  ;;  %v842_v33 = vshrl.u32 %v728_v14, 16 }
  0x46   :  { %v845_v34 = vshll.u32 %v728_v14, 16  ;;  %v776_v59 = vcombine.low %v2772_v47, %v2773_v48  ;;  %v777_v60 = vcombine.high %v2772_v47, %v2773_v48  ;;  %v851_v61 = vshll.u32 %v729_v24, 16 }
  0x47   :  { %v990_v16 = vrot.slane %v968_v10, %v3621_v38  ;;  %v997_v17 = vrot.slane %v969_v11, %v3621_v38  ;;  %v844_v54 = vrot.slane %v842_v33, 6  ;;  %v856_v62 = vshrl.u32 %v744_v26, 16 }
  0x48   :  { %v847_v56 = vrot.slane %v845_v34, 7  ;;  %v859_v2 = vshll.u32 %v744_v26, 16  ;;  %v865_v3 = vshll.u32 %v745_v32, 16  ;;  %v870_v4 = vshrl.u32 %v760_v50, 16 }
  0x49   :  { %v998_v37 = vcombine.low %v976_v8, %v990_v16  ;;  %v999_v42 = vcombine.high %v976_v8, %v990_v16  ;;  %v1000_v43 = vcombine.low %v983_v12, %v997_v17  ;;  %v1001_v46 = vcombine.high %v983_v12, %v997_v17  ;;  %v3450_v8 = vld [vmem:[%s4196_s1 + $0x250] sm:$0xff]  }
  0x4a   :  { %v848_v1 = vor.u32 %v847_v56, %v844_v54  ;;  %v858_v9 = vrot.slane %v856_v62, 6  ;;  %v873_v10 = vshll.u32 %v760_v50, 16  ;;  %v879_v11 = vshll.u32 %v761_v52, 16  ;;  %v3451_v12 = vld [vmem:[%s4196_s1 + $0x2d0] sm:$0xff]   ;;  %v3456_v52 = vld [vmem:[%s4196_s1 + $0x218] sm:$0xff]   ;;  %v3459_v62 = vld [vmem:[%s4196_s1 + $0x2e0] sm:$0xff]  }
  0x4b   :  { %1270 = vmatprep.mubr.bf16.mxu0 %v999_v42  ;;  %1319 = vmatprep.mubr.bf16.mxu1 %v1001_v46  ;;  %v853_v14 = vrot.slane %v851_v61, 7  ;;  %v861_v15 = vrot.slane %v859_v2, 7  ;;  %v872_v16 = vrot.slane %v870_v4, 6  ;;  %v884_v22 = vshrl.u32 %v776_v59, 16  ;;  %v3455_v46 = vld [vmem:[%s4196_s1 + $0x2d8] sm:$0xff]   ;;  %v3458_v61 = vld [vmem:[%s4196_s1 + $0x260] sm:$0xff]  }
  0x4c   :  { %1271 = vmatmul.mubr.bf16.vlgmr.msra.gmra.mrb[8].mxu0 %v998_v37  ;;  %1320 = vmatmul.mubr.bf16.vlgmr.msra.gmra.mrb[8].mxu1 %v1000_v43  ;;  %v849_v13 = vrot.slane %v848_v1, 2  ;;  %v875_v17 = vrot.slane %v873_v10, 7  ;;  %v887_v24 = vshll.u32 %v776_v59, 16  ;;  %v867_v30 = vrot.slane %v865_v3, 7  ;;  %v3454_v37 = vld [vmem:[%s4196_s1 + $0x258] sm:$0xff]   ;;  %v3461_v10 = vld [vmem:[%s4196_s1 + $0x2a0] sm:$0xff]  }
  0x4d   :  { %3266 = vmatpush3.bf16.msra.mxu0 %v3444_v18  ;;  %3294 = vmatpush3.bf16.msra.mxu1 %v3445_v20  ;;  %v3452_v18 = vld [vmem:[%s4196_s1 + $0x210] sm:$0xff]   ;;  %v862_v26 = vor.u32 %v861_v15, %v858_v9  ;;  %v893_v32 = vshll.u32 %v777_v60, 16  ;;  %v886_v33 = vrot.slane %v884_v22, 6  ;;  %v3457_v56 = vld [vmem:[%s4196_s1 + $0x298] sm:$0xff]   ;;  %v3460_v9 = vld [vmem:[%s4196_s1 + $0x220] sm:$0xff]  }
  0x4e   :  { %3267 = vmatprep.subr.bf16.mxu0 %v3446_v27  ;;  %3295 = vmatprep.subr.bf16.mxu1 %v3447_v28  ;;  %v3453_v20 = vld [vmem:[%s4196_s1 + $0x290] sm:$0xff]   ;;  %v876_v27 = vor.u32 %v875_v17, %v872_v16  ;;  %v881_v28 = vrot.slane %v879_v11, 7  ;;  %v889_v34 = vrot.slane %v887_v24, 7  ;;  %v854_v42 = vsel %vm3850_vm6, %v849_v13, %v853_v14  ;;  %v3462_v13 = vld [vmem:[%s4196_s1 + $0x268] sm:$0xff]  }
  0x4f   :  { %v863_v43 = vrot.slane %v862_v26, 2  ;;  %v895_v50 = vrot.slane %v893_v32, 7  ;;  %v3463_v14 = vld [vmem:[%s4196_s1 + $0x2e8] sm:$0xff]   ;;  %v3467_v26 = vld [vmem:[%s4196_s1 + $0x2f0] sm:$0xff]  }
  0x50   :  { %v877_v47 = vrot.slane %v876_v27, 2  ;;  %v890_v48 = vor.u32 %v889_v34, %v886_v33  ;;  %v3464_v15 = vld [vmem:[%s4196_s1 + $0x228] sm:$0xff]   ;;  %v3469_v32 = vld [vmem:[%s4196_s1 + $0x2b0] sm:$0xff]   ;;  %v3470_v27 = vld [vmem:[%s4196_s1 + $0x278] sm:$0xff]  }
  0x51   :  { %3268 = vmatpush3.bf16.msra.mxu0 %v3448_v57  ;;  %3296 = vmatpush3.bf16.msra.mxu1 %v3449_v58  ;;  %v3949_v54 = vsel %vm3850_vm6, %v863_v43, %v867_v30  ;;  %v3468_v30 = vld [vmem:[%s4196_s1 + $0x230] sm:$0xff]   ;;  %v3472_v33 = vld [vmem:[%s4196_s1 + $0x238] sm:$0xff]   ;;  %v1576_v43 = vrot.slane %v2966_v45, %v3621_v38 }
  0x52   :  { %3269 = vmatprep.subr.bf16.mxu0 %v3450_v8  ;;  %3297 = vmatprep.subr.bf16.mxu1 %v3451_v12  ;;  %v3956_v57 = vsel %vm3850_vm6, %v877_v47, %v881_v28  ;;  %v891_v58 = vrot.slane %v890_v48, 2  ;;  %v1002_v59 = vcombine.low %v854_v42, %v3949_v54  ;;  %v1003_v60 = vcombine.high %v854_v42, %v3949_v54  ;;  %v3471_v28 = vld [vmem:[%s4196_s1 + $0x2f8] sm:$0xff]  }
  0x53   :  { %v3473_v34 = vld [vmem:[%s4196_s1 + $0x2b8] sm:$0xff]   ;;  %v1583_v48 = vrot.slane %v2967_v55, %v3621_v38  ;;  %v3477_v55 = vld [vmem:[%s4196_s1 + $0x380] sm:$0xff]  }
  0x54   :  { %v3968_v1 = vsel %vm3850_vm6, %v891_v58, %v895_v50  ;;  %v1012_v3 = vrot.slane %v1002_v59, %v3621_v38  ;;  %v1019_v8 = vrot.slane %v1003_v60, %v3621_v38  ;;  %v3479_v58 = vld [vmem:[%s4196_s1 + $0x3c8] sm:$0xff]  }
  0x55   :  { %3270 = vmatpush3.bf16.msra.mxu0 %v3452_v18  ;;  %3298 = vmatpush3.bf16.msra.mxu1 %v3453_v20  ;;  %v1004_v2 = vcombine.low %v3956_v57, %v3968_v1  ;;  %v1005_v4 = vcombine.high %v3956_v57, %v3968_v1  ;;  %v3465_v18 = vld [vmem:[%s4196_s1 + $0x2a8] sm:$0xff]   ;;  %v3466_v20 = vld [vmem:[%s4196_s1 + $0x270] sm:$0xff]  }
  0x56   :  { %3271 = vmatprep.subr.bf16.mxu0 %v3454_v37  ;;  %3299 = vmatprep.subr.bf16.mxu1 %v3455_v46  ;;  %v2892_v37 = vld.sshfl [vmem:[%s4197_s0 + $0x40] sm:$0xf pattern:$0x76325410]  ;;  %v3480_v59 = vld [vmem:[%s4196_s1 + $0x308] sm:$0xff]  }
  0x57   :  { %v1026_v11 = vrot.slane %v1004_v2, %v3621_v38  ;;  %v1033_v12 = vrot.slane %v1005_v4, %v3621_v38  ;;  %v2968_v42 = vcombine.low %v3643_v44, %v2892_v37  ;;  %v2893_v46 = vld.sshfl [vmem:[%s4197_s0 + $0x48] sm:$0xf pattern:$0x76325410]  ;;  %v3474_v44 = vld [vmem:[%s4196_s1 + $0x340] sm:$0xff]   ;;  %v3504_v37 = vld [vmem:[%s4196_s1 + $0x338] sm:$0xff]  }
  0x58   :  { %v2969_v47 = vcombine.low %v3668_v53, %v2893_v46  ;;  %v3476_v53 = vld [vmem:[%s4196_s1 + $0x300] sm:$0xff]   ;;  %v3481_v60 = vld [vmem:[%s4196_s1 + $0x388] sm:$0xff]   ;;  %v2901_v4 = vld.sshfl [vmem:[%s4197_s0 + $0x98] sm:$0xf pattern:$0x76325410] }
  0x59   :  { %3272 = vmatpush3.bf16.msra.mxu0 %v3456_v52  ;;  %3300 = vmatpush3.bf16.msra.mxu1 %v3457_v56  ;;  %v1035_v16 = vcombine.high %v1012_v3, %v1026_v11  ;;  %v1037_v17 = vcombine.high %v1019_v8, %v1033_v12  ;;  %v1034_v22 = vcombine.low %v1012_v3, %v1026_v11  ;;  %v3478_v56 = vld [vmem:[%s4196_s1 + $0x348] sm:$0xff]   ;;  %v3486_v11 = vld [vmem:[%s4196_s1 + $0x358] sm:$0xff]  }
  0x5a   :  { %3273 = vmatprep.subr.bf16.mxu0 %v3458_v61  ;;  %3301 = vmatprep.subr.bf16.mxu1 %v3459_v62  ;;  %v1036_v24 = vcombine.low %v1019_v8, %v1033_v12  ;;  %v1590_v39 = vrot.slane %v2968_v42, %v3621_v38  ;;  %v1597_v45 = vrot.slane %v2969_v47, %v3621_v38  ;;  %v2900_v61 = vld.sshfl [vmem:[%s4197_s0 + $0x90] sm:$0xf pattern:$0x76325410]  ;;  %v3487_v12 = vld [vmem:[%s4196_s1 + $0x3d8] sm:$0xff]  }
  0x5b   :  { %1278 = vmatprep.mubr.bf16.mxu0 %v1035_v16  ;;  %1327 = vmatprep.mubr.bf16.mxu1 %v1037_v17  ;;  %v3482_v62 = vld [vmem:[%s4196_s1 + $0x350] sm:$0xff]   ;;  %v2972_v2 = vcombine.low %v3756_v23, %v2900_v61  ;;  %v1612_v3 = vrot.slane %v2970_v25, %v3621_v38  ;;  %v2973_v8 = vcombine.low %v3790_v35, %v2901_v4  ;;  %v3491_v16 = vld [vmem:[%s4196_s1 + $0x3e0] sm:$0xff]   ;;  %v3029_v46 = vld.sshfl [vmem:[%s4197_s0 + $0x48] sm:$0x5f pattern:$0x76325410] }
  0x5c   :  { %1279 = vmatmul.mubr.bf16.gmra.mrb[12].mxu0 %v1034_v22  ;;  %1328 = vmatmul.mubr.bf16.gmra.mrb[12].mxu1 %v1036_v24  ;;  %v1598_v49 = vcombine.low %v1576_v43, %v1590_v39  ;;  %v1599_v51 = vcombine.high %v1576_v43, %v1590_v39  ;;  %v1600_v50 = vcombine.low %v1583_v48, %v1597_v45  ;;  %v3484_v25 = vld [vmem:[%s4196_s1 + $0x310] sm:$0xff]   ;;  %v3492_v17 = vld [vmem:[%s4196_s1 + $0x320] sm:$0xff]   ;;  %v3494_v24 = vld [vmem:[%s4196_s1 + $0x368] sm:$0xff]  }
  0x5d   :  { %3274 = vmatpush3.bf16.msra.mxu0 %v3460_v9  ;;  %3302 = vmatpush3.bf16.msra.mxu1 %v3461_v10  ;;  %v1601_v52 = vcombine.high %v1583_v48, %v1597_v45  ;;  %v1619_v9 = vrot.slane %v2971_v36, %v3621_v38  ;;  %v1626_v23 = vrot.slane %v2972_v2, %v3621_v38  ;;  %v3493_v22 = vld [vmem:[%s4196_s1 + $0x3a0] sm:$0xff]   ;;  %v3505_v43 = vld [vmem:[%s4196_s1 + $0x3b8] sm:$0xff]  }
  0x5e   :  { %3275 = vmatprep.subr.bf16.mxu0 %v3462_v13  ;;  %3303 = vmatprep.subr.bf16.mxu1 %v3463_v14  ;;  %v1633_v21 = vrot.slane %v2973_v8, %v3621_v38  ;;  %v3488_v13 = vld [vmem:[%s4196_s1 + $0x318] sm:$0xff]   ;;  %v3028_v42 = vld.sshfl [vmem:[%s4197_s0 + $0x40] sm:$0x5f pattern:$0x76325410] }
  0x5f   :  { %1870 = vmatprep.mubr.bf16.mxu0 %v1599_v51  ;;  %1919 = vmatprep.mubr.bf16.mxu1 %v1601_v52  ;;  %v1635_v35 = vcombine.high %v1612_v3, %v1626_v23  ;;  %v1634_v10 = vcombine.low %v1612_v3, %v1626_v23  ;;  %v3489_v14 = vld [vmem:[%s4196_s1 + $0x398] sm:$0xff]   ;;  %v2038_v47 = vcombine.low %v3028_v42, %v3029_v46 }
  0x60   :  { %v1637_v31 = vcombine.high %v1619_v9, %v1633_v21  ;;  %v1636_v36 = vcombine.low %v1619_v9, %v1633_v21  ;;  %v2039_v48 = vcombine.high %v3028_v42, %v3029_v46  ;;  %v3037_v39 = vld.sshfl [vmem:[%s4197_s0 + $0x98] sm:$0x5f pattern:$0x76325410]  ;;  %v2295_v9 = vrot.slane %v2285_v5, %v3621_v38 }
  0x61   :  { %3276 = vmatpush3.bf16.msra.mxu0 %v3464_v15  ;;  %3304 = vmatpush3.bf16.msra.mxu1 %v3465_v18  ;;  %v3490_v15 = vld [vmem:[%s4196_s1 + $0x360] sm:$0xff]   ;;  %v3495_v18 = vld [vmem:[%s4196_s1 + $0x3e8] sm:$0xff]   ;;  %v2150_v45 = vshll.u32 %v2038_v47, 16  ;;  %v2321_v23 = vcombine.low %v3949_v54, %v3956_v57 }
  0x62   :  { %3277 = vmatprep.subr.bf16.mxu0 %v3466_v20  ;;  %3305 = vmatprep.subr.bf16.mxu1 %v3467_v26  ;;  %v3496_v20 = vld [vmem:[%s4196_s1 + $0x328] sm:$0xff]  }
  0x63   :  { %v3497_v26 = vld [vmem:[%s4196_s1 + $0x3a8] sm:$0xff]  }
  0x65   :  { %3278 = vmatpush3.bf16.msra.mxu0 %v3468_v30  ;;  %3306 = vmatpush3.bf16.msra.mxu1 %v3469_v32  ;;  %v3498_v30 = vld [vmem:[%s4196_s1 + $0x370] sm:$0xff]  }
  0x66   :  { %3279 = vmatprep.subr.bf16.mxu0 %v3470_v27  ;;  %3307 = vmatprep.subr.bf16.mxu1 %v3471_v28  ;;  %v3499_v32 = vld [vmem:[%s4196_s1 + $0x3f0] sm:$0xff]  }
  0x67   :  { %v3500_v27 = vld [vmem:[%s4196_s1 + $0x330] sm:$0xff]  }
  0x68   :  { %v3501_v28 = vld [vmem:[%s4196_s1 + $0x3b0] sm:$0xff]  }
  0x69   :  { %3280 = vmatpush3.bf16.msra.mxu0 %v3472_v33  ;;  %3308 = vmatpush3.bf16.msra.mxu1 %v3473_v34  ;;  %v3502_v33 = vld [vmem:[%s4196_s1 + $0x378] sm:$0xff]  }
  0x6a   :  { %3321 = vmatprep.subr.bf16.mxu0 %v3474_v44  ;;  %3349 = vmatprep.subr.bf16.mxu1 %v3475_v40  ;;  %v3503_v34 = vld [vmem:[%s4196_s1 + $0x3f8] sm:$0xff]   ;;  %v3036_v44 = vld.sshfl [vmem:[%s4197_s0 + $0x90] sm:$0x5f pattern:$0x76325410]  ;;  %v2147_v40 = vshrl.u32 %v2038_v47, 16 }
  0x6b   :  { %v2103_v51 = vcombine.high %v3036_v44, %v3037_v39 }
  0x6c   :  { %1871 = vmatmul.mubr.bf16.vlgmr.msra.gmra.mrb[16].mxu0 %v1598_v49  ;;  %1920 = vmatmul.mubr.bf16.vlgmr.msra.gmra.mrb[16].mxu1 %v1600_v50  ;;  %v2102_v49 = vcombine.low %v3036_v44, %v3037_v39  ;;  %v2152_v50 = vrot.slane %v2150_v45, 7 }
  0x6d   :  { %3322 = vmatpush3.bf16.msra.mxu0 %v3476_v53  ;;  %3350 = vmatpush3.bf16.msra.mxu1 %v3477_v55  ;;  %v2156_v53 = vshll.u32 %v2039_v48, 16  ;;  %v2149_v55 = vrot.slane %v2147_v40, 6 }
  0x6e   :  { %3323 = vmatprep.subr.bf16.mxu0 %v3478_v56  ;;  %3351 = vmatprep.subr.bf16.mxu1 %v3479_v58  ;;  %v2203_v52 = vshrl.u32 %v2102_v49, 16  ;;  %v2206_v56 = vshll.u32 %v2102_v49, 16  ;;  %v2212_v58 = vshll.u32 %v2103_v51, 16 }
  0x6f   :  { %1878 = vmatprep.mubr.bf16.mxu0 %v1635_v35  ;;  %1927 = vmatprep.mubr.bf16.mxu1 %v1637_v31  ;;  %v2302_v35 = vrot.slane %v2286_v6, %v3621_v38 }
  0x70   :  { %v2205_v61 = vrot.slane %v2203_v52, 6  ;;  %v2214_v4 = vrot.slane %v2212_v58, 7 }
  0x71   :  { %3324 = vmatpush3.bf16.msra.mxu0 %v3480_v59  ;;  %3352 = vmatpush3.bf16.msra.mxu1 %v3481_v60  ;;  %v2153_v59 = vor.u32 %v2152_v50, %v2149_v55  ;;  %v2158_v60 = vrot.slane %v2156_v53, 7 }
  0x72   :  { %3325 = vmatprep.subr.bf16.mxu0 %v3482_v62  ;;  %3353 = vmatprep.subr.bf16.mxu1 %v3483_v19  ;;  %v2208_v62 = vrot.slane %v2206_v56, 7  ;;  %v2322_v19 = vcombine.high %v3949_v54, %v3956_v57  ;;  %v2331_v54 = vrot.slane %v2321_v23, %v3621_v38 }
  0x73   :  { %v2154_v2 = vrot.slane %v2153_v59, 2 }
  0x74   :  { %1879 = vmatmul.mubr.bf16.gmra.mrb[20].mxu0 %v1634_v10  ;;  %1928 = vmatmul.mubr.bf16.gmra.mrb[20].mxu1 %v1636_v36  ;;  %v2209_v3 = vor.u32 %v2208_v62, %v2205_v61 }
  0x75   :  { %3326 = vmatpush3.bf16.msra.mxu0 %v3484_v25  ;;  %3354 = vmatpush3.bf16.msra.mxu1 %v3485_v29  ;;  %v2159_v8 = vsel %vm3850_vm6, %v2154_v2, %v2158_v60 }
  0x76   :  { %3327 = vmatprep.subr.bf16.mxu0 %v3486_v11  ;;  %3355 = vmatprep.subr.bf16.mxu1 %v3487_v12  ;;  %v2287_v21 = vcombine.low %v3875_v7, %v2159_v8  ;;  %v2288_v25 = vcombine.high %v3875_v7, %v2159_v8  ;;  %v2210_v10 = vrot.slane %v2209_v3, 2  ;;  %v2338_v7 = vrot.slane %v2322_v19, %v3621_v38 }
  0x78   :  { %v2309_v29 = vrot.slane %v2287_v21, %v3621_v38  ;;  %v2316_v5 = vrot.slane %v2288_v25, %v3621_v38  ;;  %v2215_v31 = vsel %vm3850_vm6, %v2210_v10, %v2214_v4 }
  0x79   :  { %3328 = vmatpush3.bf16.msra.mxu0 %v3488_v13  ;;  %3356 = vmatpush3.bf16.msra.mxu1 %v3489_v14  ;;  %v2323_v36 = vcombine.low %v3968_v1, %v2215_v31  ;;  %v2324_v57 = vcombine.high %v3968_v1, %v2215_v31 }
  0x7a   :  { %3329 = vmatprep.subr.bf16.mxu0 %v3490_v15  ;;  %3357 = vmatprep.subr.bf16.mxu1 %v3491_v16  ;;  %v2317_v11 = vcombine.low %v2295_v9, %v2309_v29  ;;  %v2318_v12 = vcombine.high %v2295_v9, %v2309_v29  ;;  %v2319_v63 = vcombine.low %v2302_v35, %v2316_v5 }
  0x7b   :  { %v2320_v0 = vcombine.high %v2302_v35, %v2316_v5  ;;  %v2345_v6 = vrot.slane %v2323_v36, %v3621_v38  ;;  %v2352_v13 = vrot.slane %v2324_v57, %v3621_v38 }
  0x7c   :  { %2589 = vmatprep.mubr.bf16.mxu0 %v2318_v12 }
  0x7d   :  { %3330 = vmatpush3.bf16.msra.mxu0 %v3492_v17  ;;  %3358 = vmatpush3.bf16.msra.mxu1 %v3493_v22  ;;  %v2354_v41 = vcombine.high %v2331_v54, %v2345_v6  ;;  %v2356_v14 = vcombine.high %v2338_v7, %v2352_v13  ;;  %v2353_v15 = vcombine.low %v2331_v54, %v2345_v6 }
  0x7e   :  { %3331 = vmatprep.subr.bf16.mxu0 %v3494_v24  ;;  %3359 = vmatprep.subr.bf16.mxu1 %v3495_v18  ;;  %v2355_v1 = vcombine.low %v2338_v7, %v2352_v13 }
  0x7f   :  { %2638 = vmatprep.mubr.bf16.mxu1 %v2320_v0 }
  0x81   :  { %3332 = vmatpush3.bf16.msra.mxu0 %v3496_v20  ;;  %3360 = vmatpush3.bf16.msra.mxu1 %v3497_v26 }
  0x82   :  { %3333 = vmatprep.subr.bf16.mxu0 %v3498_v30  ;;  %3361 = vmatprep.subr.bf16.mxu1 %v3499_v32 }
  0x85   :  { %3334 = vmatpush3.bf16.msra.mxu0 %v3500_v27  ;;  %3362 = vmatpush3.bf16.msra.mxu1 %v3501_v28 }
  0x86   :  { %3335 = vmatprep.subr.bf16.mxu0 %v3502_v33  ;;  %3363 = vmatprep.subr.bf16.mxu1 %v3503_v34 }
  0x89   :  { %3336 = vmatpush3.bf16.msra.mxu0 %v3504_v37  ;;  %3364 = vmatpush3.bf16.msra.mxu1 %v3505_v43 }
  0x8c   :  { %2590 = vmatmul.mubr.bf16.vlgmr.msra.gmra.mrb[24].mxu0 %v2317_v11  ;;  %2639 = vmatmul.mubr.bf16.vlgmr.msra.gmra.mrb[24].mxu1 %v2319_v63 }
  0x8d   :  { %2597 = vmatprep.mubr.bf16.mxu0 %v2354_v41  ;;  %2646 = vmatprep.mubr.bf16.mxu1 %v2356_v14 }
  0x94   :  { %2598 = vmatmul.mubr.bf16.gmra.mrb[28].mxu0 %v2353_v15  ;;  %2647 = vmatmul.mubr.bf16.gmra.mrb[28].mxu1 %v2355_v1 }
  0xf6   :  { %v3169_v16 = vpop.f32.mrb[0].mxu0 }
  0xf7   :  { %v3170_v17 = vpop.f32.mrb[1].mxu0  ;;  %v3197_v20 = vpop.f32.mrb[0].mxu1 }
  0xf8   :  { %v3171_v22 = vadd.f32 %v3170_v17, %v3169_v16  ;;  %v3172_v24 = vpop.f32.mrb[2].mxu0  ;;  %v3198_v38 = vpop.f32.mrb[1].mxu1 }
  0xf9   :  { %v3173_v18 = vpop.f32.mrb[3].mxu0  ;;  %v3199_v30 = vadd.f32 %v3198_v38, %v3197_v20  ;;  %v3200_v32 = vpop.f32.mrb[2].mxu1 }
  0xfa   :  { %v3174_v26 = vadd.f32 %v3173_v18, %v3172_v24  ;;  %v3201_v27 = vpop.f32.mrb[3].mxu1 }
  0xfb   :  { %v596_v28 = vadd.f32 %v3199_v30, %v3171_v22  ;;  %v3202_v33 = vadd.f32 %v3201_v27, %v3200_v32 }
  0xfd   :  { %v599_v34 = vadd.f32 %v3202_v33, %v3174_v26 }
  0xfe   :  { %v3175_v37 = vpop.f32.mrb[4].mxu0 }
  0xff   :  { %v3176_v42 = vpop.f32.mrb[5].mxu0  ;;  %v3203_v48 = vpop.f32.mrb[4].mxu1 }
 0x100   :  { %v3177_v43 = vadd.f32 %v3176_v42, %v3175_v37  ;;  %v3178_v46 = vpop.f32.mrb[6].mxu0  ;;  %v3204_v39 = vpop.f32.mrb[5].mxu1 }
 0x101   :  { %v3179_v47 = vpop.f32.mrb[7].mxu0  ;;  %v3205_v40 = vadd.f32 %v3204_v39, %v3203_v48  ;;  %v3206_v45 = vpop.f32.mrb[6].mxu1 }
 0x102   :  { %v3180_v44 = vadd.f32 %v3179_v47, %v3178_v46  ;;  %v3207_v53 = vpop.f32.mrb[7].mxu1 }
 0x103   :  { %v604_v49 = vadd.f32 %v3205_v40, %v3177_v43  ;;  %v3208_v51 = vadd.f32 %v3207_v53, %v3206_v45 }
 0x105   :  { %v607_v55 = vadd.f32 %v3208_v51, %v3180_v44 }
 0x11f   :  { %v3225_v50 = vpop.f32.mrb[8].mxu0  ;;  %v3253_v52 = vpop.f32.mrb[8].mxu1 }
 0x120   :  { %v3226_v56 = vpop.f32.mrb[9].mxu0  ;;  %v3254_v58 = vpop.f32.mrb[9].mxu1 }
 0x121   :  { %v3227_v59 = vadd.f32 %v3226_v56, %v3225_v50  ;;  %v3255_v60 = vadd.f32 %v3254_v58, %v3253_v52  ;;  %v3228_v61 = vpop.f32.mrb[10].mxu0  ;;  %v3256_v62 = vpop.f32.mrb[10].mxu1 }
 0x122   :  { %v3229_v2 = vpop.f32.mrb[11].mxu0  ;;  %v3257_v3 = vpop.f32.mrb[11].mxu1 }
 0x123   :  { %v1322_v4 = vadd.f32 %v3255_v60, %v3227_v59  ;;  %v3230_v8 = vadd.f32 %v3229_v2, %v3228_v61  ;;  %v3258_v9 = vadd.f32 %v3257_v3, %v3256_v62 }
 0x125   :  { %v1336_v23 = vadd.f32 %v1322_v4, %v596_v28  ;;  %v1325_v19 = vadd.f32 %v3258_v9, %v3230_v8 }
 0x127   :  { %v1337_v21 = vadd.f32 %v1325_v19, %v599_v34 }
 0x12f   :  { %v3231_v25 = vpop.f32.mrb[12].mxu0  ;;  %v3259_v35 = vpop.f32.mrb[12].mxu1 }
 0x130   :  { %v3232_v10 = vpop.f32.mrb[13].mxu0  ;;  %v3260_v29 = vpop.f32.mrb[13].mxu1 }
 0x131   :  { %v3233_v5 = vadd.f32 %v3232_v10, %v3231_v25  ;;  %v3261_v31 = vadd.f32 %v3260_v29, %v3259_v35  ;;  %v3234_v36 = vpop.f32.mrb[14].mxu0  ;;  %v3262_v54 = vpop.f32.mrb[14].mxu1 }
 0x132   :  { %v3235_v57 = vpop.f32.mrb[15].mxu0  ;;  %v3263_v7 = vpop.f32.mrb[15].mxu1 }
 0x133   :  { %v1330_v11 = vadd.f32 %v3261_v31, %v3233_v5  ;;  %v3236_v12 = vadd.f32 %v3235_v57, %v3234_v36  ;;  %v3264_v63 = vadd.f32 %v3263_v7, %v3262_v54 }
 0x135   :  { %v1338_v0 = vadd.f32 %v1330_v11, %v604_v49  ;;  %v1333_v6 = vadd.f32 %v3264_v63, %v3236_v12 }
 0x137   :  { %v1339_v13 = vadd.f32 %v1333_v6, %v607_v55 }
 0x13f   :  { %v3281_v41 = vpop.f32.mrb[16].mxu0  ;;  %v3309_v14 = vpop.f32.mrb[16].mxu1 }
 0x140   :  { %v3282_v15 = vpop.f32.mrb[17].mxu0  ;;  %v3310_v1 = vpop.f32.mrb[17].mxu1 }
 0x141   :  { %v3283_v16 = vadd.f32 %v3282_v15, %v3281_v41  ;;  %v3311_v17 = vadd.f32 %v3310_v1, %v3309_v14  ;;  %v3284_v22 = vpop.f32.mrb[18].mxu0  ;;  %v3312_v24 = vpop.f32.mrb[18].mxu1 }
 0x142   :  { %v3285_v18 = vpop.f32.mrb[19].mxu0  ;;  %v3313_v20 = vpop.f32.mrb[19].mxu1 }
 0x143   :  { %v1922_v26 = vadd.f32 %v3311_v17, %v3283_v16  ;;  %v3286_v38 = vadd.f32 %v3285_v18, %v3284_v22  ;;  %v3314_v30 = vadd.f32 %v3313_v20, %v3312_v24 }
 0x145   :  { %v1936_v32 = vadd.f32 %v1922_v26, %v1336_v23  ;;  %v1925_v27 = vadd.f32 %v3314_v30, %v3286_v38 }
 0x147   :  { %v1937_v28 = vadd.f32 %v1925_v27, %v1337_v21  ;;  %v3287_v33 = vpop.f32.mrb[20].mxu0  ;;  %v3315_v34 = vpop.f32.mrb[20].mxu1 }
 0x148   :  { %v3288_v37 = vpop.f32.mrb[21].mxu0  ;;  %v3316_v43 = vpop.f32.mrb[21].mxu1 }
 0x149   :  { %v3289_v42 = vadd.f32 %v3288_v37, %v3287_v33  ;;  %v3290_v46 = vpop.f32.mrb[22].mxu0  ;;  %v3317_v47 = vadd.f32 %v3316_v43, %v3315_v34  ;;  %v3318_v48 = vpop.f32.mrb[22].mxu1 }
 0x14a   :  { %v3291_v44 = vpop.f32.mrb[23].mxu0  ;;  %v3319_v40 = vpop.f32.mrb[23].mxu1 }
 0x14b   :  { %v3292_v39 = vadd.f32 %v3291_v44, %v3290_v46  ;;  %v1930_v45 = vadd.f32 %v3317_v47, %v3289_v42  ;;  %v3320_v53 = vadd.f32 %v3319_v40, %v3318_v48 }
 0x14d   :  { %v1938_v49 = vadd.f32 %v1930_v45, %v1338_v0  ;;  %v1933_v51 = vadd.f32 %v3320_v53, %v3292_v39 }
 0x14f   :  { %v1939_v55 = vadd.f32 %v1933_v51, %v1339_v13 }
 0x15f   :  { %v3337_v50 = vpop.f32.mrb[24].mxu0  ;;  %v3365_v52 = vpop.f32.mrb[24].mxu1 }
 0x160   :  { %v3338_v56 = vpop.f32.mrb[25].mxu0  ;;  %v3366_v58 = vpop.f32.mrb[25].mxu1 }
 0x161   :  { %v3339_v59 = vadd.f32 %v3338_v56, %v3337_v50  ;;  %v3367_v60 = vadd.f32 %v3366_v58, %v3365_v52  ;;  %v3340_v61 = vpop.f32.mrb[26].mxu0  ;;  %v3368_v62 = vpop.f32.mrb[26].mxu1 }
 0x162   :  { %v3341_v2 = vpop.f32.mrb[27].mxu0  ;;  %v3369_v3 = vpop.f32.mrb[27].mxu1 }
 0x163   :  { %v2641_v4 = vadd.f32 %v3367_v60, %v3339_v59  ;;  %v3342_v8 = vadd.f32 %v3341_v2, %v3340_v61  ;;  %v3370_v9 = vadd.f32 %v3369_v3, %v3368_v62 }
 0x165   :  { %v2655_v23 = vadd.f32 %v2641_v4, %v1936_v32  ;;  %v2644_v19 = vadd.f32 %v3370_v9, %v3342_v8 }
 0x167   :  { %v2670_v21 = vmul.f32 0.2, %v2655_v23  ;;  %v2656_v25 = vadd.f32 %v2644_v19, %v1937_v28  ;;  %v3343_v35 = vpop.f32.mrb[28].mxu0  ;;  %v3371_v10 = vpop.f32.mrb[28].mxu1 }
 0x168   :  { %v3344_v29 = vpop.f32.mrb[29].mxu0  ;;  %v3372_v5 = vpop.f32.mrb[29].mxu1 }
 0x169   :  { %v2671_v31 = vmul.f32 0.2, %v2656_v25  ;;  %v3345_v36 = vadd.f32 %v3344_v29, %v3343_v35  ;;  %v3373_v54 = vadd.f32 %v3372_v5, %v3371_v10  ;;  %v3346_v57 = vpop.f32.mrb[30].mxu0  ;;  %v3374_v7 = vpop.f32.mrb[30].mxu1  ;;  %v2674_v11 = vmax.f32 %v2655_v23, %v2670_v21 }
 0x16a   :  { %v3347_v12 = vpop.f32.mrb[31].mxu0  ;;  %v3375_v63 = vpop.f32.mrb[31].mxu1 }
 0x16b   :  { %v2675_v0 = vmax.f32 %v2656_v25, %v2671_v31  ;;  %v2649_v6 = vadd.f32 %v3373_v54, %v3345_v36  ;;  %v3348_v13 = vadd.f32 %v3347_v12, %v3346_v57  ;;  %v3376_v41 = vadd.f32 %v3375_v63, %v3374_v7 }
 0x16d   :  { %v3145_v14 = vpack.c.bf16 %v2675_v0, %v2674_v11  ;;  %v2657_v15 = vadd.f32 %v2649_v6, %v1938_v49  ;;  %v2652_v1 = vadd.f32 %v3376_v41, %v3348_v13 }
 0x16f   :  { %3146 = vst [vmem:[%s4198_s2] sm:$0xff] %v3145_v14   ;;  %v2672_v16 = vmul.f32 0.2, %v2657_v15  ;;  %v2658_v17 = vadd.f32 %v2652_v1, %v1939_v55 }
 0x171   :  { %v2673_v22 = vmul.f32 0.2, %v2658_v17  ;;  %v2676_v24 = vmax.f32 %v2657_v15, %v2672_v16 }
 0x173   :  { %v2677_v18 = vmax.f32 %v2658_v17, %v2673_v22 }
 0x175   :  { %v3150_v20 = vpack.c.bf16 %v2677_v18, %v2676_v24 }
 0x177   :  { %3152 = vst [vmem:[%s4198_s2 + $0x8] sm:$0xff] %v3150_v20  }

// kernel: _lambda_.5
= control target key start
LH: loop header
LB: loop body
LE: loop exit
PB: predicated region body
PF: predicated region fallthrough
CT: control target
= control target key end

     0   :  { %10 = vsyncpa [#allocation4], 0  ;;  %v4580_v36 = vmov 1966171168   ;;  %v545_v38 = vlaneseq  ;;  %s5910_s0 = inlined_call_operand.vmem [shape: bf16[2,2048], index: 0, kind: input, shape index: {}]   ;;  %s5911_s1 = inlined_call_operand.vmem [shape: bf16[2048,384], index: 1, kind: input, shape index: {}]   ;;  %s5912_s2 = inlined_call_operand.vmem [shape: f32[2,128], index: 2, kind: input, shape index: {}]   ;;  %s5913_s3 = inlined_call_operand.hbm [shape: f32[2,128], index: 3, kind: output, shape index: {0}]   ;;  %s5914_s4 = inlined_call_operand.hbm [shape: f32[2,128], index: 4, kind: output, shape index: {1}]  }
   0x1   :  { %v4016_v0 = vld [vmem:[%s5911_s1 + $0x4] ss:$12 sps:$4 sm:$0xff]   ;;  %v4020_v2 = vld [vmem:[%s5911_s1] ss:$12 sps:$4 sm:$0xff]   ;;  %v4022_v4 = vld [vmem:[%s5911_s1 + $0x1c] ss:$12 sps:$4 sm:$0xff]   ;;  %v543_v37 = vunpack.c.l.s4 %v4580_v36 }
   0x2   :  { %v4018_v1 = vld [vmem:[%s5911_s1 + $0x304] ss:$12 sps:$4 sm:$0xff]   ;;  %2703 = vmatprep.subr.bf16.mxu1 %v4016_v0  ;;  %v4021_v3 = vld [vmem:[%s5911_s1 + $0x300] ss:$12 sps:$4 sm:$0xff]   ;;  %v4024_v5 = vld [vmem:[%s5911_s1 + $0x31c] ss:$12 sps:$4 sm:$0xff]  }
   0x3   :  { %2785 = vmatprep.subr.bf16.mxu0 %v4018_v1  ;;  %2704 = vmatpush1.bf16.msra.mxu1 %v4020_v2  ;;  %v4026_v6 = vld [vmem:[%s5911_s1 + $0x18] ss:$12 sps:$4 sm:$0xff]   ;;  %v4028_v8 = vld [vmem:[%s5911_s1 + $0x34] ss:$12 sps:$4 sm:$0xff]   ;;  %v4032_v10 = vld [vmem:[%s5911_s1 + $0x30] ss:$12 sps:$4 sm:$0xff]   ;;  %v544_v42 = vunpack.c.0.s8 %v543_v37 }
   0x4   :  { %2786 = vmatpush1.bf16.msra.mxu0 %v4021_v3  ;;  %2705 = vmatprep.subr.bf16.mxu1 %v4022_v4  ;;  %v4027_v7 = vld [vmem:[%s5911_s1 + $0x318] ss:$12 sps:$4 sm:$0xff]   ;;  %v4030_v9 = vld [vmem:[%s5911_s1 + $0x334] ss:$12 sps:$4 sm:$0xff]   ;;  %v4033_v11 = vld [vmem:[%s5911_s1 + $0x330] ss:$12 sps:$4 sm:$0xff]  }
   0x5   :  { %2787 = vmatprep.subr.bf16.mxu0 %v4024_v5  ;;  %v4034_v12 = vld [vmem:[%s5911_s1 + $0x4c] ss:$12 sps:$4 sm:$0xff]   ;;  %v4038_v14 = vld [vmem:[%s5911_s1 + $0x48] ss:$12 sps:$4 sm:$0xff]   ;;  %v4040_v16 = vld [vmem:[%s5911_s1 + $0x64] ss:$12 sps:$4 sm:$0xff]  }
   0x6   :  { %v4036_v13 = vld [vmem:[%s5911_s1 + $0x34c] ss:$12 sps:$4 sm:$0xff]   ;;  %v4039_v15 = vld [vmem:[%s5911_s1 + $0x348] ss:$12 sps:$4 sm:$0xff]   ;;  %v4042_v17 = vld [vmem:[%s5911_s1 + $0x364] ss:$12 sps:$4 sm:$0xff]  }
   0x7   :  { %2706 = vmatpush1.bf16.msra.mxu1 %v4026_v6  ;;  %v4044_v18 = vld [vmem:[%s5911_s1 + $0x60] ss:$12 sps:$4 sm:$0xff]   ;;  %v4046_v20 = vld [vmem:[%s5911_s1 + $0x7c] ss:$12 sps:$4 sm:$0xff]   ;;  %v4050_v22 = vld [vmem:[%s5911_s1 + $0x78] ss:$12 sps:$4 sm:$0xff]  }
   0x8   :  { %2788 = vmatpush1.bf16.msra.mxu0 %v4027_v7  ;;  %2707 = vmatprep.subr.bf16.mxu1 %v4028_v8  ;;  %v4045_v19 = vld [vmem:[%s5911_s1 + $0x360] ss:$12 sps:$4 sm:$0xff]   ;;  %v4048_v21 = vld [vmem:[%s5911_s1 + $0x37c] ss:$12 sps:$4 sm:$0xff]   ;;  %v4051_v23 = vld [vmem:[%s5911_s1 + $0x378] ss:$12 sps:$4 sm:$0xff]  }
   0x9   :  { %2789 = vmatprep.subr.bf16.mxu0 %v4030_v9  ;;  %v4052_v24 = vld [vmem:[%s5911_s1 + $0x94] ss:$12 sps:$4 sm:$0xff]   ;;  %v4056_v26 = vld [vmem:[%s5911_s1 + $0x90] ss:$12 sps:$4 sm:$0xff]   ;;  %v4058_v28 = vld [vmem:[%s5911_s1 + $0xac] ss:$12 sps:$4 sm:$0xff]  }
   0xa   :  { %v4054_v25 = vld [vmem:[%s5911_s1 + $0x394] ss:$12 sps:$4 sm:$0xff]   ;;  %v4057_v27 = vld [vmem:[%s5911_s1 + $0x390] ss:$12 sps:$4 sm:$0xff]   ;;  %v4060_v29 = vld [vmem:[%s5911_s1 + $0x3ac] ss:$12 sps:$4 sm:$0xff]  }
   0xb   :  { %2708 = vmatpush1.bf16.msra.mxu1 %v4032_v10  ;;  %v4062_v30 = vld [vmem:[%s5911_s1 + $0xa8] ss:$12 sps:$4 sm:$0xff]   ;;  %v4064_v32 = vld [vmem:[%s5911_s1 + $0xc4] ss:$12 sps:$4 sm:$0xff]   ;;  %v4068_v34 = vld [vmem:[%s5911_s1 + $0xc0] ss:$12 sps:$4 sm:$0xff]  }
   0xc   :  { %2790 = vmatpush1.bf16.msra.mxu0 %v4033_v11  ;;  %2709 = vmatprep.subr.bf16.mxu1 %v4034_v12  ;;  %v4063_v31 = vld [vmem:[%s5911_s1 + $0x3a8] ss:$12 sps:$4 sm:$0xff]   ;;  %v4066_v33 = vld [vmem:[%s5911_s1 + $0x3c4] ss:$12 sps:$4 sm:$0xff]   ;;  %v4069_v35 = vld [vmem:[%s5911_s1 + $0x3c0] ss:$12 sps:$4 sm:$0xff]  }
   0xd   :  { %2791 = vmatprep.subr.bf16.mxu0 %v4036_v13  ;;  %v4070_v39 = vld [vmem:[%s5911_s1 + $0xdc] ss:$12 sps:$4 sm:$0xff]   ;;  %v4074_v41 = vld [vmem:[%s5911_s1 + $0xd8] ss:$12 sps:$4 sm:$0xff]   ;;  %v4727_v43 = vshrl.u32 %v545_v38, 7 }
   0xe   :  { %v4072_v40 = vld [vmem:[%s5911_s1 + $0x3dc] ss:$12 sps:$4 sm:$0xff]   ;;  %v4075_v44 = vld [vmem:[%s5911_s1 + $0x3d8] ss:$12 sps:$4 sm:$0xff]   ;;  %v4076_v45 = vld [vmem:[%s5911_s1 + $0xf4] ss:$12 sps:$4 sm:$0xff]  }
   0xf   :  { %2710 = vmatpush1.bf16.msra.mxu1 %v4038_v14  ;;  %v4078_v46 = vld [vmem:[%s5911_s1 + $0x3f4] ss:$12 sps:$4 sm:$0xff]   ;;  %v4080_v47 = vld [vmem:[%s5911_s1 + $0xf0] ss:$12 sps:$4 sm:$0xff]   ;;  %v4745_v49 = vsub.s32 %v544_v42, %v4727_v43  ;;  %v4082_v50 = vld [vmem:[%s5911_s1 + $0x10c] ss:$12 sps:$4 sm:$0xff]  }
  0x10   :  { %2792 = vmatpush1.bf16.msra.mxu0 %v4039_v15  ;;  %2711 = vmatprep.subr.bf16.mxu1 %v4040_v16  ;;  %v4081_v48 = vld [vmem:[%s5911_s1 + $0x3f0] ss:$12 sps:$4 sm:$0xff]   ;;  %v4084_v51 = vld [vmem:[%s5911_s1 + $0x40c] ss:$12 sps:$4 sm:$0xff]   ;;  %v25_v52 = vld [vmem:[%s5910_s0] sm:$0xff] }
  0x11   :  { %2793 = vmatprep.subr.bf16.mxu0 %v4042_v17  ;;  %v4086_v53 = vld [vmem:[%s5911_s1 + $0x108] ss:$12 sps:$4 sm:$0xff]   ;;  %v548_v54 = vrot.slane %v25_v52, %v4745_v49  ;;  %v541_v55 = vcombine.high %v25_v52, %v25_v52  ;;  %v4088_v57 = vld [vmem:[%s5911_s1 + $0x124] ss:$12 sps:$4 sm:$0xff]   ;;  %v4092_v61 = vld [vmem:[%s5911_s1 + $0x120] ss:$12 sps:$4 sm:$0xff]  }
  0x12   :  { %v4087_v56 = vld [vmem:[%s5911_s1 + $0x408] ss:$12 sps:$4 sm:$0xff]   ;;  %v4090_v58 = vld [vmem:[%s5911_s1 + $0x424] ss:$12 sps:$4 sm:$0xff]   ;;  %v4093_v0 = vld [vmem:[%s5911_s1 + $0x420] ss:$12 sps:$4 sm:$0xff]  }
  0x13   :  { %2712 = vmatpush1.bf16.msra.mxu1 %v4044_v18  ;;  %v556_v59 = vcombine.high %v548_v54, %v548_v54  ;;  %v555_v60 = vrot.slane %v541_v55, %v4745_v49  ;;  %v4094_v1 = vld [vmem:[%s5911_s1 + $0x13c] ss:$12 sps:$4 sm:$0xff]   ;;  %v4098_v4 = vld [vmem:[%s5911_s1 + $0x138] ss:$12 sps:$4 sm:$0xff]   ;;  %v4100_v6 = vld [vmem:[%s5911_s1 + $0x154] ss:$12 sps:$4 sm:$0xff]   ;;  %v4830_v17 = vrot.slane %v548_v54, %v4745_v49 }
  0x14   :  { %2794 = vmatpush1.bf16.msra.mxu0 %v4045_v19  ;;  %2713 = vmatprep.subr.bf16.mxu1 %v4046_v20  ;;  %v4096_v2 = vld [vmem:[%s5911_s1 + $0x43c] ss:$12 sps:$4 sm:$0xff]   ;;  %v4099_v5 = vld [vmem:[%s5911_s1 + $0x438] ss:$12 sps:$4 sm:$0xff]   ;;  %v4102_v7 = vld [vmem:[%s5911_s1 + $0x454] ss:$12 sps:$4 sm:$0xff]  }
  0x15   :  { %2795 = vmatprep.subr.bf16.mxu0 %v4048_v21  ;;  %v4774_v62 = vrot.slane %v556_v59, %v4745_v49  ;;  %v557_v63 = vcombine.high %v555_v60, %v555_v60  ;;  %v4104_v8 = vld [vmem:[%s5911_s1 + $0x150] ss:$12 sps:$4 sm:$0xff]   ;;  %v4106_v10 = vld [vmem:[%s5911_s1 + $0x16c] ss:$12 sps:$4 sm:$0xff]   ;;  %v4110_v12 = vld [vmem:[%s5911_s1 + $0x168] ss:$12 sps:$4 sm:$0xff]   ;;  %v4833_v18 = vrot.slane %v555_v60, %v4745_v49 }
  0x16   :  { %v4105_v9 = vld [vmem:[%s5911_s1 + $0x450] ss:$12 sps:$4 sm:$0xff]   ;;  %v4108_v11 = vld [vmem:[%s5911_s1 + $0x46c] ss:$12 sps:$4 sm:$0xff]   ;;  %v4111_v13 = vld [vmem:[%s5911_s1 + $0x468] ss:$12 sps:$4 sm:$0xff]  }
  0x17   :  { %2714 = vmatpush1.bf16.msra.mxu1 %v4050_v22  ;;  %v4786_v3 = vrot.slane %v557_v63, %v4745_v49  ;;  %2735 = vmatprep.mubr.bf16.mxu1 %v4774_v62  ;;  %v4114_v14 = vld [vmem:[%s5911_s1 + $0x184] ss:$12 sps:$4 sm:$0xff]   ;;  %v4112_v16 = vld [vmem:[%s5911_s1 + $0x180] ss:$12 sps:$4 sm:$0xff]   ;;  %v4121_v20 = vld [vmem:[%s5911_s1 + $0x19c] ss:$12 sps:$4 sm:$0xff]   ;;  %v4846_v22 = vcombine.high %v4774_v62, %v4774_v62 }
  0x18   :  { %2796 = vmatpush1.bf16.msra.mxu0 %v4051_v23  ;;  %2715 = vmatprep.subr.bf16.mxu1 %v4052_v24  ;;  %v4118_v15 = vld [vmem:[%s5911_s1 + $0x484] ss:$12 sps:$4 sm:$0xff]   ;;  %v4116_v19 = vld [vmem:[%s5911_s1 + $0x480] ss:$12 sps:$4 sm:$0xff]   ;;  %v4124_v21 = vld [vmem:[%s5911_s1 + $0x49c] ss:$12 sps:$4 sm:$0xff]  }
  0x19   :  { %2797 = vmatprep.subr.bf16.mxu0 %v4054_v25  ;;  %2817 = vmatprep.mubr.bf16.mxu0 %v4786_v3  ;;  %v4850_v23 = vcombine.high %v4786_v3, %v4786_v3  ;;  %v4119_v24 = vld [vmem:[%s5911_s1 + $0x198] ss:$12 sps:$4 sm:$0xff]   ;;  %v4137_v36 = vld [vmem:[%s5911_s1 + $0x1e0] ss:$12 sps:$4 sm:$0xff]   ;;  %v4145_v38 = vld [vmem:[%s5911_s1 + $0x1fc] ss:$12 sps:$4 sm:$0xff]  }
  0x1a   :  { %v4122_v25 = vld [vmem:[%s5911_s1 + $0x498] ss:$12 sps:$4 sm:$0xff]   ;;  %v4140_v37 = vld [vmem:[%s5911_s1 + $0x4e0] ss:$12 sps:$4 sm:$0xff]   ;;  %v4173_v63 = vld [vmem:[%s5911_s1 + $0x270] ss:$12 sps:$4 sm:$0xff]  }
  0x1b   :  { %2716 = vmatpush1.bf16.msra.mxu1 %v4056_v26  ;;  %v4127_v26 = vld [vmem:[%s5911_s1 + $0x1b4] ss:$12 sps:$4 sm:$0xff]   ;;  %v4163_v52 = vld [vmem:[%s5911_s1 + $0x244] ss:$12 sps:$4 sm:$0xff]  }
  0x1c   :  { %2798 = vmatpush1.bf16.msra.mxu0 %v4057_v27  ;;  %2717 = vmatprep.subr.bf16.mxu1 %v4058_v28  ;;  %v4130_v27 = vld [vmem:[%s5911_s1 + $0x4b4] ss:$12 sps:$4 sm:$0xff]   ;;  %v4125_v28 = vld [vmem:[%s5911_s1 + $0x1b0] ss:$12 sps:$4 sm:$0xff]   ;;  %v4170_v59 = vld [vmem:[%s5911_s1 + $0x558] ss:$12 sps:$4 sm:$0xff]  }
  0x1d   :  { %2799 = vmatprep.subr.bf16.mxu0 %v4060_v29  ;;  %v4128_v29 = vld [vmem:[%s5911_s1 + $0x4b0] ss:$12 sps:$4 sm:$0xff]   ;;  %v4151_v42 = vld [vmem:[%s5911_s1 + $0x214] ss:$12 sps:$4 sm:$0xff]  }
  0x1e   :  { %v4161_v54 = vld [vmem:[%s5911_s1 + $0x240] ss:$12 sps:$4 sm:$0xff]  }
  0x1f   :  { %2718 = vmatpush1.bf16.msra.mxu1 %v4062_v30  ;;  %v4133_v30 = vld [vmem:[%s5911_s1 + $0x1cc] ss:$12 sps:$4 sm:$0xff]   ;;  %v4175_v60 = vld [vmem:[%s5911_s1 + $0x274] ss:$12 sps:$4 sm:$0xff]  }
  0x20   :  { %2800 = vmatpush1.bf16.msra.mxu0 %v4063_v31  ;;  %2719 = vmatprep.subr.bf16.mxu1 %v4064_v32  ;;  %v4136_v31 = vld [vmem:[%s5911_s1 + $0x4cc] ss:$12 sps:$4 sm:$0xff]   ;;  %v4131_v32 = vld [vmem:[%s5911_s1 + $0x1c8] ss:$12 sps:$4 sm:$0xff]  }
  0x21   :  { %2801 = vmatprep.subr.bf16.mxu0 %v4066_v33  ;;  %v4134_v33 = vld [vmem:[%s5911_s1 + $0x4c8] ss:$12 sps:$4 sm:$0xff]   ;;  %v4164_v55 = vld [vmem:[%s5911_s1 + $0x540] ss:$12 sps:$4 sm:$0xff]  }
  0x23   :  { %2720 = vmatpush1.bf16.msra.mxu1 %v4068_v34  ;;  %v4139_v34 = vld [vmem:[%s5911_s1 + $0x1e4] ss:$12 sps:$4 sm:$0xff]  }
  0x24   :  { %2802 = vmatpush1.bf16.msra.mxu0 %v4069_v35  ;;  %2721 = vmatprep.subr.bf16.mxu1 %v4070_v39  ;;  %v4142_v35 = vld [vmem:[%s5911_s1 + $0x4e4] ss:$12 sps:$4 sm:$0xff]   ;;  %v4148_v39 = vld [vmem:[%s5911_s1 + $0x4fc] ss:$12 sps:$4 sm:$0xff]  }
  0x25   :  { %2803 = vmatprep.subr.bf16.mxu0 %v4072_v40  ;;  %v4143_v40 = vld [vmem:[%s5911_s1 + $0x1f8] ss:$12 sps:$4 sm:$0xff]  }
  0x27   :  { %2722 = vmatpush1.bf16.msra.mxu1 %v4074_v41  ;;  %v4146_v41 = vld [vmem:[%s5911_s1 + $0x4f8] ss:$12 sps:$4 sm:$0xff]  }
  0x28   :  { %2804 = vmatpush1.bf16.msra.mxu0 %v4075_v44  ;;  %2723 = vmatprep.subr.bf16.mxu1 %v4076_v45  ;;  %v4154_v44 = vld [vmem:[%s5911_s1 + $0x514] ss:$12 sps:$4 sm:$0xff]   ;;  %v4149_v45 = vld [vmem:[%s5911_s1 + $0x210] ss:$12 sps:$4 sm:$0xff]  }
  0x29   :  { %2805 = vmatprep.subr.bf16.mxu0 %v4078_v46  ;;  %v4152_v46 = vld [vmem:[%s5911_s1 + $0x510] ss:$12 sps:$4 sm:$0xff]  }
  0x2b   :  { %2724 = vmatpush1.bf16.msra.mxu1 %v4080_v47  ;;  %v4157_v47 = vld [vmem:[%s5911_s1 + $0x22c] ss:$12 sps:$4 sm:$0xff]  }
  0x2c   :  { %2806 = vmatpush1.bf16.msra.mxu0 %v4081_v48  ;;  %2725 = vmatprep.subr.bf16.mxu1 %v4082_v50  ;;  %v4160_v48 = vld [vmem:[%s5911_s1 + $0x52c] ss:$12 sps:$4 sm:$0xff]   ;;  %v4155_v50 = vld [vmem:[%s5911_s1 + $0x228] ss:$12 sps:$4 sm:$0xff]  }
  0x2d   :  { %2807 = vmatprep.subr.bf16.mxu0 %v4084_v51  ;;  %v4158_v51 = vld [vmem:[%s5911_s1 + $0x528] ss:$12 sps:$4 sm:$0xff]  }
  0x2f   :  { %2726 = vmatpush1.bf16.msra.mxu1 %v4086_v53  ;;  %v4166_v53 = vld [vmem:[%s5911_s1 + $0x544] ss:$12 sps:$4 sm:$0xff]  }
  0x30   :  { %2808 = vmatpush1.bf16.msra.mxu0 %v4087_v56  ;;  %2727 = vmatprep.subr.bf16.mxu1 %v4088_v57  ;;  %v4169_v56 = vld [vmem:[%s5911_s1 + $0x25c] ss:$12 sps:$4 sm:$0xff]  }
  0x31   :  { %2809 = vmatprep.subr.bf16.mxu0 %v4090_v58  ;;  %v4172_v57 = vld [vmem:[%s5911_s1 + $0x55c] ss:$12 sps:$4 sm:$0xff]   ;;  %v4167_v58 = vld [vmem:[%s5911_s1 + $0x258] ss:$12 sps:$4 sm:$0xff]  }
  0x33   :  { %2728 = vmatpush1.bf16.msra.mxu1 %v4092_v61  ;;  %v4178_v61 = vld [vmem:[%s5911_s1 + $0x574] ss:$12 sps:$4 sm:$0xff]  }
  0x34   :  { %2810 = vmatpush1.bf16.msra.mxu0 %v4093_v0  ;;  %2729 = vmatprep.subr.bf16.mxu1 %v4094_v1  ;;  %v4176_v0 = vld [vmem:[%s5911_s1 + $0x570] ss:$12 sps:$4 sm:$0xff]   ;;  %v4181_v1 = vld [vmem:[%s5911_s1 + $0x28c] ss:$12 sps:$4 sm:$0xff]  }
  0x35   :  { %2811 = vmatprep.subr.bf16.mxu0 %v4096_v2  ;;  %v4184_v2 = vld [vmem:[%s5911_s1 + $0x58c] ss:$12 sps:$4 sm:$0xff]  }
  0x37   :  { %2730 = vmatpush1.bf16.msra.mxu1 %v4098_v4  ;;  %v4179_v4 = vld [vmem:[%s5911_s1 + $0x288] ss:$12 sps:$4 sm:$0xff]  }
  0x38   :  { %2812 = vmatpush1.bf16.msra.mxu0 %v4099_v5  ;;  %2731 = vmatprep.subr.bf16.mxu1 %v4100_v6  ;;  %v4182_v5 = vld [vmem:[%s5911_s1 + $0x588] ss:$12 sps:$4 sm:$0xff]   ;;  %v4187_v6 = vld [vmem:[%s5911_s1 + $0x2a4] ss:$12 sps:$4 sm:$0xff]  }
  0x39   :  { %2813 = vmatprep.subr.bf16.mxu0 %v4102_v7  ;;  %v4190_v7 = vld [vmem:[%s5911_s1 + $0x5a4] ss:$12 sps:$4 sm:$0xff]  }
  0x3b   :  { %2732 = vmatpush1.bf16.msra.mxu1 %v4104_v8  ;;  %v4185_v8 = vld [vmem:[%s5911_s1 + $0x2a0] ss:$12 sps:$4 sm:$0xff]  }
  0x3c   :  { %2814 = vmatpush1.bf16.msra.mxu0 %v4105_v9  ;;  %2733 = vmatprep.subr.bf16.mxu1 %v4106_v10  ;;  %v4188_v9 = vld [vmem:[%s5911_s1 + $0x5a0] ss:$12 sps:$4 sm:$0xff]   ;;  %v4193_v10 = vld [vmem:[%s5911_s1 + $0x2bc] ss:$12 sps:$4 sm:$0xff]  }
  0x3d   :  { %2815 = vmatprep.subr.bf16.mxu0 %v4108_v11  ;;  %v4196_v11 = vld [vmem:[%s5911_s1 + $0x5bc] ss:$12 sps:$4 sm:$0xff]  }
  0x3f   :  { %2734 = vmatpush1.bf16.msra.mxu1 %v4110_v12  ;;  %v4191_v12 = vld [vmem:[%s5911_s1 + $0x2b8] ss:$12 sps:$4 sm:$0xff]  }
  0x40   :  { %2816 = vmatpush1.bf16.msra.mxu0 %v4111_v13  ;;  %2744 = vmatprep.subr.bf16.mxu1 %v4114_v14  ;;  %v4194_v13 = vld [vmem:[%s5911_s1 + $0x5b8] ss:$12 sps:$4 sm:$0xff]   ;;  %v4199_v14 = vld [vmem:[%s5911_s1 + $0x2d4] ss:$12 sps:$4 sm:$0xff]  }
  0x41   :  { %2826 = vmatprep.subr.bf16.mxu0 %v4118_v15  ;;  %v4202_v15 = vld [vmem:[%s5911_s1 + $0x5d4] ss:$12 sps:$4 sm:$0xff]  }
  0x42   :  { %2736 = vmatmul.mubr.bf16.vlgmr.msra.gmra.mrb[0].mxu1 %v4830_v17 }
  0x43   :  { %2818 = vmatmul.mubr.bf16.vlgmr.msra.gmra.mrb[0].mxu0 %v4833_v18  ;;  %2745 = vmatpush1.bf16.msra.mxu1 %v4112_v16  ;;  %v4197_v16 = vld [vmem:[%s5911_s1 + $0x2d0] ss:$12 sps:$4 sm:$0xff]  }
  0x44   :  { %2827 = vmatpush1.bf16.msra.mxu0 %v4116_v19  ;;  %2746 = vmatprep.subr.bf16.mxu1 %v4121_v20  ;;  %v4200_v19 = vld [vmem:[%s5911_s1 + $0x5d0] ss:$12 sps:$4 sm:$0xff]   ;;  %v4205_v20 = vld [vmem:[%s5911_s1 + $0x2ec] ss:$12 sps:$4 sm:$0xff]  }
  0x45   :  { %2828 = vmatprep.subr.bf16.mxu0 %v4124_v21  ;;  %2776 = vmatprep.mubr.bf16.mxu1 %v4846_v22  ;;  %v4208_v21 = vld [vmem:[%s5911_s1 + $0x5ec] ss:$12 sps:$4 sm:$0xff]  }
  0x46   :  { %2858 = vmatprep.mubr.bf16.mxu0 %v4850_v23 }
  0x47   :  { %2747 = vmatpush1.bf16.msra.mxu1 %v4119_v24  ;;  %v4203_v24 = vld [vmem:[%s5911_s1 + $0x2e8] ss:$12 sps:$4 sm:$0xff]  }
  0x48   :  { %2829 = vmatpush1.bf16.msra.mxu0 %v4122_v25  ;;  %2748 = vmatprep.subr.bf16.mxu1 %v4127_v26  ;;  %v4206_v25 = vld [vmem:[%s5911_s1 + $0x5e8] ss:$12 sps:$4 sm:$0xff]   ;;  %v4211_v26 = vld [vmem:[%s5911_s1 + $0x604] ss:$12 sps:$4 sm:$0xff]  }
  0x49   :  { %2830 = vmatprep.subr.bf16.mxu0 %v4130_v27  ;;  %v4212_v27 = vld [vmem:[%s5911_s1 + $0xc8] ss:$12 sps:$4 sm:$0xff]  }
  0x4b   :  { %2749 = vmatpush1.bf16.msra.mxu1 %v4125_v28  ;;  %v4209_v28 = vld [vmem:[%s5911_s1 + $0x600] ss:$12 sps:$4 sm:$0xff]  }
  0x4c   :  { %2831 = vmatpush1.bf16.msra.mxu0 %v4128_v29  ;;  %2750 = vmatprep.subr.bf16.mxu1 %v4133_v30  ;;  %v5041_v29 = vcombine.high %v4830_v17, %v4830_v17  ;;  %v5045_v30 = vcombine.high %v4833_v18, %v4833_v18 }
  0x4d   :  { %2832 = vmatprep.subr.bf16.mxu0 %v4136_v31  ;;  %v4213_v31 = vld [vmem:[%s5911_s1 + $0x8] ss:$12 sps:$4 sm:$0xff]  }
  0x4f   :  { %2751 = vmatpush1.bf16.msra.mxu1 %v4131_v32  ;;  %v4216_v32 = vld [vmem:[%s5911_s1 + $0x61c] ss:$12 sps:$4 sm:$0xff]  }
  0x50   :  { %2833 = vmatpush1.bf16.msra.mxu0 %v4134_v33  ;;  %2752 = vmatprep.subr.bf16.mxu1 %v4139_v34  ;;  %v4217_v33 = vld [vmem:[%s5911_s1 + $0xe0] ss:$12 sps:$4 sm:$0xff]   ;;  %v4214_v34 = vld [vmem:[%s5911_s1 + $0x618] ss:$12 sps:$4 sm:$0xff]  }
  0x51   :  { %2834 = vmatprep.subr.bf16.mxu0 %v4142_v35  ;;  %v4218_v35 = vld [vmem:[%s5911_s1 + $0x20] ss:$12 sps:$4 sm:$0xff]  }
  0x53   :  { %2753 = vmatpush1.bf16.msra.mxu1 %v4137_v36  ;;  %v4221_v36 = vld [vmem:[%s5911_s1 + $0x634] ss:$12 sps:$4 sm:$0xff]  }
  0x54   :  { %2835 = vmatpush1.bf16.msra.mxu0 %v4140_v37  ;;  %2754 = vmatprep.subr.bf16.mxu1 %v4145_v38  ;;  %v4222_v37 = vld [vmem:[%s5911_s1 + $0xf8] ss:$12 sps:$4 sm:$0xff]   ;;  %v4219_v38 = vld [vmem:[%s5911_s1 + $0x630] ss:$12 sps:$4 sm:$0xff]  }
  0x55   :  { %2836 = vmatprep.subr.bf16.mxu0 %v4148_v39  ;;  %v4223_v39 = vld [vmem:[%s5911_s1 + $0x38] ss:$12 sps:$4 sm:$0xff]  }
  0x57   :  { %2755 = vmatpush1.bf16.msra.mxu1 %v4143_v40  ;;  %v4226_v40 = vld [vmem:[%s5911_s1 + $0x64c] ss:$12 sps:$4 sm:$0xff]  }
  0x58   :  { %2837 = vmatpush1.bf16.msra.mxu0 %v4146_v41  ;;  %2756 = vmatprep.subr.bf16.mxu1 %v4151_v42  ;;  %v4224_v41 = vld [vmem:[%s5911_s1 + $0x648] ss:$12 sps:$4 sm:$0xff]  }
  0x59   :  { %2838 = vmatprep.subr.bf16.mxu0 %v4154_v44  ;;  %v5089_v42 = vld [vmem:[%s5910_s0 + $0x8] sm:$0xff]  ;;  %v4228_v44 = vld [vmem:[%s5911_s1 + $0x50] ss:$12 sps:$4 sm:$0xff]  }
  0x5b   :  { %2757 = vmatpush1.bf16.msra.mxu1 %v4149_v45  ;;  %v4231_v45 = vld [vmem:[%s5911_s1 + $0x664] ss:$12 sps:$4 sm:$0xff]  }
  0x5c   :  { %2839 = vmatpush1.bf16.msra.mxu0 %v4152_v46  ;;  %2758 = vmatprep.subr.bf16.mxu1 %v4157_v47  ;;  %v5099_v46 = vrot.slane %v5089_v42, %v4745_v49  ;;  %v4232_v47 = vld [vmem:[%s5911_s1 + $0x128] ss:$12 sps:$4 sm:$0xff]  }
  0x5d   :  { %2840 = vmatprep.subr.bf16.mxu0 %v4160_v48 }
  0x5e   :  { %v605_v48 = vcombine.high %v5099_v46, %v5099_v46 }
  0x5f   :  { %2759 = vmatpush1.bf16.msra.mxu1 %v4155_v50  ;;  %v4229_v50 = vld [vmem:[%s5911_s1 + $0x660] ss:$12 sps:$4 sm:$0xff]  }
  0x60   :  { %2841 = vmatpush1.bf16.msra.mxu0 %v4158_v51  ;;  %2760 = vmatprep.subr.bf16.mxu1 %v4163_v52  ;;  %v4233_v51 = vld [vmem:[%s5911_s1 + $0x68] ss:$12 sps:$4 sm:$0xff]  }
  0x61   :  { %2842 = vmatprep.subr.bf16.mxu0 %v4166_v53  ;;  %v4236_v52 = vld [vmem:[%s5911_s1 + $0x67c] ss:$12 sps:$4 sm:$0xff]   ;;  %v5116_v53 = vrot.slane %v605_v48, %v4745_v49 }
  0x63   :  { %2761 = vmatpush1.bf16.msra.mxu1 %v4161_v54  ;;  %v4237_v54 = vld [vmem:[%s5911_s1 + $0x140] ss:$12 sps:$4 sm:$0xff]   ;;  %v5277_v48 = vcombine.high %v5116_v53, %v5116_v53 }
  0x64   :  { %2843 = vmatpush1.bf16.msra.mxu0 %v4164_v55  ;;  %2762 = vmatprep.subr.bf16.mxu1 %v4169_v56  ;;  %v4234_v55 = vld [vmem:[%s5911_s1 + $0x678] ss:$12 sps:$4 sm:$0xff]   ;;  %v4238_v56 = vld [vmem:[%s5911_s1 + $0x80] ss:$12 sps:$4 sm:$0xff]  }
  0x65   :  { %2844 = vmatprep.subr.bf16.mxu0 %v4172_v57  ;;  %v4241_v57 = vld [vmem:[%s5911_s1 + $0x694] ss:$12 sps:$4 sm:$0xff]  }
  0x67   :  { %2763 = vmatpush1.bf16.msra.mxu1 %v4167_v58  ;;  %v4242_v58 = vld [vmem:[%s5911_s1 + $0x158] ss:$12 sps:$4 sm:$0xff]  }
  0x68   :  { %2845 = vmatpush1.bf16.msra.mxu0 %v4170_v59  ;;  %2764 = vmatprep.subr.bf16.mxu1 %v4175_v60  ;;  %v4239_v59 = vld [vmem:[%s5911_s1 + $0x690] ss:$12 sps:$4 sm:$0xff]   ;;  %v4243_v60 = vld [vmem:[%s5911_s1 + $0x98] ss:$12 sps:$4 sm:$0xff]  }
  0x69   :  { %2846 = vmatprep.subr.bf16.mxu0 %v4178_v61  ;;  %v4246_v61 = vld [vmem:[%s5911_s1 + $0x6ac] ss:$12 sps:$4 sm:$0xff]  }
  0x6b   :  { %2765 = vmatpush1.bf16.msra.mxu1 %v4173_v63  ;;  %v4247_v63 = vld [vmem:[%s5911_s1 + $0x170] ss:$12 sps:$4 sm:$0xff]  }
  0x6c   :  { %2847 = vmatpush1.bf16.msra.mxu0 %v4176_v0  ;;  %2766 = vmatprep.subr.bf16.mxu1 %v4181_v1  ;;  %v4244_v0 = vld [vmem:[%s5911_s1 + $0x6a8] ss:$12 sps:$4 sm:$0xff]   ;;  %v4248_v1 = vld [vmem:[%s5911_s1 + $0xb0] ss:$12 sps:$4 sm:$0xff]  }
  0x6d   :  { %2848 = vmatprep.subr.bf16.mxu0 %v4184_v2  ;;  %v4251_v2 = vld [vmem:[%s5911_s1 + $0x6c4] ss:$12 sps:$4 sm:$0xff]  }
  0x6f   :  { %2767 = vmatpush1.bf16.msra.mxu1 %v4179_v4  ;;  %v4252_v4 = vld [vmem:[%s5911_s1 + $0x248] ss:$12 sps:$4 sm:$0xff]  }
  0x70   :  { %2849 = vmatpush1.bf16.msra.mxu0 %v4182_v5  ;;  %2768 = vmatprep.subr.bf16.mxu1 %v4187_v6  ;;  %v4249_v5 = vld [vmem:[%s5911_s1 + $0x6c0] ss:$12 sps:$4 sm:$0xff]   ;;  %v4253_v6 = vld [vmem:[%s5911_s1 + $0x188] ss:$12 sps:$4 sm:$0xff]  }
  0x71   :  { %2850 = vmatprep.subr.bf16.mxu0 %v4190_v7  ;;  %v4256_v7 = vld [vmem:[%s5911_s1 + $0x6dc] ss:$12 sps:$4 sm:$0xff]  }
  0x73   :  { %2769 = vmatpush1.bf16.msra.mxu1 %v4185_v8  ;;  %v4257_v8 = vld [vmem:[%s5911_s1 + $0x260] ss:$12 sps:$4 sm:$0xff]  }
  0x74   :  { %2851 = vmatpush1.bf16.msra.mxu0 %v4188_v9  ;;  %2770 = vmatprep.subr.bf16.mxu1 %v4193_v10  ;;  %v4254_v9 = vld [vmem:[%s5911_s1 + $0x6d8] ss:$12 sps:$4 sm:$0xff]   ;;  %v4258_v10 = vld [vmem:[%s5911_s1 + $0x1a0] ss:$12 sps:$4 sm:$0xff]  }
  0x75   :  { %2852 = vmatprep.subr.bf16.mxu0 %v4196_v11  ;;  %v4261_v11 = vld [vmem:[%s5911_s1 + $0x6f4] ss:$12 sps:$4 sm:$0xff]  }
  0x77   :  { %2771 = vmatpush1.bf16.msra.mxu1 %v4191_v12  ;;  %v4259_v12 = vld [vmem:[%s5911_s1 + $0x6f0] ss:$12 sps:$4 sm:$0xff]  }
  0x78   :  { %2853 = vmatpush1.bf16.msra.mxu0 %v4194_v13  ;;  %2772 = vmatprep.subr.bf16.mxu1 %v4199_v14  ;;  %v4263_v13 = vld [vmem:[%s5911_s1 + $0x1b8] ss:$12 sps:$4 sm:$0xff]  }
  0x79   :  { %2854 = vmatprep.subr.bf16.mxu0 %v4202_v15  ;;  %v4266_v14 = vld [vmem:[%s5911_s1 + $0x70c] ss:$12 sps:$4 sm:$0xff]   ;;  %v4267_v15 = vld [vmem:[%s5911_s1 + $0x290] ss:$12 sps:$4 sm:$0xff]  }
  0x7b   :  { %2773 = vmatpush1.bf16.msra.mxu1 %v4197_v16  ;;  %v4268_v16 = vld [vmem:[%s5911_s1 + $0x1d0] ss:$12 sps:$4 sm:$0xff]  }
  0x7c   :  { %2855 = vmatpush1.bf16.msra.mxu0 %v4200_v19  ;;  %2774 = vmatprep.subr.bf16.mxu1 %v4205_v20  ;;  %v4271_v19 = vld [vmem:[%s5911_s1 + $0x724] ss:$12 sps:$4 sm:$0xff]   ;;  %v4272_v20 = vld [vmem:[%s5911_s1 + $0x2a8] ss:$12 sps:$4 sm:$0xff]  }
  0x7d   :  { %2856 = vmatprep.subr.bf16.mxu0 %v4208_v21  ;;  %v4269_v21 = vld [vmem:[%s5911_s1 + $0x720] ss:$12 sps:$4 sm:$0xff]  }
  0x7f   :  { %2775 = vmatpush1.bf16.msra.mxu1 %v4203_v24  ;;  %v4273_v24 = vld [vmem:[%s5911_s1 + $0x1e8] ss:$12 sps:$4 sm:$0xff]  }
  0x80   :  { %2857 = vmatpush1.bf16.msra.mxu0 %v4206_v25  ;;  %3809 = vmatprep.subr.bf16.mxu1 %v4212_v27  ;;  %v4276_v25 = vld [vmem:[%s5911_s1 + $0x73c] ss:$12 sps:$4 sm:$0xff]   ;;  %v4274_v27 = vld [vmem:[%s5911_s1 + $0x738] ss:$12 sps:$4 sm:$0xff]  }
  0x81   :  { %2867 = vmatprep.subr.bf16.mxu0 %v4211_v26  ;;  %v4277_v26 = vld [vmem:[%s5911_s1 + $0x2c0] ss:$12 sps:$4 sm:$0xff]  }
  0x82   :  { %2777 = vmatmul.mubr.bf16.vlgmr.msra.gmra.mrb[0].mxu1 %v5041_v29 }
  0x83   :  { %2859 = vmatmul.mubr.bf16.vlgmr.msra.gmra.mrb[0].mxu0 %v5045_v30  ;;  %3810 = vmatpush3.bf16.msra.mxu1 %v4213_v31  ;;  %v4281_v31 = vld [vmem:[%s5911_s1 + $0x754] ss:$12 sps:$4 sm:$0xff]  }
  0x84   :  { %2868 = vmatpush1.bf16.msra.mxu0 %v4209_v28  ;;  %3811 = vmatprep.subr.bf16.mxu1 %v4217_v33  ;;  %v4278_v28 = vld [vmem:[%s5911_s1 + $0x200] ss:$12 sps:$4 sm:$0xff]   ;;  %v4279_v33 = vld [vmem:[%s5911_s1 + $0x750] ss:$12 sps:$4 sm:$0xff]  }
  0x85   :  { %2869 = vmatprep.subr.bf16.mxu0 %v4216_v32  ;;  %3063 = vmatprep.mubr.bf16.mxu1 %v4774_v62  ;;  %v4227_v62 = vld [vmem:[%s5911_s1 + $0x110] ss:$12 sps:$4 sm:$0xff]   ;;  %v4282_v32 = vld [vmem:[%s5911_s1 + $0x2d8] ss:$12 sps:$4 sm:$0xff]  }
  0x86   :  { %2899 = vmatprep.mubr.bf16.mxu0 %v5116_v53 }
  0x87   :  { %3812 = vmatpush3.bf16.msra.mxu1 %v4218_v35  ;;  %v4286_v35 = vld [vmem:[%s5911_s1 + $0x76c] ss:$12 sps:$4 sm:$0xff]  }
  0x88   :  { %2870 = vmatpush1.bf16.msra.mxu0 %v4214_v34  ;;  %3813 = vmatprep.subr.bf16.mxu1 %v4222_v37  ;;  %v4283_v34 = vld [vmem:[%s5911_s1 + $0x218] ss:$12 sps:$4 sm:$0xff]   ;;  %v4284_v37 = vld [vmem:[%s5911_s1 + $0x768] ss:$12 sps:$4 sm:$0xff]  }
  0x89   :  { %2871 = vmatprep.subr.bf16.mxu0 %v4221_v36  ;;  %v4287_v36 = vld [vmem:[%s5911_s1 + $0x2f0] ss:$12 sps:$4 sm:$0xff]  }
  0x8b   :  { %3814 = vmatpush3.bf16.msra.mxu1 %v4223_v39  ;;  %v4291_v39 = vld [vmem:[%s5911_s1 + $0x784] ss:$12 sps:$4 sm:$0xff]  }
  0x8c   :  { %2872 = vmatpush1.bf16.msra.mxu0 %v4219_v38  ;;  %3815 = vmatprep.subr.bf16.mxu1 %v4227_v62  ;;  %v4288_v38 = vld [vmem:[%s5911_s1 + $0x230] ss:$12 sps:$4 sm:$0xff]   ;;  %v4289_v62 = vld [vmem:[%s5911_s1 + $0x780] ss:$12 sps:$4 sm:$0xff]  }
  0x8d   :  { %2873 = vmatprep.subr.bf16.mxu0 %v4226_v40  ;;  %v4292_v40 = vld [vmem:[%s5911_s1 + $0x3c8] ss:$12 sps:$4 sm:$0xff]  }
  0x8f   :  { %3816 = vmatpush3.bf16.msra.mxu1 %v4228_v44  ;;  %v4293_v44 = vld [vmem:[%s5911_s1 + $0x308] ss:$12 sps:$4 sm:$0xff]  }
  0x90   :  { %2874 = vmatpush1.bf16.msra.mxu0 %v4224_v41  ;;  %3817 = vmatprep.subr.bf16.mxu1 %v4232_v47  ;;  %v5261_v41 = vrot.slane %v5099_v46, %v4745_v49  ;;  %v4297_v47 = vld [vmem:[%s5911_s1 + $0x3e0] ss:$12 sps:$4 sm:$0xff]   ;;  %v4294_v46 = vld [vmem:[%s5911_s1 + $0x798] ss:$12 sps:$4 sm:$0xff]  }
  0x91   :  { %2875 = vmatprep.subr.bf16.mxu0 %v4231_v45  ;;  %v4296_v45 = vld [vmem:[%s5911_s1 + $0x79c] ss:$12 sps:$4 sm:$0xff]  }
  0x93   :  { %3818 = vmatpush3.bf16.msra.mxu1 %v4233_v51  ;;  %v4301_v51 = vld [vmem:[%s5911_s1 + $0x7b4] ss:$12 sps:$4 sm:$0xff]  }
  0x94   :  { %2876 = vmatpush1.bf16.msra.mxu0 %v4229_v50  ;;  %3819 = vmatprep.subr.bf16.mxu1 %v4237_v54  ;;  %v4298_v50 = vld [vmem:[%s5911_s1 + $0x320] ss:$12 sps:$4 sm:$0xff]   ;;  %v4303_v54 = vld [vmem:[%s5911_s1 + $0x338] ss:$12 sps:$4 sm:$0xff]  }
  0x95   :  { %2877 = vmatprep.subr.bf16.mxu0 %v4236_v52  ;;  %v4302_v52 = vld [vmem:[%s5911_s1 + $0x3f8] ss:$12 sps:$4 sm:$0xff]  }
  0x97   :  { %3820 = vmatpush3.bf16.msra.mxu1 %v4238_v56  ;;  %v4304_v56 = vld [vmem:[%s5911_s1 + $0x7c8] ss:$12 sps:$4 sm:$0xff]  }
  0x98   :  { %2878 = vmatpush1.bf16.msra.mxu0 %v4234_v55  ;;  %3821 = vmatprep.subr.bf16.mxu1 %v4242_v58  ;;  %v4306_v55 = vld [vmem:[%s5911_s1 + $0x7cc] ss:$12 sps:$4 sm:$0xff]   ;;  %v4311_v58 = vld [vmem:[%s5911_s1 + $0x7e4] ss:$12 sps:$4 sm:$0xff]  }
  0x99   :  { %2879 = vmatprep.subr.bf16.mxu0 %v4241_v57  ;;  %v4308_v57 = vld [vmem:[%s5911_s1 + $0x350] ss:$12 sps:$4 sm:$0xff]  }
  0x9b   :  { %3822 = vmatpush3.bf16.msra.mxu1 %v4243_v60  ;;  %v4309_v60 = vld [vmem:[%s5911_s1 + $0x7e0] ss:$12 sps:$4 sm:$0xff]  }
  0x9c   :  { %2880 = vmatpush1.bf16.msra.mxu0 %v4239_v59  ;;  %3823 = vmatprep.subr.bf16.mxu1 %v4247_v63  ;;  %v4312_v59 = vld [vmem:[%s5911_s1 + $0x428] ss:$12 sps:$4 sm:$0xff]  }
  0x9d   :  { %2881 = vmatprep.subr.bf16.mxu0 %v4246_v61  ;;  %v4313_v61 = vld [vmem:[%s5911_s1 + $0x368] ss:$12 sps:$4 sm:$0xff]  }
  0x9e   :  { %v4316_v63 = vld [vmem:[%s5911_s1 + $0x7fc] ss:$12 sps:$4 sm:$0xff]  }
  0x9f   :  { %3824 = vmatpush3.bf16.msra.mxu1 %v4248_v1  ;;  %v4314_v1 = vld [vmem:[%s5911_s1 + $0x7f8] ss:$12 sps:$4 sm:$0xff]  }
  0xa0   :  { %2882 = vmatpush1.bf16.msra.mxu0 %v4244_v0  ;;  %3831 = vmatprep.subr.bf16.mxu1 %v4252_v4  ;;  %v4317_v0 = vld [vmem:[%s5911_s1 + $0x440] ss:$12 sps:$4 sm:$0xff]  }
  0xa1   :  { %2883 = vmatprep.subr.bf16.mxu0 %v4251_v2  ;;  %v4318_v2 = vld [vmem:[%s5911_s1 + $0x380] ss:$12 sps:$4 sm:$0xff]  }
  0xa2   :  { %3064 = vmatmul.mubr.bf16.vlgmr.msra.gmra.mrb[4].mxu1 %v4830_v17  ;;  %v4262_v17 = vld [vmem:[%s5911_s1 + $0x278] ss:$12 sps:$4 sm:$0xff]   ;;  %v4321_v4 = vld [vmem:[%s5911_s1 + $0x814] ss:$12 sps:$4 sm:$0xff]  }
  0xa3   :  { %3832 = vmatpush3.bf16.msra.mxu1 %v4253_v6  ;;  %3103 = vmatprep.mubr.bf16.mxu1 %v4846_v22  ;;  %v4264_v22 = vld [vmem:[%s5911_s1 + $0x708] ss:$12 sps:$4 sm:$0xff]   ;;  %v4319_v6 = vld [vmem:[%s5911_s1 + $0x810] ss:$12 sps:$4 sm:$0xff]  }
  0xa4   :  { %2884 = vmatpush1.bf16.msra.mxu0 %v4249_v5  ;;  %3833 = vmatprep.subr.bf16.mxu1 %v4257_v8  ;;  %v4322_v5 = vld [vmem:[%s5911_s1 + $0x458] ss:$12 sps:$4 sm:$0xff]  }
  0xa5   :  { %2885 = vmatprep.subr.bf16.mxu0 %v4256_v7  ;;  %v4323_v7 = vld [vmem:[%s5911_s1 + $0x398] ss:$12 sps:$4 sm:$0xff]  }
  0xa6   :  { %v4326_v8 = vld [vmem:[%s5911_s1 + $0x82c] ss:$12 sps:$4 sm:$0xff]  }
  0xa7   :  { %3834 = vmatpush3.bf16.msra.mxu1 %v4258_v10  ;;  %v4324_v10 = vld [vmem:[%s5911_s1 + $0x828] ss:$12 sps:$4 sm:$0xff]  }
  0xa8   :  { %2886 = vmatpush1.bf16.msra.mxu0 %v4254_v9  ;;  %3835 = vmatprep.subr.bf16.mxu1 %v4262_v17  ;;  %v4327_v9 = vld [vmem:[%s5911_s1 + $0x470] ss:$12 sps:$4 sm:$0xff]  }
  0xa9   :  { %2887 = vmatprep.subr.bf16.mxu0 %v4261_v11  ;;  %v4328_v11 = vld [vmem:[%s5911_s1 + $0x3b0] ss:$12 sps:$4 sm:$0xff]  }
  0xaa   :  { %v4331_v17 = vld [vmem:[%s5911_s1 + $0x844] ss:$12 sps:$4 sm:$0xff]  }
  0xab   :  { %3836 = vmatpush3.bf16.msra.mxu1 %v4263_v13  ;;  %v4329_v13 = vld [vmem:[%s5911_s1 + $0x840] ss:$12 sps:$4 sm:$0xff]  }
  0xac   :  { %2888 = vmatpush1.bf16.msra.mxu0 %v4259_v12  ;;  %3837 = vmatprep.subr.bf16.mxu1 %v4267_v15  ;;  %v4332_v12 = vld [vmem:[%s5911_s1 + $0x548] ss:$12 sps:$4 sm:$0xff]  }
  0xad   :  { %2889 = vmatprep.subr.bf16.mxu0 %v4266_v14  ;;  %v4333_v14 = vld [vmem:[%s5911_s1 + $0x488] ss:$12 sps:$4 sm:$0xff]  }
  0xae   :  { %v4336_v15 = vld [vmem:[%s5911_s1 + $0x85c] ss:$12 sps:$4 sm:$0xff]  }
  0xaf   :  { %3838 = vmatpush3.bf16.msra.mxu1 %v4268_v16  ;;  %v4334_v16 = vld [vmem:[%s5911_s1 + $0x858] ss:$12 sps:$4 sm:$0xff]  }
  0xb0   :  { %2890 = vmatpush1.bf16.msra.mxu0 %v4264_v22  ;;  %3839 = vmatprep.subr.bf16.mxu1 %v4272_v20  ;;  %v4337_v22 = vld [vmem:[%s5911_s1 + $0x560] ss:$12 sps:$4 sm:$0xff]  }
  0xb1   :  { %2891 = vmatprep.subr.bf16.mxu0 %v4271_v19  ;;  %v4338_v19 = vld [vmem:[%s5911_s1 + $0x4a0] ss:$12 sps:$4 sm:$0xff]  }
  0xb2   :  { %v4341_v20 = vld [vmem:[%s5911_s1 + $0x874] ss:$12 sps:$4 sm:$0xff]  }
  0xb3   :  { %3840 = vmatpush3.bf16.msra.mxu1 %v4273_v24  ;;  %v4343_v24 = vld [vmem:[%s5911_s1 + $0x4b8] ss:$12 sps:$4 sm:$0xff]  }
  0xb4   :  { %2892 = vmatpush1.bf16.msra.mxu0 %v4269_v21  ;;  %3841 = vmatprep.subr.bf16.mxu1 %v4277_v26  ;;  %v4342_v21 = vld [vmem:[%s5911_s1 + $0x578] ss:$12 sps:$4 sm:$0xff]   ;;  %v4344_v26 = vld [vmem:[%s5911_s1 + $0x888] ss:$12 sps:$4 sm:$0xff]  }
  0xb5   :  { %2893 = vmatprep.subr.bf16.mxu0 %v4276_v25  ;;  %v4346_v25 = vld [vmem:[%s5911_s1 + $0x88c] ss:$12 sps:$4 sm:$0xff]  }
  0xb7   :  { %3842 = vmatpush3.bf16.msra.mxu1 %v4278_v28  ;;  %v4351_v28 = vld [vmem:[%s5911_s1 + $0x8a4] ss:$12 sps:$4 sm:$0xff]  }
  0xb8   :  { %2894 = vmatpush1.bf16.msra.mxu0 %v4274_v27  ;;  %3843 = vmatprep.subr.bf16.mxu1 %v4282_v32  ;;  %v4348_v27 = vld [vmem:[%s5911_s1 + $0x4d0] ss:$12 sps:$4 sm:$0xff]   ;;  %v4349_v32 = vld [vmem:[%s5911_s1 + $0x8a0] ss:$12 sps:$4 sm:$0xff]  }
  0xb9   :  { %2895 = vmatprep.subr.bf16.mxu0 %v4281_v31  ;;  %v4352_v31 = vld [vmem:[%s5911_s1 + $0x5a8] ss:$12 sps:$4 sm:$0xff]  }
  0xbb   :  { %3844 = vmatpush3.bf16.msra.mxu1 %v4283_v34  ;;  %v4356_v34 = vld [vmem:[%s5911_s1 + $0x8bc] ss:$12 sps:$4 sm:$0xff]  }
  0xbc   :  { %2896 = vmatpush1.bf16.msra.mxu0 %v4279_v33  ;;  %3845 = vmatprep.subr.bf16.mxu1 %v4287_v36  ;;  %v4353_v33 = vld [vmem:[%s5911_s1 + $0x4e8] ss:$12 sps:$4 sm:$0xff]   ;;  %v4354_v36 = vld [vmem:[%s5911_s1 + $0x8b8] ss:$12 sps:$4 sm:$0xff]  }
  0xbd   :  { %2897 = vmatprep.subr.bf16.mxu0 %v4286_v35  ;;  %v4357_v35 = vld [vmem:[%s5911_s1 + $0x5c0] ss:$12 sps:$4 sm:$0xff]  }
  0xbf   :  { %3846 = vmatpush3.bf16.msra.mxu1 %v4288_v38  ;;  %v4361_v38 = vld [vmem:[%s5911_s1 + $0x8d4] ss:$12 sps:$4 sm:$0xff]  }
  0xc0   :  { %2898 = vmatpush1.bf16.msra.mxu0 %v4284_v37  ;;  %3853 = vmatprep.subr.bf16.mxu1 %v4292_v40  ;;  %v4358_v37 = vld [vmem:[%s5911_s1 + $0x500] ss:$12 sps:$4 sm:$0xff]   ;;  %v4359_v40 = vld [vmem:[%s5911_s1 + $0x8d0] ss:$12 sps:$4 sm:$0xff]  }
  0xc1   :  { %2908 = vmatprep.subr.bf16.mxu0 %v4291_v39  ;;  %v4362_v39 = vld [vmem:[%s5911_s1 + $0x5d8] ss:$12 sps:$4 sm:$0xff]  }
  0xc2   :  { %3104 = vmatmul.mubr.bf16.vlgmr.msra.gmra.mrb[8].mxu1 %v5041_v29  ;;  %v4299_v29 = vld [vmem:[%s5911_s1 + $0x7b0] ss:$12 sps:$4 sm:$0xff]  }
  0xc3   :  { %2900 = vmatmul.mubr.bf16.vlgmr.msra.gmra.mrb[0].mxu0 %v5261_v41  ;;  %3854 = vmatpush3.bf16.msra.mxu1 %v4293_v44  ;;  %v4363_v44 = vld [vmem:[%s5911_s1 + $0x518] ss:$12 sps:$4 sm:$0xff]  }
  0xc4   :  { %2909 = vmatpush1.bf16.msra.mxu0 %v4289_v62  ;;  %3855 = vmatprep.subr.bf16.mxu1 %v4297_v47  ;;  %v590_v62 = vcombine.high %v5089_v42, %v5089_v42  ;;  %v4367_v47 = vld [vmem:[%s5911_s1 + $0x5f0] ss:$12 sps:$4 sm:$0xff]   ;;  %v4364_v42 = vld [vmem:[%s5911_s1 + $0x8e8] ss:$12 sps:$4 sm:$0xff]  }
  0xc5   :  { %2910 = vmatprep.subr.bf16.mxu0 %v4296_v45  ;;  %3143 = vmatprep.mubr.bf16.mxu1 %v4786_v3  ;;  %v4307_v3 = vld [vmem:[%s5911_s1 + $0x410] ss:$12 sps:$4 sm:$0xff]   ;;  %v4366_v45 = vld [vmem:[%s5911_s1 + $0x8ec] ss:$12 sps:$4 sm:$0xff]  }
  0xc6   :  { %2940 = vmatprep.mubr.bf16.mxu0 %v5277_v48 }
  0xc7   :  { %3856 = vmatpush3.bf16.msra.mxu1 %v4298_v50  ;;  %v4368_v50 = vld [vmem:[%s5911_s1 + $0x530] ss:$12 sps:$4 sm:$0xff]  }
  0xc8   :  { %2911 = vmatpush1.bf16.msra.mxu0 %v4294_v46  ;;  %3857 = vmatprep.subr.bf16.mxu1 %v4302_v52  ;;  %v5453_v46 = vrot.slane %v590_v62, %v4745_v49  ;;  %v4372_v52 = vld [vmem:[%s5911_s1 + $0x6c8] ss:$12 sps:$4 sm:$0xff]  }
  0xc9   :  { %2912 = vmatprep.subr.bf16.mxu0 %v4301_v51  ;;  %v4371_v51 = vld [vmem:[%s5911_s1 + $0x904] ss:$12 sps:$4 sm:$0xff]  }
  0xcb   :  { %3858 = vmatpush3.bf16.msra.mxu1 %v4303_v54  ;;  %v606_v54 = vcombine.high %v5453_v46, %v5453_v46 }
  0xcc   :  { %2913 = vmatpush1.bf16.msra.mxu0 %v4299_v29  ;;  %3859 = vmatprep.subr.bf16.mxu1 %v4307_v3  ;;  %v4369_v29 = vld [vmem:[%s5911_s1 + $0x900] ss:$12 sps:$4 sm:$0xff]   ;;  %v4373_v3 = vld [vmem:[%s5911_s1 + $0x608] ss:$12 sps:$4 sm:$0xff]  }
  0xcd   :  { %2914 = vmatprep.subr.bf16.mxu0 %v4306_v55  ;;  %v5474_v55 = vcombine.high %v5261_v41, %v5261_v41 }
  0xcf   :  { %3860 = vmatpush3.bf16.msra.mxu1 %v4308_v57  ;;  %v4377_v57 = vld [vmem:[%s5911_s1 + $0x6e0] ss:$12 sps:$4 sm:$0xff]  }
  0xd0   :  { %2915 = vmatpush1.bf16.msra.mxu0 %v4304_v56  ;;  %3861 = vmatprep.subr.bf16.mxu1 %v4312_v59  ;;  %v4376_v56 = vld [vmem:[%s5911_s1 + $0x91c] ss:$12 sps:$4 sm:$0xff]   ;;  %v4374_v59 = vld [vmem:[%s5911_s1 + $0x918] ss:$12 sps:$4 sm:$0xff]  }
  0xd1   :  { %2916 = vmatprep.subr.bf16.mxu0 %v4311_v58  ;;  %v5486_v58 = vrot.slane %v606_v54, %v4745_v49 }
  0xd3   :  { %3862 = vmatpush3.bf16.msra.mxu1 %v4313_v61  ;;  %v4381_v61 = vld [vmem:[%s5911_s1 + $0x934] ss:$12 sps:$4 sm:$0xff]  }
  0xd4   :  { %2917 = vmatpush1.bf16.msra.mxu0 %v4309_v60  ;;  %3863 = vmatprep.subr.bf16.mxu1 %v4317_v0  ;;  %v4378_v60 = vld [vmem:[%s5911_s1 + $0x620] ss:$12 sps:$4 sm:$0xff]   ;;  %v4383_v0 = vld [vmem:[%s5911_s1 + $0x638] ss:$12 sps:$4 sm:$0xff]  }
  0xd5   :  { %2918 = vmatprep.subr.bf16.mxu0 %v4316_v63  ;;  %v4379_v63 = vld [vmem:[%s5911_s1 + $0x930] ss:$12 sps:$4 sm:$0xff]  }
  0xd7   :  { %3864 = vmatpush3.bf16.msra.mxu1 %v4318_v2  ;;  %v4384_v2 = vld [vmem:[%s5911_s1 + $0x948] ss:$12 sps:$4 sm:$0xff]  }
  0xd8   :  { %2919 = vmatpush1.bf16.msra.mxu0 %v4314_v1  ;;  %3865 = vmatprep.subr.bf16.mxu1 %v4322_v5  ;;  %v4386_v1 = vld [vmem:[%s5911_s1 + $0x94c] ss:$12 sps:$4 sm:$0xff]   ;;  %v4391_v5 = vld [vmem:[%s5911_s1 + $0x964] ss:$12 sps:$4 sm:$0xff]  }
  0xd9   :  { %2920 = vmatprep.subr.bf16.mxu0 %v4321_v4  ;;  %v4388_v4 = vld [vmem:[%s5911_s1 + $0x650] ss:$12 sps:$4 sm:$0xff]  }
  0xdb   :  { %3866 = vmatpush3.bf16.msra.mxu1 %v4323_v7  ;;  %v4389_v7 = vld [vmem:[%s5911_s1 + $0x960] ss:$12 sps:$4 sm:$0xff]  }
  0xdc   :  { %2921 = vmatpush1.bf16.msra.mxu0 %v4319_v6  ;;  %3867 = vmatprep.subr.bf16.mxu1 %v4327_v9  ;;  %v4392_v6 = vld [vmem:[%s5911_s1 + $0x728] ss:$12 sps:$4 sm:$0xff]  }
  0xdd   :  { %2922 = vmatprep.subr.bf16.mxu0 %v4326_v8  ;;  %v4393_v8 = vld [vmem:[%s5911_s1 + $0x668] ss:$12 sps:$4 sm:$0xff]  }
  0xde   :  { %v4396_v9 = vld [vmem:[%s5911_s1 + $0x97c] ss:$12 sps:$4 sm:$0xff]  }
  0xdf   :  { %3868 = vmatpush3.bf16.msra.mxu1 %v4328_v11  ;;  %v4394_v11 = vld [vmem:[%s5911_s1 + $0x978] ss:$12 sps:$4 sm:$0xff]  }
  0xe0   :  { %2923 = vmatpush1.bf16.msra.mxu0 %v4324_v10  ;;  %3875 = vmatprep.subr.bf16.mxu1 %v4332_v12  ;;  %v4397_v10 = vld [vmem:[%s5911_s1 + $0x740] ss:$12 sps:$4 sm:$0xff]  }
  0xe1   :  { %2924 = vmatprep.subr.bf16.mxu0 %v4331_v17  ;;  %v4398_v17 = vld [vmem:[%s5911_s1 + $0x680] ss:$12 sps:$4 sm:$0xff]  }
  0xe2   :  { %3144 = vmatmul.mubr.bf16.vlgmr.msra.gmra.mrb[12].mxu1 %v4833_v18  ;;  %v4339_v18 = vld [vmem:[%s5911_s1 + $0x870] ss:$12 sps:$4 sm:$0xff]   ;;  %v4401_v12 = vld [vmem:[%s5911_s1 + $0x994] ss:$12 sps:$4 sm:$0xff]  }
  0xe3   :  { %3876 = vmatpush3.bf16.msra.mxu1 %v4333_v14  ;;  %3183 = vmatprep.mubr.bf16.mxu1 %v4850_v23  ;;  %v4347_v23 = vld [vmem:[%s5911_s1 + $0x590] ss:$12 sps:$4 sm:$0xff]  }
  0xe4   :  { %2925 = vmatpush1.bf16.msra.mxu0 %v4329_v13  ;;  %3877 = vmatprep.subr.bf16.mxu1 %v4337_v22  ;;  %v4402_v13 = vld [vmem:[%s5911_s1 + $0x758] ss:$12 sps:$4 sm:$0xff]   ;;  %v4399_v14 = vld [vmem:[%s5911_s1 + $0x990] ss:$12 sps:$4 sm:$0xff]  }
  0xe5   :  { %2926 = vmatprep.subr.bf16.mxu0 %v4336_v15  ;;  %v4403_v15 = vld [vmem:[%s5911_s1 + $0x698] ss:$12 sps:$4 sm:$0xff]  }
  0xe6   :  { %v4406_v22 = vld [vmem:[%s5911_s1 + $0x9ac] ss:$12 sps:$4 sm:$0xff]  }
  0xe7   :  { %3878 = vmatpush3.bf16.msra.mxu1 %v4338_v19  ;;  %v4404_v19 = vld [vmem:[%s5911_s1 + $0x9a8] ss:$12 sps:$4 sm:$0xff]  }
  0xe8   :  { %2927 = vmatpush1.bf16.msra.mxu0 %v4334_v16  ;;  %3879 = vmatprep.subr.bf16.mxu1 %v4342_v21  ;;  %v4407_v16 = vld [vmem:[%s5911_s1 + $0x770] ss:$12 sps:$4 sm:$0xff]  }
  0xe9   :  { %2928 = vmatprep.subr.bf16.mxu0 %v4341_v20  ;;  %v4408_v20 = vld [vmem:[%s5911_s1 + $0x6b0] ss:$12 sps:$4 sm:$0xff]  }
  0xea   :  { %v4411_v21 = vld [vmem:[%s5911_s1 + $0x9c4] ss:$12 sps:$4 sm:$0xff]  }
  0xeb   :  { %3880 = vmatpush3.bf16.msra.mxu1 %v4343_v24  ;;  %v4409_v24 = vld [vmem:[%s5911_s1 + $0x9c0] ss:$12 sps:$4 sm:$0xff]  }
  0xec   :  { %2929 = vmatpush1.bf16.msra.mxu0 %v4339_v18  ;;  %3881 = vmatprep.subr.bf16.mxu1 %v4347_v23  ;;  %v4412_v18 = vld [vmem:[%s5911_s1 + $0x848] ss:$12 sps:$4 sm:$0xff]  }
  0xed   :  { %2930 = vmatprep.subr.bf16.mxu0 %v4346_v25  ;;  %v4413_v25 = vld [vmem:[%s5911_s1 + $0x788] ss:$12 sps:$4 sm:$0xff]  }
  0xee   :  { %v4416_v23 = vld [vmem:[%s5911_s1 + $0x9dc] ss:$12 sps:$4 sm:$0xff]  }
  0xef   :  { %3882 = vmatpush3.bf16.msra.mxu1 %v4348_v27  ;;  %v4414_v27 = vld [vmem:[%s5911_s1 + $0x9d8] ss:$12 sps:$4 sm:$0xff]  }
  0xf0   :  { %2931 = vmatpush1.bf16.msra.mxu0 %v4344_v26  ;;  %3883 = vmatprep.subr.bf16.mxu1 %v4352_v31  ;;  %v4417_v26 = vld [vmem:[%s5911_s1 + $0x860] ss:$12 sps:$4 sm:$0xff]  }
  0xf1   :  { %2932 = vmatprep.subr.bf16.mxu0 %v4351_v28  ;;  %v4418_v28 = vld [vmem:[%s5911_s1 + $0x7a0] ss:$12 sps:$4 sm:$0xff]  }
  0xf2   :  { %v4421_v31 = vld [vmem:[%s5911_s1 + $0x9f4] ss:$12 sps:$4 sm:$0xff]  }
  0xf3   :  { %3884 = vmatpush3.bf16.msra.mxu1 %v4353_v33  ;;  %v4423_v33 = vld [vmem:[%s5911_s1 + $0x7b8] ss:$12 sps:$4 sm:$0xff]  }
  0xf4   :  { %2933 = vmatpush1.bf16.msra.mxu0 %v4349_v32  ;;  %3885 = vmatprep.subr.bf16.mxu1 %v4357_v35  ;;  %v4419_v32 = vld [vmem:[%s5911_s1 + $0x9f0] ss:$12 sps:$4 sm:$0xff]  }
  0xf5   :  { %2934 = vmatprep.subr.bf16.mxu0 %v4356_v34  ;;  %v4426_v34 = vld [vmem:[%s5911_s1 + $0xa0c] ss:$12 sps:$4 sm:$0xff]   ;;  %v4427_v35 = vld [vmem:[%s5911_s1 + $0x890] ss:$12 sps:$4 sm:$0xff]  }
  0xf7   :  { %3886 = vmatpush3.bf16.msra.mxu1 %v4358_v37 }
  0xf8   :  { %2935 = vmatpush1.bf16.msra.mxu0 %v4354_v36  ;;  %3887 = vmatprep.subr.bf16.mxu1 %v4362_v39 }
  0xf9   :  { %2936 = vmatprep.subr.bf16.mxu0 %v4361_v38 }
  0xfb   :  { %3888 = vmatpush3.bf16.msra.mxu1 %v4363_v44 }
  0xfc   :  { %2937 = vmatpush1.bf16.msra.mxu0 %v4359_v40  ;;  %3889 = vmatprep.subr.bf16.mxu1 %v4367_v47 }
  0xfd   :  { %2938 = vmatprep.subr.bf16.mxu0 %v4366_v45 }
  0xff   :  { %3890 = vmatpush3.bf16.msra.mxu1 %v4368_v50 }
 0x100   :  { %2939 = vmatpush1.bf16.msra.mxu0 %v4364_v42  ;;  %3897 = vmatprep.subr.bf16.mxu1 %v4372_v52 }
 0x101   :  { %2949 = vmatprep.subr.bf16.mxu0 %v4371_v51 }
 0x102   :  { %3184 = vmatmul.mubr.bf16.vlgmr.msra.gmra.mrb[16].mxu1 %v5045_v30  ;;  %v4382_v30 = vld [vmem:[%s5911_s1 + $0x6f8] ss:$12 sps:$4 sm:$0xff]  }
 0x103   :  { %2941 = vmatmul.mubr.bf16.vlgmr.msra.gmra.mrb[0].mxu0 %v5474_v55  ;;  %3898 = vmatpush3.bf16.msra.mxu1 %v4373_v3 }
 0x104   :  { %2950 = vmatpush1.bf16.msra.mxu0 %v4369_v29  ;;  %3899 = vmatprep.subr.bf16.mxu1 %v4377_v57 }
 0x105   :  { %2951 = vmatprep.subr.bf16.mxu0 %v4376_v56  ;;  %3223 = vmatprep.mubr.bf16.mxu1 %v5116_v53  ;;  %v4387_v53 = vld [vmem:[%s5911_s1 + $0x710] ss:$12 sps:$4 sm:$0xff]  }
 0x106   :  { %2981 = vmatprep.mubr.bf16.mxu0 %v5486_v58 }
 0x107   :  { %3900 = vmatpush3.bf16.msra.mxu1 %v4378_v60 }
 0x108   :  { %2952 = vmatpush1.bf16.msra.mxu0 %v4374_v59  ;;  %3901 = vmatprep.subr.bf16.mxu1 %v4382_v30 }
 0x109   :  { %2953 = vmatprep.subr.bf16.mxu0 %v4381_v61 }
 0x10b   :  { %3902 = vmatpush3.bf16.msra.mxu1 %v4383_v0 }
 0x10c   :  { %2954 = vmatpush1.bf16.msra.mxu0 %v4379_v63  ;;  %3903 = vmatprep.subr.bf16.mxu1 %v4387_v53 }
 0x10d   :  { %2955 = vmatprep.subr.bf16.mxu0 %v4386_v1 }
 0x10f   :  { %3904 = vmatpush3.bf16.msra.mxu1 %v4388_v4 }
 0x110   :  { %2956 = vmatpush1.bf16.msra.mxu0 %v4384_v2  ;;  %3905 = vmatprep.subr.bf16.mxu1 %v4392_v6 }
 0x111   :  { %2957 = vmatprep.subr.bf16.mxu0 %v4391_v5 }
 0x113   :  { %3906 = vmatpush3.bf16.msra.mxu1 %v4393_v8 }
 0x114   :  { %2958 = vmatpush1.bf16.msra.mxu0 %v4389_v7  ;;  %3907 = vmatprep.subr.bf16.mxu1 %v4397_v10 }
 0x115   :  { %2959 = vmatprep.subr.bf16.mxu0 %v4396_v9 }
 0x117   :  { %3908 = vmatpush3.bf16.msra.mxu1 %v4398_v17 }
 0x118   :  { %2960 = vmatpush1.bf16.msra.mxu0 %v4394_v11  ;;  %3909 = vmatprep.subr.bf16.mxu1 %v4402_v13 }
 0x119   :  { %2961 = vmatprep.subr.bf16.mxu0 %v4401_v12 }
 0x11b   :  { %3910 = vmatpush3.bf16.msra.mxu1 %v4403_v15 }
 0x11c   :  { %2962 = vmatpush1.bf16.msra.mxu0 %v4399_v14  ;;  %3911 = vmatprep.subr.bf16.mxu1 %v4407_v16 }
 0x11d   :  { %2963 = vmatprep.subr.bf16.mxu0 %v4406_v22 }
 0x11f   :  { %3912 = vmatpush3.bf16.msra.mxu1 %v4408_v20 }
 0x120   :  { %2964 = vmatpush1.bf16.msra.mxu0 %v4404_v19  ;;  %3919 = vmatprep.subr.bf16.mxu1 %v4412_v18 }
 0x121   :  { %2965 = vmatprep.subr.bf16.mxu0 %v4411_v21 }
 0x122   :  { %3224 = vmatmul.mubr.bf16.vlgmr.msra.gmra.mrb[20].mxu1 %v5261_v41  ;;  %v4422_v41 = vld [vmem:[%s5911_s1 + $0x878] ss:$12 sps:$4 sm:$0xff]  }
 0x123   :  { %3920 = vmatpush3.bf16.msra.mxu1 %v4413_v25  ;;  %3263 = vmatprep.mubr.bf16.mxu1 %v5277_v48 }
 0x124   :  { %2966 = vmatpush1.bf16.msra.mxu0 %v4409_v24  ;;  %3921 = vmatprep.subr.bf16.mxu1 %v4417_v26 }
 0x125   :  { %2967 = vmatprep.subr.bf16.mxu0 %v4416_v23 }
 0x127   :  { %3922 = vmatpush3.bf16.msra.mxu1 %v4418_v28 }
 0x128   :  { %2968 = vmatpush1.bf16.msra.mxu0 %v4414_v27  ;;  %3923 = vmatprep.subr.bf16.mxu1 %v4422_v41 }
 0x129   :  { %2969 = vmatprep.subr.bf16.mxu0 %v4421_v31 }
 0x12a   :  { %11 = vsyncpa [#allocation6], 0  ;;  %v4424_v48 = vld [vmem:[%s5911_s1 + $0xa08] ss:$12 sps:$4 sm:$0xff]   ;;  %v4428_v36 = vld [vmem:[%s5911_s1 + $0x7d0] ss:$12 sps:$4 sm:$0xff]   ;;  %v5676_v60 = vrot.slane %v5453_v46, %v4745_v49  ;;  %v5692_v46 = vcombine.high %v5486_v58, %v5486_v58 }
 0x12b   :  { %3924 = vmatpush3.bf16.msra.mxu1 %v4423_v33  ;;  %v4431_v37 = vld [vmem:[%s5911_s1 + $0xa24] ss:$12 sps:$4 sm:$0xff]   ;;  %v4432_v38 = vld [vmem:[%s5911_s1 + $0x8a8] ss:$12 sps:$4 sm:$0xff]   ;;  %v4429_v39 = vld [vmem:[%s5911_s1 + $0xa20] ss:$12 sps:$4 sm:$0xff]  }
 0x12c   :  { %2970 = vmatpush1.bf16.msra.mxu0 %v4419_v32  ;;  %3925 = vmatprep.subr.bf16.mxu1 %v4427_v35  ;;  %v4433_v40 = vld [vmem:[%s5911_s1 + $0x7e8] ss:$12 sps:$4 sm:$0xff]   ;;  %v4437_v44 = vld [vmem:[%s5911_s1 + $0x8c0] ss:$12 sps:$4 sm:$0xff]   ;;  %v4434_v45 = vld [vmem:[%s5911_s1 + $0xa38] ss:$12 sps:$4 sm:$0xff]  }
 0x12d   :  { %2971 = vmatprep.subr.bf16.mxu0 %v4426_v34  ;;  %v4436_v62 = vld [vmem:[%s5911_s1 + $0xa3c] ss:$12 sps:$4 sm:$0xff]   ;;  %v4438_v47 = vld [vmem:[%s5911_s1 + $0x800] ss:$12 sps:$4 sm:$0xff]   ;;  %v4442_v50 = vld [vmem:[%s5911_s1 + $0x8d8] ss:$12 sps:$4 sm:$0xff]  }
 0x12e   :  { %v4441_v42 = vld [vmem:[%s5911_s1 + $0xa54] ss:$12 sps:$4 sm:$0xff]   ;;  %v4439_v51 = vld [vmem:[%s5911_s1 + $0xa50] ss:$12 sps:$4 sm:$0xff]   ;;  %v4443_v52 = vld [vmem:[%s5911_s1 + $0x818] ss:$12 sps:$4 sm:$0xff]  }
 0x12f   :  { %3926 = vmatpush3.bf16.msra.mxu1 %v4428_v36  ;;  %v4446_v29 = vld [vmem:[%s5911_s1 + $0xa6c] ss:$12 sps:$4 sm:$0xff]   ;;  %v4447_v54 = vld [vmem:[%s5911_s1 + $0x8f0] ss:$12 sps:$4 sm:$0xff]   ;;  %v4444_v3 = vld [vmem:[%s5911_s1 + $0xa68] ss:$12 sps:$4 sm:$0xff]  }
 0x130   :  { %2972 = vmatpush1.bf16.msra.mxu0 %v4424_v48  ;;  %3927 = vmatprep.subr.bf16.mxu1 %v4432_v38  ;;  %v4448_v56 = vld [vmem:[%s5911_s1 + $0x830] ss:$12 sps:$4 sm:$0xff]   ;;  %v4453_v59 = vld [vmem:[%s5911_s1 + $0x9c8] ss:$12 sps:$4 sm:$0xff]   ;;  %v4450_v61 = vld [vmem:[%s5911_s1 + $0xa80] ss:$12 sps:$4 sm:$0xff]  }
 0x131   :  { %2973 = vmatprep.subr.bf16.mxu0 %v4431_v37  ;;  %v4452_v57 = vld [vmem:[%s5911_s1 + $0xa84] ss:$12 sps:$4 sm:$0xff]   ;;  %v4454_v30 = vld [vmem:[%s5911_s1 + $0x908] ss:$12 sps:$4 sm:$0xff]   ;;  %v4458_v49 = vld [vmem:[%s5911_s1 + $0x9e0] ss:$12 sps:$4 sm:$0xff]  }
 0x132   :  { %v4457_v63 = vld [vmem:[%s5911_s1 + $0xa9c] ss:$12 sps:$4 sm:$0xff]   ;;  %v4455_v0 = vld [vmem:[%s5911_s1 + $0xa98] ss:$12 sps:$4 sm:$0xff]   ;;  %v4459_v1 = vld [vmem:[%s5911_s1 + $0x920] ss:$12 sps:$4 sm:$0xff]  }
 0x133   :  { %3928 = vmatpush3.bf16.msra.mxu1 %v4433_v40  ;;  %v4462_v53 = vld [vmem:[%s5911_s1 + $0xab4] ss:$12 sps:$4 sm:$0xff]   ;;  %v4460_v2 = vld [vmem:[%s5911_s1 + $0xab0] ss:$12 sps:$4 sm:$0xff]   ;;  %v4464_v4 = vld [vmem:[%s5911_s1 + $0x938] ss:$12 sps:$4 sm:$0xff]  }
 0x134   :  { %2974 = vmatpush1.bf16.msra.mxu0 %v4429_v39  ;;  %3929 = vmatprep.subr.bf16.mxu1 %v4437_v44  ;;  %v4467_v5 = vld [vmem:[%s5911_s1 + $0xacc] ss:$12 sps:$4 sm:$0xff]   ;;  %v4465_v6 = vld [vmem:[%s5911_s1 + $0xac8] ss:$12 sps:$4 sm:$0xff]   ;;  %v4469_v7 = vld [vmem:[%s5911_s1 + $0x950] ss:$12 sps:$4 sm:$0xff]  }
 0x135   :  { %2975 = vmatprep.subr.bf16.mxu0 %v4436_v62  ;;  %v4472_v8 = vld [vmem:[%s5911_s1 + $0xae4] ss:$12 sps:$4 sm:$0xff]   ;;  %v4473_v9 = vld [vmem:[%s5911_s1 + $0xa28] ss:$12 sps:$4 sm:$0xff]   ;;  %v4470_v10 = vld [vmem:[%s5911_s1 + $0xae0] ss:$12 sps:$4 sm:$0xff]  }
 0x136   :  { %v4474_v11 = vld [vmem:[%s5911_s1 + $0x968] ss:$12 sps:$4 sm:$0xff]   ;;  %v4478_v12 = vld [vmem:[%s5911_s1 + $0xa40] ss:$12 sps:$4 sm:$0xff]   ;;  %v4475_v13 = vld [vmem:[%s5911_s1 + $0xaf8] ss:$12 sps:$4 sm:$0xff]  }
 0x137   :  { %3930 = vmatpush3.bf16.msra.mxu1 %v4438_v47  ;;  %v4477_v17 = vld [vmem:[%s5911_s1 + $0xafc] ss:$12 sps:$4 sm:$0xff]   ;;  %v4479_v14 = vld [vmem:[%s5911_s1 + $0x980] ss:$12 sps:$4 sm:$0xff]   ;;  %v4483_v22 = vld [vmem:[%s5911_s1 + $0xa58] ss:$12 sps:$4 sm:$0xff]  }
 0x138   :  { %2976 = vmatpush1.bf16.msra.mxu0 %v4434_v45  ;;  %3931 = vmatprep.subr.bf16.mxu1 %v4442_v50  ;;  %v4482_v15 = vld [vmem:[%s5911_s1 + $0xb14] ss:$12 sps:$4 sm:$0xff]   ;;  %v4480_v21 = vld [vmem:[%s5911_s1 + $0xb10] ss:$12 sps:$4 sm:$0xff]   ;;  %v4484_v18 = vld [vmem:[%s5911_s1 + $0x998] ss:$12 sps:$4 sm:$0xff]  }
 0x139   :  { %2977 = vmatprep.subr.bf16.mxu0 %v4441_v42  ;;  %v4487_v25 = vld [vmem:[%s5911_s1 + $0xb2c] ss:$12 sps:$4 sm:$0xff]   ;;  %v4488_v23 = vld [vmem:[%s5911_s1 + $0xa70] ss:$12 sps:$4 sm:$0xff]   ;;  %v4485_v26 = vld [vmem:[%s5911_s1 + $0xb28] ss:$12 sps:$4 sm:$0xff]  }
 0x13a   :  { %v4489_v27 = vld [vmem:[%s5911_s1 + $0x9b0] ss:$12 sps:$4 sm:$0xff]   ;;  %v4493_v31 = vld [vmem:[%s5911_s1 + $0xb48] ss:$12 sps:$4 sm:$0xff]   ;;  %v4490_v41 = vld [vmem:[%s5911_s1 + $0xb40] ss:$12 sps:$4 sm:$0xff]  }
 0x13b   :  { %3932 = vmatpush3.bf16.msra.mxu1 %v4443_v52  ;;  %v4492_v28 = vld [vmem:[%s5911_s1 + $0xb44] ss:$12 sps:$4 sm:$0xff]   ;;  %v4494_v32 = vld [vmem:[%s5911_s1 + $0xa88] ss:$12 sps:$4 sm:$0xff]   ;;  %v4498_v34 = vld [vmem:[%s5911_s1 + $0xb60] ss:$12 sps:$4 sm:$0xff]  }
 0x13c   :  { %2978 = vmatpush1.bf16.msra.mxu0 %v4439_v51  ;;  %3933 = vmatprep.subr.bf16.mxu1 %v4447_v54  ;;  %v4497_v33 = vld [vmem:[%s5911_s1 + $0xb5c] ss:$12 sps:$4 sm:$0xff]   ;;  %v4495_v35 = vld [vmem:[%s5911_s1 + $0xb58] ss:$12 sps:$4 sm:$0xff]   ;;  %v4499_v48 = vld [vmem:[%s5911_s1 + $0xaa0] ss:$12 sps:$4 sm:$0xff]  }
 0x13d   :  { %2979 = vmatprep.subr.bf16.mxu0 %v4446_v29  ;;  %v4502_v36 = vld [vmem:[%s5911_s1 + $0xb74] ss:$12 sps:$4 sm:$0xff]   ;;  %v4503_v37 = vld [vmem:[%s5911_s1 + $0xb78] ss:$12 sps:$4 sm:$0xff]   ;;  %v4500_v38 = vld [vmem:[%s5911_s1 + $0xb70] ss:$12 sps:$4 sm:$0xff]  }
 0x13e   :  { %v4504_v39 = vld [vmem:[%s5911_s1 + $0xab8] ss:$12 sps:$4 sm:$0xff]   ;;  %v4508_v62 = vld [vmem:[%s5911_s1 + $0xb90] ss:$12 sps:$4 sm:$0xff]   ;;  %v4505_v44 = vld [vmem:[%s5911_s1 + $0xb88] ss:$12 sps:$4 sm:$0xff]  }
 0x13f   :  { %3934 = vmatpush3.bf16.msra.mxu1 %v4448_v56  ;;  %v4507_v40 = vld [vmem:[%s5911_s1 + $0xb8c] ss:$12 sps:$4 sm:$0xff]   ;;  %v4509_v45 = vld [vmem:[%s5911_s1 + $0xad0] ss:$12 sps:$4 sm:$0xff]   ;;  %v4513_v42 = vld [vmem:[%s5911_s1 + $0xba8] ss:$12 sps:$4 sm:$0xff]  }
 0x140   :  { %2980 = vmatpush1.bf16.msra.mxu0 %v4444_v3  ;;  %3941 = vmatprep.subr.bf16.mxu1 %v4453_v59  ;;  %v4512_v47 = vld [vmem:[%s5911_s1 + $0xba4] ss:$12 sps:$4 sm:$0xff]   ;;  %v4510_v50 = vld [vmem:[%s5911_s1 + $0xba0] ss:$12 sps:$4 sm:$0xff]   ;;  %v4514_v51 = vld [vmem:[%s5911_s1 + $0xae8] ss:$12 sps:$4 sm:$0xff]  }
 0x141   :  { %2990 = vmatprep.subr.bf16.mxu0 %v4452_v57  ;;  %v4517_v52 = vld [vmem:[%s5911_s1 + $0xbbc] ss:$12 sps:$4 sm:$0xff]   ;;  %v4518_v29 = vld [vmem:[%s5911_s1 + $0xbc0] ss:$12 sps:$4 sm:$0xff]   ;;  %v4515_v54 = vld [vmem:[%s5911_s1 + $0xbb8] ss:$12 sps:$4 sm:$0xff]  }
 0x142   :  { %3264 = vmatmul.mubr.bf16.vlgmr.msra.gmra.mrb[24].mxu1 %v5474_v55  ;;  %v4463_v55 = vld [vmem:[%s5911_s1 + $0x9f8] ss:$12 sps:$4 sm:$0xff]   ;;  %v4519_v3 = vld [vmem:[%s5911_s1 + $0xb00] ss:$12 sps:$4 sm:$0xff]  }
 0x143   :  { %2982 = vmatmul.mubr.bf16.vlgmr.msra.gmra.mrb[0].mxu0 %v5676_v60  ;;  %3942 = vmatpush3.bf16.msra.mxu1 %v4454_v30  ;;  %v4522_v56 = vld [vmem:[%s5911_s1 + $0xbd4] ss:$12 sps:$4 sm:$0xff]   ;;  %v4523_v57 = vld [vmem:[%s5911_s1 + $0xbd8] ss:$12 sps:$4 sm:$0xff]  }
 0x144   :  { %2991 = vmatpush1.bf16.msra.mxu0 %v4450_v61  ;;  %3943 = vmatprep.subr.bf16.mxu1 %v4458_v49  ;;  %v4520_v49 = vld [vmem:[%s5911_s1 + $0xbd0] ss:$12 sps:$4 sm:$0xff]  }
 0x145   :  { %2992 = vmatprep.subr.bf16.mxu0 %v4457_v63  ;;  %3303 = vmatprep.mubr.bf16.mxu1 %v5486_v58  ;;  %v4468_v58 = vld [vmem:[%s5911_s1 + $0xa10] ss:$12 sps:$4 sm:$0xff]  }
 0x146   :  { %3022 = vmatprep.mubr.bf16.mxu0 %v5692_v46 }
 0x147   :  { %3944 = vmatpush3.bf16.msra.mxu1 %v4459_v1  ;;  %v4527_v1 = vld [vmem:[%s5911_s1 + $0xbec] ss:$12 sps:$4 sm:$0xff]  }
 0x148   :  { %2993 = vmatpush1.bf16.msra.mxu0 %v4455_v0  ;;  %3945 = vmatprep.subr.bf16.mxu1 %v4463_v55  ;;  %v4525_v55 = vld [vmem:[%s5911_s1 + $0xbe8] ss:$12 sps:$4 sm:$0xff]  }
 0x149   :  { %2994 = vmatprep.subr.bf16.mxu0 %v4462_v53  ;;  %v4528_v53 = vld [vmem:[%s5911_s1 + $0xbf0] ss:$12 sps:$4 sm:$0xff]  }
 0x14b   :  { %3946 = vmatpush3.bf16.msra.mxu1 %v4464_v4  ;;  %v636_v4 = vcombine.high %v5676_v60, %v5676_v60 }
 0x14c   :  { %2995 = vmatpush1.bf16.msra.mxu0 %v4460_v2  ;;  %3947 = vmatprep.subr.bf16.mxu1 %v4468_v58  ;;  %v4529_v2 = vld [vmem:[%s5911_s1 + $0xb30] ss:$12 sps:$4 sm:$0xff]  }
 0x14d   :  { %2996 = vmatprep.subr.bf16.mxu0 %v4467_v5 }
 0x14f   :  { %3948 = vmatpush3.bf16.msra.mxu1 %v4469_v7 }
 0x150   :  { %2997 = vmatpush1.bf16.msra.mxu0 %v4465_v6  ;;  %3949 = vmatprep.subr.bf16.mxu1 %v4473_v9 }
 0x151   :  { %2998 = vmatprep.subr.bf16.mxu0 %v4472_v8 }
 0x153   :  { %3950 = vmatpush3.bf16.msra.mxu1 %v4474_v11 }
 0x154   :  { %2999 = vmatpush1.bf16.msra.mxu0 %v4470_v10  ;;  %3951 = vmatprep.subr.bf16.mxu1 %v4478_v12 }
 0x155   :  { %3000 = vmatprep.subr.bf16.mxu0 %v4477_v17  ;;  %v5758_v16 = vpop.f32.mrb[0].mxu1 }
 0x156   :  { %v5760_v19 = vpop.f32.mrb[1].mxu1 }
 0x157   :  { %v2782_v20 = vpop.f32.mrb[2].mxu1  ;;  %3952 = vmatpush3.bf16.msra.mxu1 %v4479_v14 }
 0x158   :  { %3001 = vmatpush1.bf16.msra.mxu0 %v4475_v13  ;;  %v2783_v24 = vpop.f32.mrb[3].mxu1  ;;  %3953 = vmatprep.subr.bf16.mxu1 %v4483_v22 }
 0x159   :  { %3002 = vmatprep.subr.bf16.mxu0 %v4482_v15 }
 0x15b   :  { %3954 = vmatpush3.bf16.msra.mxu1 %v4484_v18 }
 0x15c   :  { %3003 = vmatpush1.bf16.msra.mxu0 %v4480_v21  ;;  %3955 = vmatprep.subr.bf16.mxu1 %v4488_v23  ;;  %v4581_v21 = vmov 0.0  }
 0x15d   :  { %3004 = vmatprep.subr.bf16.mxu0 %v4487_v25  ;;  %23 = vst [vmem:[#allocation2] sm:$0x3f] %v4581_v21 }
 0x15f   :  { %3956 = vmatpush3.bf16.msra.mxu1 %v4489_v27 }
 0x160   :  { %3005 = vmatpush1.bf16.msra.mxu0 %v4485_v26  ;;  %3963 = vmatprep.subr.bf16.mxu1 %v4493_v31 }
 0x161   :  { %3006 = vmatprep.subr.bf16.mxu0 %v4492_v28 }
 0x162   :  { %3304 = vmatmul.mubr.bf16.vlgmr.msra.gmra.mrb[28].mxu1 %v5676_v60 }
 0x163   :  { %3964 = vmatpush3.bf16.msra.mxu1 %v4494_v32  ;;  %3343 = vmatprep.mubr.bf16.mxu1 %v5692_v46  ;;  %v4524_v46 = vld [vmem:[%s5911_s1 + $0xb18] ss:$12 sps:$4 sm:$0xff]   ;;  %s4583_s1 = smov [#allocation3]  }
 0x164   :  { %3007 = vmatpush1.bf16.msra.mxu0 %v4490_v41  ;;  %3965 = vmatprep.subr.bf16.mxu1 %v4498_v34  ;;  %s3403_s15 = sshll.u32 %s4583_s1, 4  ;;  %s3404_s15 = int_to_ptr.vmem [resolvable:$true] %s3403_s15 }
 0x165   :  { %3008 = vmatprep.subr.bf16.mxu0 %v4497_v33  ;;  %s4532_s16 = scalar_lea.vmem %s3404_s15, 32  ;;  %p4537_p1 = scmp.lt.s32.totalorder %s3404_s15, %s3404_s15 }
 0x166   :  { %p4533_p0 = scmp.ne.s32.totalorder %s3404_s15, %s4532_s16  ;;  %p4538_p2 = scmp.lt.s32.totalorder %s4532_s16, %s4532_s16 }
 0x167   :  { %3966 = vmatpush3.bf16.msra.mxu1 %v4499_v48 }
 0x168   :  { %3009 = vmatpush1.bf16.msra.mxu0 %v4495_v35  ;;  %3967 = vmatprep.subr.bf16.mxu1 %v4503_v37  ;;  %p4539_p3 = por %p4538_p2, %p4537_p1 }
 0x169   :  { %3010 = vmatprep.subr.bf16.mxu0 %v4502_v36 }
 0x16a   :  { %p4540_p4 = pnand %p4539_p3, %p4533_p0 }
 0x16b   :  { %3968 = vmatpush3.bf16.msra.mxu1 %v4504_v39 }
 0x16c   :  { %3011 = vmatpush1.bf16.msra.mxu0 %v4500_v38  ;;  %3969 = vmatprep.subr.bf16.mxu1 %v4508_v62 }
 0x16d   :  { %3012 = vmatprep.subr.bf16.mxu0 %v4507_v40 }
 0x16f   :  { %3970 = vmatpush3.bf16.msra.mxu1 %v4509_v45 }
 0x170   :  { %3013 = vmatpush1.bf16.msra.mxu0 %v4505_v44  ;;  %3971 = vmatprep.subr.bf16.mxu1 %v4513_v42  ;;  %v4582_v44 = vmov 1983009808  }
 0x171   :  { %3014 = vmatprep.subr.bf16.mxu0 %v4512_v47  ;;  %v3356_v45 = vunpack.c.l.s4 %v4582_v44 }
 0x173   :  { %3972 = vmatpush3.bf16.msra.mxu1 %v4514_v51  ;;  %v3357_v47 = vunpack.c.0.s8 %v3356_v45 }
 0x174   :  { %3015 = vmatpush1.bf16.msra.mxu0 %v4510_v50  ;;  %3973 = vmatprep.subr.bf16.mxu1 %v4518_v29 }
 0x175   :  { %3016 = vmatprep.subr.bf16.mxu0 %v4517_v52  ;;  %v3825_v59 = vpop.f32.mrb[4].mxu1 }
 0x176   :  { %v3826_v61 = vpop.f32.mrb[5].mxu1 }
 0x177   :  { %v3827_v30 = vadd.f32 %v3826_v61, %v3825_v59  ;;  %v3828_v63 = vpop.f32.mrb[6].mxu1  ;;  %3974 = vmatpush3.bf16.msra.mxu1 %v4519_v3  ;;  %v3360_v3 = vsub.s32 %v3357_v47, %v4727_v43 }
 0x178   :  { %3017 = vmatpush1.bf16.msra.mxu0 %v4515_v54  ;;  %v3829_v0 = vpop.f32.mrb[7].mxu1  ;;  %3975 = vmatprep.subr.bf16.mxu1 %v4523_v57 }
 0x179   :  { %3018 = vmatprep.subr.bf16.mxu0 %v4522_v56 }
 0x17b   :  { %3976 = vmatpush3.bf16.msra.mxu1 %v4524_v46 }
 0x17c   :  { %3019 = vmatpush1.bf16.msra.mxu0 %v4520_v49  ;;  %3977 = vmatprep.subr.bf16.mxu1 %v4528_v53 }
 0x17d   :  { %3020 = vmatprep.subr.bf16.mxu0 %v4527_v1  ;;  %v24_v1 = vld [vmem:[#allocation2] sm:$0x3f] }
 0x17f   :  { %3978 = vmatpush3.bf16.msra.mxu1 %v4529_v2 }
 0x180   :  { %3021 = vmatpush1.bf16.msra.mxu0 %v4525_v55 }
 0x182   :  { %3344 = vmatmul.mubr.bf16.vlgmr.msra.gmra.mrb[32].mxu1 %v636_v4 }
 0x183   :  { %3023 = vmatmul.mubr.bf16.vlgmr.msra.gmra.mrb[0].mxu0 %v636_v4 }
 0x195   :  { %v3847_v5 = vpop.f32.mrb[8].mxu1 }
 0x196   :  { %v3848_v58 = vpop.f32.mrb[9].mxu1 }
 0x197   :  { %v3849_v6 = vadd.f32 %v3848_v58, %v3847_v5  ;;  %v3850_v7 = vpop.f32.mrb[10].mxu1 }
 0x198   :  { %v3851_v8 = vpop.f32.mrb[11].mxu1 }
 0x199   :  { %v3106_v9 = vadd.f32 %v3849_v6, %v3827_v30 }
 0x1b5   :  { %v3869_v10 = vpop.f32.mrb[12].mxu1 }
 0x1b6   :  { %v3870_v11 = vpop.f32.mrb[13].mxu1 }
 0x1b7   :  { %v3871_v17 = vadd.f32 %v3870_v11, %v3869_v10  ;;  %v3872_v12 = vpop.f32.mrb[14].mxu1 }
 0x1b8   :  { %v3873_v13 = vpop.f32.mrb[15].mxu1 }
 0x1b9   :  { %v3146_v14 = vadd.f32 %v3871_v17, %v3106_v9 }
 0x1d5   :  { %v3891_v15 = vpop.f32.mrb[16].mxu1 }
 0x1d6   :  { %v3892_v22 = vpop.f32.mrb[17].mxu1 }
 0x1d7   :  { %v3893_v20 = vadd.f32 %v3892_v22, %v3891_v15  ;;  %v3894_v60 = vpop.f32.mrb[18].mxu1 }
 0x1d8   :  { %v3895_v18 = vpop.f32.mrb[19].mxu1 }
 0x1d9   :  { %v3186_v24 = vadd.f32 %v3893_v20, %v3146_v14 }
 0x1f5   :  { %v3913_v25 = vpop.f32.mrb[20].mxu1 }
 0x1f6   :  { %v3914_v23 = vpop.f32.mrb[21].mxu1 }
 0x1f7   :  { %v3915_v26 = vadd.f32 %v3914_v23, %v3913_v25  ;;  %v3916_v27 = vpop.f32.mrb[22].mxu1 }
 0x1f8   :  { %v3917_v28 = vpop.f32.mrb[23].mxu1 }
 0x1f9   :  { %v3226_v31 = vadd.f32 %v3915_v26, %v3186_v24 }
 0x215   :  { %v3935_v41 = vpop.f32.mrb[24].mxu1 }
 0x216   :  { %v3936_v32 = vpop.f32.mrb[25].mxu1 }
 0x217   :  { %v3937_v33 = vadd.f32 %v3936_v32, %v3935_v41  ;;  %v3938_v34 = vpop.f32.mrb[26].mxu1 }
 0x218   :  { %v3939_v35 = vpop.f32.mrb[27].mxu1 }
 0x219   :  { %v3266_v48 = vadd.f32 %v3937_v33, %v3226_v31 }
 0x235   :  { %v3957_v36 = vpop.f32.mrb[28].mxu1 }
 0x236   :  { %v3958_v37 = vpop.f32.mrb[29].mxu1 }
 0x237   :  { %v3959_v38 = vadd.f32 %v3958_v37, %v3957_v36  ;;  %v3960_v39 = vpop.f32.mrb[30].mxu1 }
 0x238   :  { %v3961_v40 = vpop.f32.mrb[31].mxu1 }
 0x239   :  { %v3306_v62 = vadd.f32 %v3959_v38, %v3266_v48 }
 0x255   :  { %v3979_v50 = vpop.f32.mrb[32].mxu1 }
 0x256   :  { %v3024_v42 = vpop.f32.mrb[0].mxu0  ;;  %v3980_v29 = vpop.f32.mrb[33].mxu1 }
 0x257   :  { %v3985_v51 = vadd.f32 %v3024_v42, %v5758_v16  ;;  %v3026_v52 = vpop.f32.mrb[1].mxu0  ;;  %v3981_v56 = vadd.f32 %v3980_v29, %v3979_v50  ;;  %v3982_v59 = vpop.f32.mrb[34].mxu1 }
 0x258   :  { %v3986_v54 = vadd.f32 %v3026_v52, %v5760_v19  ;;  %v3028_v57 = vpop.f32.mrb[2].mxu0  ;;  %v3983_v30 = vpop.f32.mrb[35].mxu1 }
 0x259   :  { %v3029_v61 = vpop.f32.mrb[3].mxu0  ;;  %v3346_v49 = vadd.f32 %v3981_v56, %v3306_v62 }
 0x25a   :  { %v3354_v63 = vcombine.low %v3985_v51, %v3986_v54 }
 0x25b   :  { %v3368_v0 = vrot.slane %v3346_v49, %v3360_v3 }
 0x25c   :  { %v3361_v46 = vrot.slane %v3354_v63, %v3360_v3 }
 0x25e   :  { %v3369_v53 = vcombine.low %v3361_v46, %v3368_v0 }
 0x260   :  { %v3371_v55 = vadd.f32 %v3369_v53, %v24_v1 }
 0x262   :  { %3372 = vst [vmem:[#allocation2] sm:$0x3f] %v3371_v55 }
 0x269   :  { %v3376_v16 = vld [vmem:[#allocation2] sm:$0x3f] }
 0x26a   :  { %3377 = vst [vmem:[#allocation3] sm:$0x3] %v3376_v16  ;;  %v3380_v19 = vrot.slane %v3376_v16, 4 }
 0x26b   :  { %4543 = shalt.err (!%p4540_p4)
}
 0x26c   :  { %s4544_s19 = scalar_lea.hbm %s5913_s3, 32 }
 0x26d   :  { %p4545_p5 = scmp.ne.s32.totalorder %s5913_s3, %s4544_s19  ;;  %p4548_p6 = scmp.lt.u32.totalorder %s4544_s19, %s5913_s3 }
 0x26f   :  { %p4550_p7 = pnand %p4548_p6, %p4545_p5 }
 0x271   :  { %4553 = shalt.err (!%p4550_p7)
}
 0x272   :  { %3406 = dma.vmem_to_hbm [thread:$0]  %s3404_s15, 32, %s5913_s3, [#allocation4]   ;;  %v3382_v43 = vmul.f32 0.5, %v3380_v19  ;;  %v3392_v4 = vrot.slane %v3376_v16, %v3360_v3  ;;  %v3378_v5 = vld [vmem:[%s5912_s2] sm:$0x3] }
 0x273   :  { %s4584_s27 = smov [#allocation5]  }
 0x274   :  { %v3383_v2 = vmul.f32 1.442695, %v3382_v43  ;;  %s3413_s28 = sshll.u32 %s4584_s27, 4  ;;  %v3393_v7 = vcombine.high %v3392_v4, %v3392_v4  ;;  %s3414_s28 = int_to_ptr.vmem [resolvable:$true] %s3413_s28 }
 0x275   :  { %s4554_s29 = scalar_lea.vmem %s3414_s28, 32  ;;  %p4559_p9 = scmp.lt.s32.totalorder %s3414_s28, %s3414_s28 }
 0x276   :  { %4530 = vpow2.f32 %v3383_v2  ;;  %p4555_p8 = scmp.ne.s32.totalorder %s3414_s28, %s4554_s29  ;;  %p4560_p10 = scmp.lt.s32.totalorder %s4554_s29, %s4554_s29 }
 0x278   :  { %p4561_p11 = por %p4560_p10, %p4559_p9 }
 0x27a   :  { %p4562_p12 = pnand %p4561_p11, %p4555_p8 }
 0x280   :  { %v4531_v58 = vpop.eup %4530 }
 0x281   :  { %v3385_v6 = vmul.f32 %v4531_v58, %v3378_v5 }
 0x283   :  { %v3395_v8 = vadd.f32 %v3393_v7, %v3385_v6 }
 0x285   :  { %3396 = vst [vmem:[#allocation5] sm:$0x3] %v3395_v8 }
 0x286   :  { %4565 = shalt.err (!%p4562_p12)
}
 0x287   :  { %s4566_s5 = scalar_lea.hbm %s5914_s4, 32 }
 0x288   :  { %p4567_p13 = scmp.ne.s32.totalorder %s5914_s4, %s4566_s5  ;;  %p4570_p0 = scmp.lt.u32.totalorder %s4566_s5, %s5914_s4 }
 0x28a   :  { %p4572_p1 = pnand %p4570_p0, %p4567_p13 }
 0x28c   :  { %4575 = shalt.err (!%p4572_p1)
}
 0x28d   :  { %3416 = dma.vmem_to_hbm [thread:$0]  %s3414_s28, 32, %s5914_s4, [#allocation6]  }
 0x28e   :  { %4576 = dma.done.wait [#allocation4], 32  }
 0x28f   :  { %4577 = vsyncadd [#allocation4], 4294967264 }
 0x290   :  { %4578 = dma.done.wait [#allocation6], 32  }
 0x291   :  { %4579 = vsyncadd [#allocation6], 4294967264 }
 0x292   :  { %3423 = vsyncpa [#allocation4], 1 }
 0x293   :  { %3424 = vsyncpa [#allocation6], 1 }

</bundles_post_ra>
